<compile_context>
chip_gen: v7x
topology: tpu7x:2x2x1
jax: 0.10.0
libtpu: 0.0.40
codegen_flags: <defaults>
</compile_context>

<pallas_src>
import functools

import jax
import jax.numpy as jnp
from jax import lax
from jax.experimental import pallas as pl
from jax.experimental.pallas import tpu as pltpu

LANE = 128
_VMEM_LIMIT = 32 * 1024 * 1024  # within scoped/physical budget on v5e/v6e/v7x


# ----------------------------------------------------------------------------
# Kernels
# ----------------------------------------------------------------------------
def _linear_kernel(x_ref, w_ref, b_ref, o_ref, *, relu):
    # x: [TM, K], w: [K, N], b: [1, N]  ->  o: [TM, N]
    acc = jnp.dot(x_ref[...], w_ref[...], preferred_element_type=jnp.float32)
    acc = acc + b_ref[...]
    if relu:
        acc = jnp.maximum(acc, 0.0)
    o_ref[...] = acc.astype(o_ref.dtype)


def linear_pallas(x, w, b, relu=False, tm=256):
    """y = x @ w + b (optional fused ReLU), tiled over rows, weight resident."""
    M, K = x.shape
    K2, N = w.shape
    assert K == K2
    tm = M if M <= tm else tm  # full-M block when small; 256-row tiles otherwise
    return pl.pallas_call(
        functools.partial(_linear_kernel, relu=relu),
        out_shape=jax.ShapeDtypeStruct((M, N), x.dtype),
        grid=(pl.cdiv(M, tm),),
        in_specs=[
            pl.BlockSpec((tm, K), lambda i: (i, 0)),
            pl.BlockSpec((K, N), lambda i: (0, 0)),   # weight stays resident
            pl.BlockSpec((1, N), lambda i: (0, 0)),
        ],
        out_specs=pl.BlockSpec((tm, N), lambda i: (i, 0)),
        compiler_params=pltpu.CompilerParams(
            dimension_semantics=("parallel",),
            vmem_limit_bytes=_VMEM_LIMIT),
    )(x, w, b)


def _grit_layer_kernel(h_ref, wqkv_ref, bqkv_ref, wo_ref, bo_ref,
                       w1_ref, b1_ref, w2_ref, b2_ref, *rest,
                       scale, head_nlayers):
    """Fused transformer layer (+ optional fused SANGraphHead) for GB graphs."""
    n_head_refs = 2 * head_nlayers
    head_refs = rest[:n_head_refs]
    o_ref = rest[n_head_refs]

    GB, N, D = h_ref.shape
    x = h_ref[...].astype(jnp.float32).reshape(GB * N, D)

    # Fused QKV projection: one MXU op with output width 3D.
    qkv = jnp.dot(x, wqkv_ref[...], preferred_element_type=jnp.float32)
    qkv = (qkv + bqkv_ref[...]).reshape(GB, N, 3 * D)
    q = qkv[:, :, 0 * D:1 * D]
    k = qkv[:, :, 1 * D:2 * D]
    v = qkv[:, :, 2 * D:3 * D]

    # Batched single-head attention; contract D directly (no XLU transpose).
    s = lax.dot_general(q, k, (((2,), (2,)), ((0,), (0,))),
                        preferred_element_type=jnp.float32) * scale
    m = jnp.max(s, axis=-1, keepdims=True)
    p = jnp.exp(s - m)
    denom = jnp.sum(p, axis=-1, keepdims=True)
    p = p * pl.reciprocal(denom, approx=True)          # EUP, frees VALU slots
    a = lax.dot_general(p, v, (((2,), (1,)), ((0,), (0,))),
                        preferred_element_type=jnp.float32)
    a = a.reshape(GB * N, D)

    # Output projection + residual (residual add rides on the VPU).
    h1 = x + jnp.dot(a, wo_ref[...], preferred_element_type=jnp.float32) + bo_ref[...]

    # FFN + residual.
    f = jnp.maximum(
        jnp.dot(h1, w1_ref[...], preferred_element_type=jnp.float32) + b1_ref[...],
        0.0)
    h2 = h1 + jnp.dot(f, w2_ref[...], preferred_element_type=jnp.float32) + b2_ref[...]

    h2 = h2.reshape(GB, N, D)
    o_ref[...] = h2.astype(o_ref.dtype)

    # Optional fused SANGraphHead on the fresh activation (no HBM round-trip).
    if head_nlayers:
        head_out_ref = rest[n_head_refs + 1]
        g = jnp.mean(h2, axis=1)                       # [GB, D] global mean pool
        for layer in range(head_nlayers - 1):
            w, b = head_refs[2 * layer], head_refs[2 * layer + 1]
            g = jnp.maximum(
                jnp.dot(g, w[...], preferred_element_type=jnp.float32) + b[...],
                0.0)
        w, b = head_refs[-2], head_refs[-1]
        g = jnp.dot(g, w[...], preferred_element_type=jnp.float32) + b[...]
        head_out_ref[...] = g.astype(head_out_ref.dtype)


def fused_grit_layer(h, lp, head_params=None, graphs_per_block=8):
    """One pallas_call per layer; optionally also emits padded head logits."""
    B, N, D = h.shape
    gb = min(graphs_per_block, B)
    grid = (pl.cdiv(B, gb),)
    scale = 1.0 / (D ** 0.5)
    const2 = lambda i: (0, 0)

    inputs = [h, lp["wqkv"], lp["bqkv"], lp["wo"], lp["bo"],
              lp["w1"], lp["b1"], lp["w2"], lp["b2"]]
    in_specs = [pl.BlockSpec((gb, N, D), lambda i: (i, 0, 0))]
    for arr in inputs[1:]:
        in_specs.append(pl.BlockSpec(arr.shape, const2))   # weights resident

    head_nlayers = 0
    if head_params is not None:
        head_nlayers = len(head_params)
        for w, b in head_params:
            inputs += [w, b]
            in_specs += [pl.BlockSpec(w.shape, const2),
                         pl.BlockSpec(b.shape, const2)]

    kernel = functools.partial(_grit_layer_kernel, scale=scale,
                               head_nlayers=head_nlayers)
    cparams = pltpu.CompilerParams(
        dimension_semantics=("parallel",),       # shards over TCs on v7x
        vmem_limit_bytes=_VMEM_LIMIT)

    if head_params is None:
        out = pl.pallas_call(
            kernel,
            out_shape=jax.ShapeDtypeStruct((B, N, D), h.dtype),
            grid=grid,
            in_specs=in_specs,
            out_specs=pl.BlockSpec((gb, N, D), lambda i: (i, 0, 0)),
            compiler_params=cparams,
        )(*inputs)
        return out, None

    cpad = head_params[-1][0].shape[1]           # lane-dense padded class dim
    out, logits = pl.pallas_call(
        kernel,
        out_shape=(jax.ShapeDtypeStruct((B, N, D), h.dtype),
                   jax.ShapeDtypeStruct((B, cpad), h.dtype)),
        grid=grid,
        in_specs=in_specs,
        out_specs=(pl.BlockSpec((gb, N, D), lambda i: (i, 0, 0)),
                   pl.BlockSpec((gb, cpad), lambda i: (i, 0))),
        compiler_params=cparams,
    )(*inputs)
    return out, logits


def _san_head_kernel(h_ref, *rest, nlayers):
    # Fused mean-pool + halving MLP + final (lane-padded) linear.
    head_refs = rest[:2 * nlayers]
    o_ref = rest[2 * nlayers]
    g = jnp.mean(h_ref[...].astype(jnp.float32), axis=1)    # [GB, D]
    for layer in range(nlayers - 1):
        w, b = head_refs[2 * layer], head_refs[2 * layer + 1]
        g = jnp.maximum(
            jnp.dot(g, w[...], preferred_element_type=jnp.float32) + b[...], 0.0)
    w, b = head_refs[-2], head_refs[-1]
    g = jnp.dot(g, w[...], preferred_element_type=jnp.float32) + b[...]
    o_ref[...] = g.astype(o_ref.dtype)


def san_head_pallas(h, head_params, graphs_per_block=8):
    B, N, D = h.shape
    gb = min(graphs_per_block, B)
    cpad = head_params[-1][0].shape[1]
    const2 = lambda i: (0, 0)
    inputs = [h]
    in_specs = [pl.BlockSpec((gb, N, D), lambda i: (i, 0, 0))]
    for w, b in head_params:
        inputs += [w, b]
        in_specs += [pl.BlockSpec(w.shape, const2), pl.BlockSpec(b.shape, const2)]
    return pl.pallas_call(
        functools.partial(_san_head_kernel, nlayers=len(head_params)),
        out_shape=jax.ShapeDtypeStruct((B, cpad), h.dtype),
        grid=(pl.cdiv(B, gb),),
        in_specs=in_specs,
        out_specs=pl.BlockSpec((gb, cpad), lambda i: (i, 0)),
        compiler_params=pltpu.CompilerParams(
            dimension_semantics=("parallel",),
            vmem_limit_bytes=_VMEM_LIMIT),
    )(*inputs)


# ----------------------------------------------------------------------------
# Parameter construction (deterministic, torch.nn.Linear-style uniform init)
# ----------------------------------------------------------------------------
def _init_linear(key, d_in, d_out):
    kw, kb = jax.random.split(key)
    bound = 1.0 / (d_in ** 0.5)
    w = jax.random.uniform(kw, (d_in, d_out), jnp.float32, -bound, bound)
    b = jax.random.uniform(kb, (1, d_out), jnp.float32, -bound, bound)
    return w, b


def _san_head_params(key, dim_in, dim_out, L=2, pad_to=LANE):
    # SANGraphHead: L halving FC+ReLU layers, then a final Linear to dim_out.
    # Final linear is zero-padded to a lane-dense width; wrapper slices to C.
    keys = jax.random.split(key, L + 1)
    params = []
    d = dim_in
    for layer in range(L):
        params.append(_init_linear(keys[layer], d, d // 2))
        d //= 2
    w, b = _init_linear(keys[L], d, dim_out)
    cpad = ((dim_out + pad_to - 1) // pad_to) * pad_to
    w = jnp.pad(w, ((0, 0), (0, cpad - dim_out)))
    b = jnp.pad(b, ((0, 0), (0, cpad - dim_out)))
    params.append((w, b))
    return params


def _layer_params(key, d, ffn_mult=2):
    k = jax.random.split(key, 6)
    wq, bq = _init_linear(k[0], d, d)
    wk, bk = _init_linear(k[1], d, d)
    wv, bv = _init_linear(k[2], d, d)
    wo, bo = _init_linear(k[3], d, d)
    w1, b1 = _init_linear(k[4], d, ffn_mult * d)
    w2, b2 = _init_linear(k[5], ffn_mult * d, d)
    return {
        "wqkv": jnp.concatenate([wq, wk, wv], axis=1),   # [D, 3D] fused QKV
        "bqkv": jnp.concatenate([bq, bk, bv], axis=1),   # [1, 3D]
        "wo": wo, "bo": bo, "w1": w1, "b1": b1, "w2": w2, "b2": b2,
    }


def make_params(key, d_in, d_hidden, d_out, n_layers, n_inter, head_L=2):
    keys = jax.random.split(key, 2 + n_layers + n_inter)
    return {
        "encoder": _init_linear(keys[0], d_in, d_hidden),
        "layers": [_layer_params(keys[1 + i], d_hidden) for i in range(n_layers)],
        "intermediate_heads": [
            _san_head_params(keys[1 + n_layers + i], d_hidden, d_out, head_L)
            for i in range(n_inter)
        ],
        "post_mp": _san_head_params(keys[-1], d_hidden, d_out, head_L),
    }


# ----------------------------------------------------------------------------
# Forward pass (mirrors DynnWrapper.forward)
# ----------------------------------------------------------------------------
def dynn_wrapper_forward(params, x, dim_out):
    """x: [B, N, D_in] node features -> (final logits [B, C], [inter logits])."""
    B, N, Din = x.shape
    D = params["encoder"][0].shape[1]
    C = dim_out

    # child "encoder"
    h = linear_pallas(x.reshape(B * N, Din), *params["encoder"])
    h = h.reshape(B, N, D)

    # child "layers" + intermediate heads (DynnWrapper exit points), each layer
    # (and its head, if any) is a single fused pallas_call.
    inter_outs = []
    n_inter = len(params["intermediate_heads"])
    for layer_idx, lp in enumerate(params["layers"]):
        head_p = (params["intermediate_heads"][layer_idx]
                  if layer_idx < n_inter else None)
        h, logits = fused_grit_layer(h, lp, head_p)
        if head_p is not None:
            inter_outs.append(logits[:, :C])

    # child "post_mp"; torch head returns (graph_emb, label) and forward
    # returns batch[0] -> the graph-level logits.
    final = san_head_pallas(h, params["post_mp"])[:, :C]
    return final, inter_outs


# TODO(synk): the real GRIT layer uses sparse edge-conditioned attention over
# torch_geometric Batch objects and degree scalers; here it is realized as a
# dense per-graph single-head attention + FFN block (gates / set_learnable_gates
# are not part of forward and are omitted).

if __name__ == "__main__":
    # Hidden dim chosen as a multiple of 128 so the lane axis is dense.
    B, N, D_IN, D, C = 2, 8, 16, 128, 4
    N_LAYERS, N_INTER = 3, 2

    key = jax.random.PRNGKey(0)
    kx, kp = jax.random.split(key)
    x = jax.random.normal(kx, (B, N, D_IN), jnp.float32)
    params = make_params(kp, D_IN, D, C, N_LAYERS, N_INTER)

    fwd = jax.jit(functools.partial(dynn_wrapper_forward, dim_out=C))
    final, inter_outs = fwd(params, x)
    final = jax.block_until_ready(final)
    inter_outs = [jax.block_until_ready(o) for o in inter_outs]

    assert final.shape == (B, C) and final.dtype == jnp.float32
    assert len(inter_outs) == N_INTER
    assert all(o.shape == (B, C) for o in inter_outs)
    assert all(bool(jnp.all(jnp.isfinite(o))) for o in [final] + inter_outs)
    print("KERNEL_OK")
</pallas_src>

<mosaic_0001>
module attributes {stable_mosaic.version = 11 : i64} {
  func.func @_grit_layer_kernel(%arg0: i32, %arg1: memref<2x8x128xf32, #tpu.memory_space<vmem>>, %arg2: memref<128x384xf32, #tpu.memory_space<vmem>>, %arg3: memref<1x384xf32, #tpu.memory_space<vmem>>, %arg4: memref<128x128xf32, #tpu.memory_space<vmem>>, %arg5: memref<1x128xf32, #tpu.memory_space<vmem>>, %arg6: memref<128x256xf32, #tpu.memory_space<vmem>>, %arg7: memref<1x256xf32, #tpu.memory_space<vmem>>, %arg8: memref<256x128xf32, #tpu.memory_space<vmem>>, %arg9: memref<1x128xf32, #tpu.memory_space<vmem>>, %arg10: memref<128x64xf32, #tpu.memory_space<vmem>>, %arg11: memref<1x64xf32, #tpu.memory_space<vmem>>, %arg12: memref<64x32xf32, #tpu.memory_space<vmem>>, %arg13: memref<1x32xf32, #tpu.memory_space<vmem>>, %arg14: memref<32x128xf32, #tpu.memory_space<vmem>>, %arg15: memref<1x128xf32, #tpu.memory_space<vmem>>, %arg16: memref<2x8x128xf32, #tpu.memory_space<vmem>>, %arg17: memref<2x128xf32, #tpu.memory_space<vmem>>) attributes {dimension_semantics = [#tpu.dimension_semantics<parallel>], iteration_bounds = array<i64: 1>, scalar_prefetch = 0 : i64, scratch_operands = 0 : i64, tpu.core_type = #tpu.core_type<tc>, window_params = [{transform_indices = @transform_0, window_bounds = array<i64: 2, 8, 128>}, {pipeline_mode = #tpu.pipeline_mode<synchronous>, transform_indices = @transform_1, window_bounds = array<i64: 128, 384>}, {pipeline_mode = #tpu.pipeline_mode<synchronous>, transform_indices = @transform_2, window_bounds = array<i64: 1, 384>}, {pipeline_mode = #tpu.pipeline_mode<synchronous>, transform_indices = @transform_3, window_bounds = array<i64: 128, 128>}, {pipeline_mode = #tpu.pipeline_mode<synchronous>, transform_indices = @transform_4, window_bounds = array<i64: 1, 128>}, {pipeline_mode = #tpu.pipeline_mode<synchronous>, transform_indices = @transform_5, window_bounds = array<i64: 128, 256>}, {pipeline_mode = #tpu.pipeline_mode<synchronous>, transform_indices = @transform_6, window_bounds = array<i64: 1, 256>}, {pipeline_mode = #tpu.pipeline_mode<synchronous>, transform_indices = @transform_7, window_bounds = array<i64: 256, 128>}, {pipeline_mode = #tpu.pipeline_mode<synchronous>, transform_indices = @transform_8, window_bounds = array<i64: 1, 128>}, {pipeline_mode = #tpu.pipeline_mode<synchronous>, transform_indices = @transform_9, window_bounds = array<i64: 128, 64>}, {pipeline_mode = #tpu.pipeline_mode<synchronous>, transform_indices = @transform_10, window_bounds = array<i64: 1, 64>}, {pipeline_mode = #tpu.pipeline_mode<synchronous>, transform_indices = @transform_11, window_bounds = array<i64: 64, 32>}, {pipeline_mode = #tpu.pipeline_mode<synchronous>, transform_indices = @transform_12, window_bounds = array<i64: 1, 32>}, {pipeline_mode = #tpu.pipeline_mode<synchronous>, transform_indices = @transform_13, window_bounds = array<i64: 32, 128>}, {pipeline_mode = #tpu.pipeline_mode<synchronous>, transform_indices = @transform_14, window_bounds = array<i64: 1, 128>}, {transform_indices = @transform_15, window_bounds = array<i64: 2, 8, 128>}, {transform_indices = @transform_16, window_bounds = array<i64: 2, 128>}]} {
    %c0 = arith.constant 0 : index
    %c0_0 = arith.constant 0 : index
    %c0_1 = arith.constant 0 : index
    %0 = vector.load %arg1[%c0, %c0_0, %c0_1] : memref<2x8x128xf32, #tpu.memory_space<vmem>>, vector<2x8x128xf32>
    %1 = vector.shape_cast %0 : vector<2x8x128xf32> to vector<16x128xf32>
    %c0_2 = arith.constant 0 : index
    %c0_3 = arith.constant 0 : index
    %2 = vector.load %arg2[%c0_2, %c0_3] : memref<128x384xf32, #tpu.memory_space<vmem>>, vector<128x384xf32>
    %cst = arith.constant dense<0.000000e+00> : vector<16x384xf32>
    %3 = tpu.matmul %1, %2, %cst {dimension_numbers = #tpu.dot_dimension_numbers<[1], [0], [0], [1], [0, 0, 1, 1], [], []>} : vector<16x128xf32>, vector<128x384xf32>, vector<16x384xf32> -> vector<16x384xf32>
    %c0_4 = arith.constant 0 : index
    %c0_5 = arith.constant 0 : index
    %4 = vector.load %arg3[%c0_4, %c0_5] : memref<1x384xf32, #tpu.memory_space<vmem>>, vector<1x384xf32>
    %5 = vector.broadcast %4 : vector<1x384xf32> to vector<16x384xf32>
    %6 = arith.addf %3, %5 : vector<16x384xf32>
    %7 = vector.shape_cast %6 : vector<16x384xf32> to vector<2x8x384xf32>
    %8 = vector.extract_strided_slice %7 {offsets = [0, 0, 0], sizes = [2, 8, 128], strides = [1, 1, 1]} : vector<2x8x384xf32> to vector<2x8x128xf32>
    %9 = vector.extract_strided_slice %7 {offsets = [0, 0, 128], sizes = [2, 8, 128], strides = [1, 1, 1]} : vector<2x8x384xf32> to vector<2x8x128xf32>
    %10 = vector.extract_strided_slice %7 {offsets = [0, 0, 256], sizes = [2, 8, 128], strides = [1, 1, 1]} : vector<2x8x384xf32> to vector<2x8x128xf32>
    %cst_6 = arith.constant dense<0.000000e+00> : vector<2x8x8xf32>
    %11 = tpu.matmul %8, %9, %cst_6 {dimension_numbers = #tpu.dot_dimension_numbers<[2], [2], [1], [1], [0, 0, 0, 1, 1, 1], [0], [0]>} : vector<2x8x128xf32>, vector<2x8x128xf32>, vector<2x8x8xf32> -> vector<2x8x8xf32>
    %cst_7 = arith.constant 0.0883883461 : f32
    %12 = vector.broadcast %cst_7 : f32 to vector<2x8x8xf32>
    %13 = arith.mulf %11, %12 : vector<2x8x8xf32>
    %cst_8 = arith.constant dense<0xFF800000> : vector<2x8xf32>
    %14 = vector.multi_reduction <maximumf>, %13, %cst_8 [2] : vector<2x8x8xf32> to vector<2x8xf32>
    %15 = vector.shape_cast %14 : vector<2x8xf32> to vector<2x8x1xf32>
    %16 = vector.broadcast %15 : vector<2x8x1xf32> to vector<2x8x8xf32>
    %17 = arith.subf %13, %16 : vector<2x8x8xf32>
    %18 = math.exp %17 : vector<2x8x8xf32>
    %cst_9 = arith.constant dense<0.000000e+00> : vector<2x8xf32>
    %19 = vector.multi_reduction <add>, %18, %cst_9 [2] : vector<2x8x8xf32> to vector<2x8xf32>
    %20 = vector.shape_cast %19 : vector<2x8xf32> to vector<2x8x1xf32>
    %21 = tpu.reciprocal %20 {approx = true} : vector<2x8x1xf32> -> vector<2x8x1xf32>
    %22 = vector.broadcast %21 : vector<2x8x1xf32> to vector<2x8x8xf32>
    %23 = arith.mulf %18, %22 : vector<2x8x8xf32>
    %cst_10 = arith.constant dense<0.000000e+00> : vector<2x8x128xf32>
    %24 = tpu.matmul %23, %10, %cst_10 {dimension_numbers = #tpu.dot_dimension_numbers<[2], [1], [1], [2], [0, 0, 0, 1, 1, 2], [0], [0]>} : vector<2x8x8xf32>, vector<2x8x128xf32>, vector<2x8x128xf32> -> vector<2x8x128xf32>
    %25 = vector.shape_cast %24 : vector<2x8x128xf32> to vector<16x128xf32>
    %c0_11 = arith.constant 0 : index
    %c0_12 = arith.constant 0 : index
    %26 = vector.load %arg4[%c0_11, %c0_12] : memref<128x128xf32, #tpu.memory_space<vmem>>, vector<128x128xf32>
    %cst_13 = arith.constant dense<0.000000e+00> : vector<16x128xf32>
    %27 = tpu.matmul %25, %26, %cst_13 {dimension_numbers = #tpu.dot_dimension_numbers<[1], [0], [0], [1], [0, 0, 1, 1], [], []>} : vector<16x128xf32>, vector<128x128xf32>, vector<16x128xf32> -> vector<16x128xf32>
    %28 = arith.addf %1, %27 : vector<16x128xf32>
    %c0_14 = arith.constant 0 : index
    %c0_15 = arith.constant 0 : index
    %29 = vector.load %arg5[%c0_14, %c0_15] : memref<1x128xf32, #tpu.memory_space<vmem>>, vector<1x128xf32>
    %30 = vector.broadcast %29 : vector<1x128xf32> to vector<16x128xf32>
    %31 = arith.addf %28, %30 : vector<16x128xf32>
    %c0_16 = arith.constant 0 : index
    %c0_17 = arith.constant 0 : index
    %32 = vector.load %arg6[%c0_16, %c0_17] : memref<128x256xf32, #tpu.memory_space<vmem>>, vector<128x256xf32>
    %cst_18 = arith.constant dense<0.000000e+00> : vector<16x256xf32>
    %33 = tpu.matmul %31, %32, %cst_18 {dimension_numbers = #tpu.dot_dimension_numbers<[1], [0], [0], [1], [0, 0, 1, 1], [], []>} : vector<16x128xf32>, vector<128x256xf32>, vector<16x256xf32> -> vector<16x256xf32>
    %c0_19 = arith.constant 0 : index
    %c0_20 = arith.constant 0 : index
    %34 = vector.load %arg7[%c0_19, %c0_20] : memref<1x256xf32, #tpu.memory_space<vmem>>, vector<1x256xf32>
    %35 = vector.broadcast %34 : vector<1x256xf32> to vector<16x256xf32>
    %36 = arith.addf %33, %35 : vector<16x256xf32>
    %cst_21 = arith.constant 0.000000e+00 : f32
    %37 = vector.broadcast %cst_21 : f32 to vector<16x256xf32>
    %38 = arith.maximumf %36, %37 : vector<16x256xf32>
    %c0_22 = arith.constant 0 : index
    %c0_23 = arith.constant 0 : index
    %39 = vector.load %arg8[%c0_22, %c0_23] : memref<256x128xf32, #tpu.memory_space<vmem>>, vector<256x128xf32>
    %cst_24 = arith.constant dense<0.000000e+00> : vector<16x128xf32>
    %40 = tpu.matmul %38, %39, %cst_24 {dimension_numbers = #tpu.dot_dimension_numbers<[1], [0], [0], [1], [0, 0, 1, 1], [], []>} : vector<16x256xf32>, vector<256x128xf32>, vector<16x128xf32> -> vector<16x128xf32>
    %41 = arith.addf %31, %40 : vector<16x128xf32>
    %c0_25 = arith.constant 0 : index
    %c0_26 = arith.constant 0 : index
    %42 = vector.load %arg9[%c0_25, %c0_26] : memref<1x128xf32, #tpu.memory_space<vmem>>, vector<1x128xf32>
    %43 = vector.broadcast %42 : vector<1x128xf32> to vector<16x128xf32>
    %44 = arith.addf %41, %43 : vector<16x128xf32>
    %45 = vector.shape_cast %44 : vector<16x128xf32> to vector<2x8x128xf32>
    %c0_27 = arith.constant 0 : index
    %c0_28 = arith.constant 0 : index
    %c0_29 = arith.constant 0 : index
    %46 = vector.load %arg16[%c0_27, %c0_28, %c0_29] : memref<2x8x128xf32, #tpu.memory_space<vmem>>, vector<2x8x128xf32>
    tpu.vector_store %arg16[%c0_27, %c0_28, %c0_29], %45 {strides = array<i32>} : memref<2x8x128xf32, #tpu.memory_space<vmem>>, vector<2x8x128xf32>,
    %cst_30 = arith.constant dense<0.000000e+00> : vector<2x128xf32>
    %47 = vector.multi_reduction <add>, %45, %cst_30 [1] : vector<2x8x128xf32> to vector<2x128xf32>
    %cst_31 = arith.constant 8.000000e+00 : f32
    %48 = vector.broadcast %cst_31 : f32 to vector<2x128xf32>
    %49 = arith.divf %47, %48 : vector<2x128xf32>
    %c0_32 = arith.constant 0 : index
    %c0_33 = arith.constant 0 : index
    %50 = vector.load %arg10[%c0_32, %c0_33] : memref<128x64xf32, #tpu.memory_space<vmem>>, vector<128x64xf32>
    %cst_34 = arith.constant dense<0.000000e+00> : vector<2x64xf32>
    %51 = tpu.matmul %49, %50, %cst_34 {dimension_numbers = #tpu.dot_dimension_numbers<[1], [0], [0], [1], [0, 0, 1, 1], [], []>} : vector<2x128xf32>, vector<128x64xf32>, vector<2x64xf32> -> vector<2x64xf32>
    %c0_35 = arith.constant 0 : index
    %c0_36 = arith.constant 0 : index
    %52 = vector.load %arg11[%c0_35, %c0_36] : memref<1x64xf32, #tpu.memory_space<vmem>>, vector<1x64xf32>
    %53 = vector.broadcast %52 : vector<1x64xf32> to vector<2x64xf32>
    %54 = arith.addf %51, %53 : vector<2x64xf32>
    %cst_37 = arith.constant 0.000000e+00 : f32
    %55 = vector.broadcast %cst_37 : f32 to vector<2x64xf32>
    %56 = arith.maximumf %54, %55 : vector<2x64xf32>
    %c0_38 = arith.constant 0 : index
    %c0_39 = arith.constant 0 : index
    %57 = vector.load %arg12[%c0_38, %c0_39] : memref<64x32xf32, #tpu.memory_space<vmem>>, vector<64x32xf32>
    %cst_40 = arith.constant dense<0.000000e+00> : vector<2x32xf32>
    %58 = tpu.matmul %56, %57, %cst_40 {dimension_numbers = #tpu.dot_dimension_numbers<[1], [0], [0], [1], [0, 0, 1, 1], [], []>} : vector<2x64xf32>, vector<64x32xf32>, vector<2x32xf32> -> vector<2x32xf32>
    %c0_41 = arith.constant 0 : index
    %c0_42 = arith.constant 0 : index
    %59 = vector.load %arg13[%c0_41, %c0_42] : memref<1x32xf32, #tpu.memory_space<vmem>>, vector<1x32xf32>
    %60 = vector.broadcast %59 : vector<1x32xf32> to vector<2x32xf32>
    %61 = arith.addf %58, %60 : vector<2x32xf32>
    %cst_43 = arith.constant 0.000000e+00 : f32
    %62 = vector.broadcast %cst_43 : f32 to vector<2x32xf32>
    %63 = arith.maximumf %61, %62 : vector<2x32xf32>
    %c0_44 = arith.constant 0 : index
    %c0_45 = arith.constant 0 : index
    %64 = vector.load %arg14[%c0_44, %c0_45] : memref<32x128xf32, #tpu.memory_space<vmem>>, vector<32x128xf32>
    %cst_46 = arith.constant dense<0.000000e+00> : vector<2x128xf32>
    %65 = tpu.matmul %63, %64, %cst_46 {dimension_numbers = #tpu.dot_dimension_numbers<[1], [0], [0], [1], [0, 0, 1, 1], [], []>} : vector<2x32xf32>, vector<32x128xf32>, vector<2x128xf32> -> vector<2x128xf32>
    %c0_47 = arith.constant 0 : index
    %c0_48 = arith.constant 0 : index
    %66 = vector.load %arg15[%c0_47, %c0_48] : memref<1x128xf32, #tpu.memory_space<vmem>>, vector<1x128xf32>
    %67 = vector.broadcast %66 : vector<1x128xf32> to vector<2x128xf32>
    %68 = arith.addf %65, %67 : vector<2x128xf32>
    %c0_49 = arith.constant 0 : index
    %c0_50 = arith.constant 0 : index
    %69 = vector.load %arg17[%c0_49, %c0_50] : memref<2x128xf32, #tpu.memory_space<vmem>>, vector<2x128xf32>
    tpu.vector_store %arg17[%c0_49, %c0_50], %68 {strides = array<i32>} : memref<2x128xf32, #tpu.memory_space<vmem>>, vector<2x128xf32>,
    return
  }
  func.func @transform_0(%arg0: i32) -> (i32, i32, i32) {
    %c0_i32 = arith.constant 0 : i32
    %c0_i32_0 = arith.constant 0 : i32
    %c0_i32_1 = arith.constant 0 : i32
    return %arg0, %c0_i32, %c0_i32_0 : i32, i32, i32
  }
  func.func @transform_1(%arg0: i32) -> (i32, i32) {
    %c0_i32 = arith.constant 0 : i32
    %c0_i32_0 = arith.constant 0 : i32
    %c0_i32_1 = arith.constant 0 : i32
    return %c0_i32, %c0_i32_0 : i32, i32
  }
  func.func @transform_2(%arg0: i32) -> (i32, i32) {
    %c0_i32 = arith.constant 0 : i32
    %c0_i32_0 = arith.constant 0 : i32
    %c0_i32_1 = arith.constant 0 : i32
    return %c0_i32, %c0_i32_0 : i32, i32
  }
  func.func @transform_3(%arg0: i32) -> (i32, i32) {
    %c0_i32 = arith.constant 0 : i32
    %c0_i32_0 = arith.constant 0 : i32
    %c0_i32_1 = arith.constant 0 : i32
    return %c0_i32, %c0_i32_0 : i32, i32
  }
  func.func @transform_4(%arg0: i32) -> (i32, i32) {
    %c0_i32 = arith.constant 0 : i32
    %c0_i32_0 = arith.constant 0 : i32
    %c0_i32_1 = arith.constant 0 : i32
    return %c0_i32, %c0_i32_0 : i32, i32
  }
  func.func @transform_5(%arg0: i32) -> (i32, i32) {
    %c0_i32 = arith.constant 0 : i32
    %c0_i32_0 = arith.constant 0 : i32
    %c0_i32_1 = arith.constant 0 : i32
    return %c0_i32, %c0_i32_0 : i32, i32
  }
  func.func @transform_6(%arg0: i32) -> (i32, i32) {
    %c0_i32 = arith.constant 0 : i32
    %c0_i32_0 = arith.constant 0 : i32
    %c0_i32_1 = arith.constant 0 : i32
    return %c0_i32, %c0_i32_0 : i32, i32
  }
  func.func @transform_7(%arg0: i32) -> (i32, i32) {
    %c0_i32 = arith.constant 0 : i32
    %c0_i32_0 = arith.constant 0 : i32
    %c0_i32_1 = arith.constant 0 : i32
    return %c0_i32, %c0_i32_0 : i32, i32
  }
  func.func @transform_8(%arg0: i32) -> (i32, i32) {
    %c0_i32 = arith.constant 0 : i32
    %c0_i32_0 = arith.constant 0 : i32
    %c0_i32_1 = arith.constant 0 : i32
    return %c0_i32, %c0_i32_0 : i32, i32
  }
  func.func @transform_9(%arg0: i32) -> (i32, i32) {
    %c0_i32 = arith.constant 0 : i32
    %c0_i32_0 = arith.constant 0 : i32
    %c0_i32_1 = arith.constant 0 : i32
    return %c0_i32, %c0_i32_0 : i32, i32
  }
  func.func @transform_10(%arg0: i32) -> (i32, i32) {
    %c0_i32 = arith.constant 0 : i32
    %c0_i32_0 = arith.constant 0 : i32
    %c0_i32_1 = arith.constant 0 : i32
    return %c0_i32, %c0_i32_0 : i32, i32
  }
  func.func @transform_11(%arg0: i32) -> (i32, i32) {
    %c0_i32 = arith.constant 0 : i32
    %c0_i32_0 = arith.constant 0 : i32
    %c0_i32_1 = arith.constant 0 : i32
    return %c0_i32, %c0_i32_0 : i32, i32
  }
  func.func @transform_12(%arg0: i32) -> (i32, i32) {
    %c0_i32 = arith.constant 0 : i32
    %c0_i32_0 = arith.constant 0 : i32
    %c0_i32_1 = arith.constant 0 : i32
    return %c0_i32, %c0_i32_0 : i32, i32
  }
  func.func @transform_13(%arg0: i32) -> (i32, i32) {
    %c0_i32 = arith.constant 0 : i32
    %c0_i32_0 = arith.constant 0 : i32
    %c0_i32_1 = arith.constant 0 : i32
    return %c0_i32, %c0_i32_0 : i32, i32
  }
  func.func @transform_14(%arg0: i32) -> (i32, i32) {
    %c0_i32 = arith.constant 0 : i32
    %c0_i32_0 = arith.constant 0 : i32
    %c0_i32_1 = arith.constant 0 : i32
    return %c0_i32, %c0_i32_0 : i32, i32
  }
  func.func @transform_15(%arg0: i32) -> (i32, i32, i32) {
    %c0_i32 = arith.constant 0 : i32
    %c0_i32_0 = arith.constant 0 : i32
    %c0_i32_1 = arith.constant 0 : i32
    return %arg0, %c0_i32, %c0_i32_0 : i32, i32, i32
  }
  func.func @transform_16(%arg0: i32) -> (i32, i32) {
    %c0_i32 = arith.constant 0 : i32
    %c0_i32_0 = arith.constant 0 : i32
    return %arg0, %c0_i32 : i32, i32
  }
}

module attributes {stable_mosaic.version = 11 : i64} {
  func.func @_linear_kernel(%arg0: i32, %arg1: memref<16x16xf32, #tpu.memory_space<vmem>>, %arg2: memref<16x128xf32, #tpu.memory_space<vmem>>, %arg3: memref<1x128xf32, #tpu.memory_space<vmem>>, %arg4: memref<16x128xf32, #tpu.memory_space<vmem>>) attributes {dimension_semantics = [#tpu.dimension_semantics<parallel>], iteration_bounds = array<i64: 1>, scalar_prefetch = 0 : i64, scratch_operands = 0 : i64, tpu.core_type = #tpu.core_type<tc>, window_params = [{transform_indices = @transform_0, window_bounds = array<i64: 16, 16>}, {pipeline_mode = #tpu.pipeline_mode<synchronous>, transform_indices = @transform_1, window_bounds = array<i64: 16, 128>}, {pipeline_mode = #tpu.pipeline_mode<synchronous>, transform_indices = @transform_2, window_bounds = array<i64: 1, 128>}, {transform_indices = @transform_3, window_bounds = array<i64: 16, 128>}]} {
    %c0 = arith.constant 0 : index
    %c0_0 = arith.constant 0 : index
    %0 = vector.load %arg1[%c0, %c0_0] : memref<16x16xf32, #tpu.memory_space<vmem>>, vector<16x16xf32>
    %c0_1 = arith.constant 0 : index
    %c0_2 = arith.constant 0 : index
    %1 = vector.load %arg2[%c0_1, %c0_2] : memref<16x128xf32, #tpu.memory_space<vmem>>, vector<16x128xf32>
    %cst = arith.constant dense<0.000000e+00> : vector<16x128xf32>
    %2 = tpu.matmul %0, %1, %cst {dimension_numbers = #tpu.dot_dimension_numbers<[1], [0], [0], [1], [0, 0, 1, 1], [], []>} : vector<16x16xf32>, vector<16x128xf32>, vector<16x128xf32> -> vector<16x128xf32>
    %c0_3 = arith.constant 0 : index
    %c0_4 = arith.constant 0 : index
    %3 = vector.load %arg3[%c0_3, %c0_4] : memref<1x128xf32, #tpu.memory_space<vmem>>, vector<1x128xf32>
    %4 = vector.broadcast %3 : vector<1x128xf32> to vector<16x128xf32>
    %5 = arith.addf %2, %4 : vector<16x128xf32>
    %c0_5 = arith.constant 0 : index
    %c0_6 = arith.constant 0 : index
    %6 = vector.load %arg4[%c0_5, %c0_6] : memref<16x128xf32, #tpu.memory_space<vmem>>, vector<16x128xf32>
    tpu.vector_store %arg4[%c0_5, %c0_6], %5 {strides = array<i32>} : memref<16x128xf32, #tpu.memory_space<vmem>>, vector<16x128xf32>,
    return
  }
  func.func @transform_0(%arg0: i32) -> (i32, i32) {
    %c0_i32 = arith.constant 0 : i32
    %c0_i32_0 = arith.constant 0 : i32
    return %arg0, %c0_i32 : i32, i32
  }
  func.func @transform_1(%arg0: i32) -> (i32, i32) {
    %c0_i32 = arith.constant 0 : i32
    %c0_i32_0 = arith.constant 0 : i32
    %c0_i32_1 = arith.constant 0 : i32
    return %c0_i32, %c0_i32_0 : i32, i32
  }
  func.func @transform_2(%arg0: i32) -> (i32, i32) {
    %c0_i32 = arith.constant 0 : i32
    %c0_i32_0 = arith.constant 0 : i32
    %c0_i32_1 = arith.constant 0 : i32
    return %c0_i32, %c0_i32_0 : i32, i32
  }
  func.func @transform_3(%arg0: i32) -> (i32, i32) {
    %c0_i32 = arith.constant 0 : i32
    %c0_i32_0 = arith.constant 0 : i32
    return %arg0, %c0_i32 : i32, i32
  }
}

module attributes {stable_mosaic.version = 11 : i64} {
  func.func @_grit_layer_kernel(%arg0: i32, %arg1: memref<2x8x128xf32, #tpu.memory_space<vmem>>, %arg2: memref<128x384xf32, #tpu.memory_space<vmem>>, %arg3: memref<1x384xf32, #tpu.memory_space<vmem>>, %arg4: memref<128x128xf32, #tpu.memory_space<vmem>>, %arg5: memref<1x128xf32, #tpu.memory_space<vmem>>, %arg6: memref<128x256xf32, #tpu.memory_space<vmem>>, %arg7: memref<1x256xf32, #tpu.memory_space<vmem>>, %arg8: memref<256x128xf32, #tpu.memory_space<vmem>>, %arg9: memref<1x128xf32, #tpu.memory_space<vmem>>, %arg10: memref<128x64xf32, #tpu.memory_space<vmem>>, %arg11: memref<1x64xf32, #tpu.memory_space<vmem>>, %arg12: memref<64x32xf32, #tpu.memory_space<vmem>>, %arg13: memref<1x32xf32, #tpu.memory_space<vmem>>, %arg14: memref<32x128xf32, #tpu.memory_space<vmem>>, %arg15: memref<1x128xf32, #tpu.memory_space<vmem>>, %arg16: memref<2x8x128xf32, #tpu.memory_space<vmem>>, %arg17: memref<2x128xf32, #tpu.memory_space<vmem>>) attributes {dimension_semantics = [#tpu.dimension_semantics<parallel>], iteration_bounds = array<i64: 1>, scalar_prefetch = 0 : i64, scratch_operands = 0 : i64, tpu.core_type = #tpu.core_type<tc>, window_params = [{transform_indices = @transform_0, window_bounds = array<i64: 2, 8, 128>}, {pipeline_mode = #tpu.pipeline_mode<synchronous>, transform_indices = @transform_1, window_bounds = array<i64: 128, 384>}, {pipeline_mode = #tpu.pipeline_mode<synchronous>, transform_indices = @transform_2, window_bounds = array<i64: 1, 384>}, {pipeline_mode = #tpu.pipeline_mode<synchronous>, transform_indices = @transform_3, window_bounds = array<i64: 128, 128>}, {pipeline_mode = #tpu.pipeline_mode<synchronous>, transform_indices = @transform_4, window_bounds = array<i64: 1, 128>}, {pipeline_mode = #tpu.pipeline_mode<synchronous>, transform_indices = @transform_5, window_bounds = array<i64: 128, 256>}, {pipeline_mode = #tpu.pipeline_mode<synchronous>, transform_indices = @transform_6, window_bounds = array<i64: 1, 256>}, {pipeline_mode = #tpu.pipeline_mode<synchronous>, transform_indices = @transform_7, window_bounds = array<i64: 256, 128>}, {pipeline_mode = #tpu.pipeline_mode<synchronous>, transform_indices = @transform_8, window_bounds = array<i64: 1, 128>}, {pipeline_mode = #tpu.pipeline_mode<synchronous>, transform_indices = @transform_9, window_bounds = array<i64: 128, 64>}, {pipeline_mode = #tpu.pipeline_mode<synchronous>, transform_indices = @transform_10, window_bounds = array<i64: 1, 64>}, {pipeline_mode = #tpu.pipeline_mode<synchronous>, transform_indices = @transform_11, window_bounds = array<i64: 64, 32>}, {pipeline_mode = #tpu.pipeline_mode<synchronous>, transform_indices = @transform_12, window_bounds = array<i64: 1, 32>}, {pipeline_mode = #tpu.pipeline_mode<synchronous>, transform_indices = @transform_13, window_bounds = array<i64: 32, 128>}, {pipeline_mode = #tpu.pipeline_mode<synchronous>, transform_indices = @transform_14, window_bounds = array<i64: 1, 128>}, {transform_indices = @transform_15, window_bounds = array<i64: 2, 8, 128>}, {transform_indices = @transform_16, window_bounds = array<i64: 2, 128>}]} {
    %c0 = arith.constant 0 : index
    %c0_0 = arith.constant 0 : index
    %c0_1 = arith.constant 0 : index
    %0 = vector.load %arg1[%c0, %c0_0, %c0_1] : memref<2x8x128xf32, #tpu.memory_space<vmem>>, vector<2x8x128xf32>
    %1 = vector.shape_cast %0 : vector<2x8x128xf32> to vector<16x128xf32>
    %c0_2 = arith.constant 0 : index
    %c0_3 = arith.constant 0 : index
    %2 = vector.load %arg2[%c0_2, %c0_3] : memref<128x384xf32, #tpu.memory_space<vmem>>, vector<128x384xf32>
    %cst = arith.constant dense<0.000000e+00> : vector<16x384xf32>
    %3 = tpu.matmul %1, %2, %cst {dimension_numbers = #tpu.dot_dimension_numbers<[1], [0], [0], [1], [0, 0, 1, 1], [], []>} : vector<16x128xf32>, vector<128x384xf32>, vector<16x384xf32> -> vector<16x384xf32>
    %c0_4 = arith.constant 0 : index
    %c0_5 = arith.constant 0 : index
    %4 = vector.load %arg3[%c0_4, %c0_5] : memref<1x384xf32, #tpu.memory_space<vmem>>, vector<1x384xf32>
    %5 = vector.broadcast %4 : vector<1x384xf32> to vector<16x384xf32>
    %6 = arith.addf %3, %5 : vector<16x384xf32>
    %7 = vector.shape_cast %6 : vector<16x384xf32> to vector<2x8x384xf32>
    %8 = vector.extract_strided_slice %7 {offsets = [0, 0, 0], sizes = [2, 8, 128], strides = [1, 1, 1]} : vector<2x8x384xf32> to vector<2x8x128xf32>
    %9 = vector.extract_strided_slice %7 {offsets = [0, 0, 128], sizes = [2, 8, 128], strides = [1, 1, 1]} : vector<2x8x384xf32> to vector<2x8x128xf32>
    %10 = vector.extract_strided_slice %7 {offsets = [0, 0, 256], sizes = [2, 8, 128], strides = [1, 1, 1]} : vector<2x8x384xf32> to vector<2x8x128xf32>
    %cst_6 = arith.constant dense<0.000000e+00> : vector<2x8x8xf32>
    %11 = tpu.matmul %8, %9, %cst_6 {dimension_numbers = #tpu.dot_dimension_numbers<[2], [2], [1], [1], [0, 0, 0, 1, 1, 1], [0], [0]>} : vector<2x8x128xf32>, vector<2x8x128xf32>, vector<2x8x8xf32> -> vector<2x8x8xf32>
    %cst_7 = arith.constant 0.0883883461 : f32
    %12 = vector.broadcast %cst_7 : f32 to vector<2x8x8xf32>
    %13 = arith.mulf %11, %12 : vector<2x8x8xf32>
    %cst_8 = arith.constant dense<0xFF800000> : vector<2x8xf32>
    %14 = vector.multi_reduction <maximumf>, %13, %cst_8 [2] : vector<2x8x8xf32> to vector<2x8xf32>
    %15 = vector.shape_cast %14 : vector<2x8xf32> to vector<2x8x1xf32>
    %16 = vector.broadcast %15 : vector<2x8x1xf32> to vector<2x8x8xf32>
    %17 = arith.subf %13, %16 : vector<2x8x8xf32>
    %18 = math.exp %17 : vector<2x8x8xf32>
    %cst_9 = arith.constant dense<0.000000e+00> : vector<2x8xf32>
    %19 = vector.multi_reduction <add>, %18, %cst_9 [2] : vector<2x8x8xf32> to vector<2x8xf32>
    %20 = vector.shape_cast %19 : vector<2x8xf32> to vector<2x8x1xf32>
    %21 = tpu.reciprocal %20 {approx = true} : vector<2x8x1xf32> -> vector<2x8x1xf32>
    %22 = vector.broadcast %21 : vector<2x8x1xf32> to vector<2x8x8xf32>
    %23 = arith.mulf %18, %22 : vector<2x8x8xf32>
    %cst_10 = arith.constant dense<0.000000e+00> : vector<2x8x128xf32>
    %24 = tpu.matmul %23, %10, %cst_10 {dimension_numbers = #tpu.dot_dimension_numbers<[2], [1], [1], [2], [0, 0, 0, 1, 1, 2], [0], [0]>} : vector<2x8x8xf32>, vector<2x8x128xf32>, vector<2x8x128xf32> -> vector<2x8x128xf32>
    %25 = vector.shape_cast %24 : vector<2x8x128xf32> to vector<16x128xf32>
    %c0_11 = arith.constant 0 : index
    %c0_12 = arith.constant 0 : index
    %26 = vector.load %arg4[%c0_11, %c0_12] : memref<128x128xf32, #tpu.memory_space<vmem>>, vector<128x128xf32>
    %cst_13 = arith.constant dense<0.000000e+00> : vector<16x128xf32>
    %27 = tpu.matmul %25, %26, %cst_13 {dimension_numbers = #tpu.dot_dimension_numbers<[1], [0], [0], [1], [0, 0, 1, 1], [], []>} : vector<16x128xf32>, vector<128x128xf32>, vector<16x128xf32> -> vector<16x128xf32>
    %28 = arith.addf %1, %27 : vector<16x128xf32>
    %c0_14 = arith.constant 0 : index
    %c0_15 = arith.constant 0 : index
    %29 = vector.load %arg5[%c0_14, %c0_15] : memref<1x128xf32, #tpu.memory_space<vmem>>, vector<1x128xf32>
    %30 = vector.broadcast %29 : vector<1x128xf32> to vector<16x128xf32>
    %31 = arith.addf %28, %30 : vector<16x128xf32>
    %c0_16 = arith.constant 0 : index
    %c0_17 = arith.constant 0 : index
    %32 = vector.load %arg6[%c0_16, %c0_17] : memref<128x256xf32, #tpu.memory_space<vmem>>, vector<128x256xf32>
    %cst_18 = arith.constant dense<0.000000e+00> : vector<16x256xf32>
    %33 = tpu.matmul %31, %32, %cst_18 {dimension_numbers = #tpu.dot_dimension_numbers<[1], [0], [0], [1], [0, 0, 1, 1], [], []>} : vector<16x128xf32>, vector<128x256xf32>, vector<16x256xf32> -> vector<16x256xf32>
    %c0_19 = arith.constant 0 : index
    %c0_20 = arith.constant 0 : index
    %34 = vector.load %arg7[%c0_19, %c0_20] : memref<1x256xf32, #tpu.memory_space<vmem>>, vector<1x256xf32>
    %35 = vector.broadcast %34 : vector<1x256xf32> to vector<16x256xf32>
    %36 = arith.addf %33, %35 : vector<16x256xf32>
    %cst_21 = arith.constant 0.000000e+00 : f32
    %37 = vector.broadcast %cst_21 : f32 to vector<16x256xf32>
    %38 = arith.maximumf %36, %37 : vector<16x256xf32>
    %c0_22 = arith.constant 0 : index
    %c0_23 = arith.constant 0 : index
    %39 = vector.load %arg8[%c0_22, %c0_23] : memref<256x128xf32, #tpu.memory_space<vmem>>, vector<256x128xf32>
    %cst_24 = arith.constant dense<0.000000e+00> : vector<16x128xf32>
    %40 = tpu.matmul %38, %39, %cst_24 {dimension_numbers = #tpu.dot_dimension_numbers<[1], [0], [0], [1], [0, 0, 1, 1], [], []>} : vector<16x256xf32>, vector<256x128xf32>, vector<16x128xf32> -> vector<16x128xf32>
    %41 = arith.addf %31, %40 : vector<16x128xf32>
    %c0_25 = arith.constant 0 : index
    %c0_26 = arith.constant 0 : index
    %42 = vector.load %arg9[%c0_25, %c0_26] : memref<1x128xf32, #tpu.memory_space<vmem>>, vector<1x128xf32>
    %43 = vector.broadcast %42 : vector<1x128xf32> to vector<16x128xf32>
    %44 = arith.addf %41, %43 : vector<16x128xf32>
    %45 = vector.shape_cast %44 : vector<16x128xf32> to vector<2x8x128xf32>
    %c0_27 = arith.constant 0 : index
    %c0_28 = arith.constant 0 : index
    %c0_29 = arith.constant 0 : index
    %46 = vector.load %arg16[%c0_27, %c0_28, %c0_29] : memref<2x8x128xf32, #tpu.memory_space<vmem>>, vector<2x8x128xf32>
    tpu.vector_store %arg16[%c0_27, %c0_28, %c0_29], %45 {strides = array<i32>} : memref<2x8x128xf32, #tpu.memory_space<vmem>>, vector<2x8x128xf32>,
    %cst_30 = arith.constant dense<0.000000e+00> : vector<2x128xf32>
    %47 = vector.multi_reduction <add>, %45, %cst_30 [1] : vector<2x8x128xf32> to vector<2x128xf32>
    %cst_31 = arith.constant 8.000000e+00 : f32
    %48 = vector.broadcast %cst_31 : f32 to vector<2x128xf32>
    %49 = arith.divf %47, %48 : vector<2x128xf32>
    %c0_32 = arith.constant 0 : index
    %c0_33 = arith.constant 0 : index
    %50 = vector.load %arg10[%c0_32, %c0_33] : memref<128x64xf32, #tpu.memory_space<vmem>>, vector<128x64xf32>
    %cst_34 = arith.constant dense<0.000000e+00> : vector<2x64xf32>
    %51 = tpu.matmul %49, %50, %cst_34 {dimension_numbers = #tpu.dot_dimension_numbers<[1], [0], [0], [1], [0, 0, 1, 1], [], []>} : vector<2x128xf32>, vector<128x64xf32>, vector<2x64xf32> -> vector<2x64xf32>
    %c0_35 = arith.constant 0 : index
    %c0_36 = arith.constant 0 : index
    %52 = vector.load %arg11[%c0_35, %c0_36] : memref<1x64xf32, #tpu.memory_space<vmem>>, vector<1x64xf32>
    %53 = vector.broadcast %52 : vector<1x64xf32> to vector<2x64xf32>
    %54 = arith.addf %51, %53 : vector<2x64xf32>
    %cst_37 = arith.constant 0.000000e+00 : f32
    %55 = vector.broadcast %cst_37 : f32 to vector<2x64xf32>
    %56 = arith.maximumf %54, %55 : vector<2x64xf32>
    %c0_38 = arith.constant 0 : index
    %c0_39 = arith.constant 0 : index
    %57 = vector.load %arg12[%c0_38, %c0_39] : memref<64x32xf32, #tpu.memory_space<vmem>>, vector<64x32xf32>
    %cst_40 = arith.constant dense<0.000000e+00> : vector<2x32xf32>
    %58 = tpu.matmul %56, %57, %cst_40 {dimension_numbers = #tpu.dot_dimension_numbers<[1], [0], [0], [1], [0, 0, 1, 1], [], []>} : vector<2x64xf32>, vector<64x32xf32>, vector<2x32xf32> -> vector<2x32xf32>
    %c0_41 = arith.constant 0 : index
    %c0_42 = arith.constant 0 : index
    %59 = vector.load %arg13[%c0_41, %c0_42] : memref<1x32xf32, #tpu.memory_space<vmem>>, vector<1x32xf32>
    %60 = vector.broadcast %59 : vector<1x32xf32> to vector<2x32xf32>
    %61 = arith.addf %58, %60 : vector<2x32xf32>
    %cst_43 = arith.constant 0.000000e+00 : f32
    %62 = vector.broadcast %cst_43 : f32 to vector<2x32xf32>
    %63 = arith.maximumf %61, %62 : vector<2x32xf32>
    %c0_44 = arith.constant 0 : index
    %c0_45 = arith.constant 0 : index
    %64 = vector.load %arg14[%c0_44, %c0_45] : memref<32x128xf32, #tpu.memory_space<vmem>>, vector<32x128xf32>
    %cst_46 = arith.constant dense<0.000000e+00> : vector<2x128xf32>
    %65 = tpu.matmul %63, %64, %cst_46 {dimension_numbers = #tpu.dot_dimension_numbers<[1], [0], [0], [1], [0, 0, 1, 1], [], []>} : vector<2x32xf32>, vector<32x128xf32>, vector<2x128xf32> -> vector<2x128xf32>
    %c0_47 = arith.constant 0 : index
    %c0_48 = arith.constant 0 : index
    %66 = vector.load %arg15[%c0_47, %c0_48] : memref<1x128xf32, #tpu.memory_space<vmem>>, vector<1x128xf32>
    %67 = vector.broadcast %66 : vector<1x128xf32> to vector<2x128xf32>
    %68 = arith.addf %65, %67 : vector<2x128xf32>
    %c0_49 = arith.constant 0 : index
    %c0_50 = arith.constant 0 : index
    %69 = vector.load %arg17[%c0_49, %c0_50] : memref<2x128xf32, #tpu.memory_space<vmem>>, vector<2x128xf32>
    tpu.vector_store %arg17[%c0_49, %c0_50], %68 {strides = array<i32>} : memref<2x128xf32, #tpu.memory_space<vmem>>, vector<2x128xf32>,
    return
  }
  func.func @transform_0(%arg0: i32) -> (i32, i32, i32) {
    %c0_i32 = arith.constant 0 : i32
    %c0_i32_0 = arith.constant 0 : i32
    %c0_i32_1 = arith.constant 0 : i32
    return %arg0, %c0_i32, %c0_i32_0 : i32, i32, i32
  }
  func.func @transform_1(%arg0: i32) -> (i32, i32) {
    %c0_i32 = arith.constant 0 : i32
    %c0_i32_0 = arith.constant 0 : i32
    %c0_i32_1 = arith.constant 0 : i32
    return %c0_i32, %c0_i32_0 : i32, i32
  }
  func.func @transform_2(%arg0: i32) -> (i32, i32) {
    %c0_i32 = arith.constant 0 : i32
    %c0_i32_0 = arith.constant 0 : i32
    %c0_i32_1 = arith.constant 0 : i32
    return %c0_i32, %c0_i32_0 : i32, i32
  }
  func.func @transform_3(%arg0: i32) -> (i32, i32) {
    %c0_i32 = arith.constant 0 : i32
    %c0_i32_0 = arith.constant 0 : i32
    %c0_i32_1 = arith.constant 0 : i32
    return %c0_i32, %c0_i32_0 : i32, i32
  }
  func.func @transform_4(%arg0: i32) -> (i32, i32) {
    %c0_i32 = arith.constant 0 : i32
    %c0_i32_0 = arith.constant 0 : i32
    %c0_i32_1 = arith.constant 0 : i32
    return %c0_i32, %c0_i32_0 : i32, i32
  }
  func.func @transform_5(%arg0: i32) -> (i32, i32) {
    %c0_i32 = arith.constant 0 : i32
    %c0_i32_0 = arith.constant 0 : i32
    %c0_i32_1 = arith.constant 0 : i32
    return %c0_i32, %c0_i32_0 : i32, i32
  }
  func.func @transform_6(%arg0: i32) -> (i32, i32) {
    %c0_i32 = arith.constant 0 : i32
    %c0_i32_0 = arith.constant 0 : i32
    %c0_i32_1 = arith.constant 0 : i32
    return %c0_i32, %c0_i32_0 : i32, i32
  }
  func.func @transform_7(%arg0: i32) -> (i32, i32) {
    %c0_i32 = arith.constant 0 : i32
    %c0_i32_0 = arith.constant 0 : i32
    %c0_i32_1 = arith.constant 0 : i32
    return %c0_i32, %c0_i32_0 : i32, i32
  }
  func.func @transform_8(%arg0: i32) -> (i32, i32) {
    %c0_i32 = arith.constant 0 : i32
    %c0_i32_0 = arith.constant 0 : i32
    %c0_i32_1 = arith.constant 0 : i32
    return %c0_i32, %c0_i32_0 : i32, i32
  }
  func.func @transform_9(%arg0: i32) -> (i32, i32) {
    %c0_i32 = arith.constant 0 : i32
    %c0_i32_0 = arith.constant 0 : i32
    %c0_i32_1 = arith.constant 0 : i32
    return %c0_i32, %c0_i32_0 : i32, i32
  }
  func.func @transform_10(%arg0: i32) -> (i32, i32) {
    %c0_i32 = arith.constant 0 : i32
    %c0_i32_0 = arith.constant 0 : i32
    %c0_i32_1 = arith.constant 0 : i32
    return %c0_i32, %c0_i32_0 : i32, i32
  }
  func.func @transform_11(%arg0: i32) -> (i32, i32) {
    %c0_i32 = arith.constant 0 : i32
    %c0_i32_0 = arith.constant 0 : i32
    %c0_i32_1 = arith.constant 0 : i32
    return %c0_i32, %c0_i32_0 : i32, i32
  }
  func.func @transform_12(%arg0: i32) -> (i32, i32) {
    %c0_i32 = arith.constant 0 : i32
    %c0_i32_0 = arith.constant 0 : i32
    %c0_i32_1 = arith.constant 0 : i32
    return %c0_i32, %c0_i32_0 : i32, i32
  }
  func.func @transform_13(%arg0: i32) -> (i32, i32) {
    %c0_i32 = arith.constant 0 : i32
    %c0_i32_0 = arith.constant 0 : i32
    %c0_i32_1 = arith.constant 0 : i32
    return %c0_i32, %c0_i32_0 : i32, i32
  }
  func.func @transform_14(%arg0: i32) -> (i32, i32) {
    %c0_i32 = arith.constant 0 : i32
    %c0_i32_0 = arith.constant 0 : i32
    %c0_i32_1 = arith.constant 0 : i32
    return %c0_i32, %c0_i32_0 : i32, i32
  }
  func.func @transform_15(%arg0: i32) -> (i32, i32, i32) {
    %c0_i32 = arith.constant 0 : i32
    %c0_i32_0 = arith.constant 0 : i32
    %c0_i32_1 = arith.constant 0 : i32
    return %arg0, %c0_i32, %c0_i32_0 : i32, i32, i32
  }
  func.func @transform_16(%arg0: i32) -> (i32, i32) {
    %c0_i32 = arith.constant 0 : i32
    %c0_i32_0 = arith.constant 0 : i32
    return %arg0, %c0_i32 : i32, i32
  }
}

module attributes {stable_mosaic.version = 11 : i64} {
  func.func @_grit_layer_kernel(%arg0: i32, %arg1: memref<2x8x128xf32, #tpu.memory_space<vmem>>, %arg2: memref<128x384xf32, #tpu.memory_space<vmem>>, %arg3: memref<1x384xf32, #tpu.memory_space<vmem>>, %arg4: memref<128x128xf32, #tpu.memory_space<vmem>>, %arg5: memref<1x128xf32, #tpu.memory_space<vmem>>, %arg6: memref<128x256xf32, #tpu.memory_space<vmem>>, %arg7: memref<1x256xf32, #tpu.memory_space<vmem>>, %arg8: memref<256x128xf32, #tpu.memory_space<vmem>>, %arg9: memref<1x128xf32, #tpu.memory_space<vmem>>, %arg10: memref<2x8x128xf32, #tpu.memory_space<vmem>>) attributes {dimension_semantics = [#tpu.dimension_semantics<parallel>], iteration_bounds = array<i64: 1>, scalar_prefetch = 0 : i64, scratch_operands = 0 : i64, tpu.core_type = #tpu.core_type<tc>, window_params = [{transform_indices = @transform_0, window_bounds = array<i64: 2, 8, 128>}, {pipeline_mode = #tpu.pipeline_mode<synchronous>, transform_indices = @transform_1, window_bounds = array<i64: 128, 384>}, {pipeline_mode = #tpu.pipeline_mode<synchronous>, transform_indices = @transform_2, window_bounds = array<i64: 1, 384>}, {pipeline_mode = #tpu.pipeline_mode<synchronous>, transform_indices = @transform_3, window_bounds = array<i64: 128, 128>}, {pipeline_mode = #tpu.pipeline_mode<synchronous>, transform_indices = @transform_4, window_bounds = array<i64: 1, 128>}, {pipeline_mode = #tpu.pipeline_mode<synchronous>, transform_indices = @transform_5, window_bounds = array<i64: 128, 256>}, {pipeline_mode = #tpu.pipeline_mode<synchronous>, transform_indices = @transform_6, window_bounds = array<i64: 1, 256>}, {pipeline_mode = #tpu.pipeline_mode<synchronous>, transform_indices = @transform_7, window_bounds = array<i64: 256, 128>}, {pipeline_mode = #tpu.pipeline_mode<synchronous>, transform_indices = @transform_8, window_bounds = array<i64: 1, 128>}, {transform_indices = @transform_9, window_bounds = array<i64: 2, 8, 128>}]} {
    %c0 = arith.constant 0 : index
    %c0_0 = arith.constant 0 : index
    %c0_1 = arith.constant 0 : index
    %0 = vector.load %arg1[%c0, %c0_0, %c0_1] : memref<2x8x128xf32, #tpu.memory_space<vmem>>, vector<2x8x128xf32>
    %1 = vector.shape_cast %0 : vector<2x8x128xf32> to vector<16x128xf32>
    %c0_2 = arith.constant 0 : index
    %c0_3 = arith.constant 0 : index
    %2 = vector.load %arg2[%c0_2, %c0_3] : memref<128x384xf32, #tpu.memory_space<vmem>>, vector<128x384xf32>
    %cst = arith.constant dense<0.000000e+00> : vector<16x384xf32>
    %3 = tpu.matmul %1, %2, %cst {dimension_numbers = #tpu.dot_dimension_numbers<[1], [0], [0], [1], [0, 0, 1, 1], [], []>} : vector<16x128xf32>, vector<128x384xf32>, vector<16x384xf32> -> vector<16x384xf32>
    %c0_4 = arith.constant 0 : index
    %c0_5 = arith.constant 0 : index
    %4 = vector.load %arg3[%c0_4, %c0_5] : memref<1x384xf32, #tpu.memory_space<vmem>>, vector<1x384xf32>
    %5 = vector.broadcast %4 : vector<1x384xf32> to vector<16x384xf32>
    %6 = arith.addf %3, %5 : vector<16x384xf32>
    %7 = vector.shape_cast %6 : vector<16x384xf32> to vector<2x8x384xf32>
    %8 = vector.extract_strided_slice %7 {offsets = [0, 0, 0], sizes = [2, 8, 128], strides = [1, 1, 1]} : vector<2x8x384xf32> to vector<2x8x128xf32>
    %9 = vector.extract_strided_slice %7 {offsets = [0, 0, 128], sizes = [2, 8, 128], strides = [1, 1, 1]} : vector<2x8x384xf32> to vector<2x8x128xf32>
    %10 = vector.extract_strided_slice %7 {offsets = [0, 0, 256], sizes = [2, 8, 128], strides = [1, 1, 1]} : vector<2x8x384xf32> to vector<2x8x128xf32>
    %cst_6 = arith.constant dense<0.000000e+00> : vector<2x8x8xf32>
    %11 = tpu.matmul %8, %9, %cst_6 {dimension_numbers = #tpu.dot_dimension_numbers<[2], [2], [1], [1], [0, 0, 0, 1, 1, 1], [0], [0]>} : vector<2x8x128xf32>, vector<2x8x128xf32>, vector<2x8x8xf32> -> vector<2x8x8xf32>
    %cst_7 = arith.constant 0.0883883461 : f32
    %12 = vector.broadcast %cst_7 : f32 to vector<2x8x8xf32>
    %13 = arith.mulf %11, %12 : vector<2x8x8xf32>
    %cst_8 = arith.constant dense<0xFF800000> : vector<2x8xf32>
    %14 = vector.multi_reduction <maximumf>, %13, %cst_8 [2] : vector<2x8x8xf32> to vector<2x8xf32>
    %15 = vector.shape_cast %14 : vector<2x8xf32> to vector<2x8x1xf32>
    %16 = vector.broadcast %15 : vector<2x8x1xf32> to vector<2x8x8xf32>
    %17 = arith.subf %13, %16 : vector<2x8x8xf32>
    %18 = math.exp %17 : vector<2x8x8xf32>
    %cst_9 = arith.constant dense<0.000000e+00> : vector<2x8xf32>
    %19 = vector.multi_reduction <add>, %18, %cst_9 [2] : vector<2x8x8xf32> to vector<2x8xf32>
    %20 = vector.shape_cast %19 : vector<2x8xf32> to vector<2x8x1xf32>
    %21 = tpu.reciprocal %20 {approx = true} : vector<2x8x1xf32> -> vector<2x8x1xf32>
    %22 = vector.broadcast %21 : vector<2x8x1xf32> to vector<2x8x8xf32>
    %23 = arith.mulf %18, %22 : vector<2x8x8xf32>
    %cst_10 = arith.constant dense<0.000000e+00> : vector<2x8x128xf32>
    %24 = tpu.matmul %23, %10, %cst_10 {dimension_numbers = #tpu.dot_dimension_numbers<[2], [1], [1], [2], [0, 0, 0, 1, 1, 2], [0], [0]>} : vector<2x8x8xf32>, vector<2x8x128xf32>, vector<2x8x128xf32> -> vector<2x8x128xf32>
    %25 = vector.shape_cast %24 : vector<2x8x128xf32> to vector<16x128xf32>
    %c0_11 = arith.constant 0 : index
    %c0_12 = arith.constant 0 : index
    %26 = vector.load %arg4[%c0_11, %c0_12] : memref<128x128xf32, #tpu.memory_space<vmem>>, vector<128x128xf32>
    %cst_13 = arith.constant dense<0.000000e+00> : vector<16x128xf32>
    %27 = tpu.matmul %25, %26, %cst_13 {dimension_numbers = #tpu.dot_dimension_numbers<[1], [0], [0], [1], [0, 0, 1, 1], [], []>} : vector<16x128xf32>, vector<128x128xf32>, vector<16x128xf32> -> vector<16x128xf32>
    %28 = arith.addf %1, %27 : vector<16x128xf32>
    %c0_14 = arith.constant 0 : index
    %c0_15 = arith.constant 0 : index
    %29 = vector.load %arg5[%c0_14, %c0_15] : memref<1x128xf32, #tpu.memory_space<vmem>>, vector<1x128xf32>
    %30 = vector.broadcast %29 : vector<1x128xf32> to vector<16x128xf32>
    %31 = arith.addf %28, %30 : vector<16x128xf32>
    %c0_16 = arith.constant 0 : index
    %c0_17 = arith.constant 0 : index
    %32 = vector.load %arg6[%c0_16, %c0_17] : memref<128x256xf32, #tpu.memory_space<vmem>>, vector<128x256xf32>
    %cst_18 = arith.constant dense<0.000000e+00> : vector<16x256xf32>
    %33 = tpu.matmul %31, %32, %cst_18 {dimension_numbers = #tpu.dot_dimension_numbers<[1], [0], [0], [1], [0, 0, 1, 1], [], []>} : vector<16x128xf32>, vector<128x256xf32>, vector<16x256xf32> -> vector<16x256xf32>
    %c0_19 = arith.constant 0 : index
    %c0_20 = arith.constant 0 : index
    %34 = vector.load %arg7[%c0_19, %c0_20] : memref<1x256xf32, #tpu.memory_space<vmem>>, vector<1x256xf32>
    %35 = vector.broadcast %34 : vector<1x256xf32> to vector<16x256xf32>
    %36 = arith.addf %33, %35 : vector<16x256xf32>
    %cst_21 = arith.constant 0.000000e+00 : f32
    %37 = vector.broadcast %cst_21 : f32 to vector<16x256xf32>
    %38 = arith.maximumf %36, %37 : vector<16x256xf32>
    %c0_22 = arith.constant 0 : index
    %c0_23 = arith.constant 0 : index
    %39 = vector.load %arg8[%c0_22, %c0_23] : memref<256x128xf32, #tpu.memory_space<vmem>>, vector<256x128xf32>
    %cst_24 = arith.constant dense<0.000000e+00> : vector<16x128xf32>
    %40 = tpu.matmul %38, %39, %cst_24 {dimension_numbers = #tpu.dot_dimension_numbers<[1], [0], [0], [1], [0, 0, 1, 1], [], []>} : vector<16x256xf32>, vector<256x128xf32>, vector<16x128xf32> -> vector<16x128xf32>
    %41 = arith.addf %31, %40 : vector<16x128xf32>
    %c0_25 = arith.constant 0 : index
    %c0_26 = arith.constant 0 : index
    %42 = vector.load %arg9[%c0_25, %c0_26] : memref<1x128xf32, #tpu.memory_space<vmem>>, vector<1x128xf32>
    %43 = vector.broadcast %42 : vector<1x128xf32> to vector<16x128xf32>
    %44 = arith.addf %41, %43 : vector<16x128xf32>
    %45 = vector.shape_cast %44 : vector<16x128xf32> to vector<2x8x128xf32>
    %c0_27 = arith.constant 0 : index
    %c0_28 = arith.constant 0 : index
    %c0_29 = arith.constant 0 : index
    %46 = vector.load %arg10[%c0_27, %c0_28, %c0_29] : memref<2x8x128xf32, #tpu.memory_space<vmem>>, vector<2x8x128xf32>
    tpu.vector_store %arg10[%c0_27, %c0_28, %c0_29], %45 {strides = array<i32>} : memref<2x8x128xf32, #tpu.memory_space<vmem>>, vector<2x8x128xf32>,
    return
  }
  func.func @transform_0(%arg0: i32) -> (i32, i32, i32) {
    %c0_i32 = arith.constant 0 : i32
    %c0_i32_0 = arith.constant 0 : i32
    %c0_i32_1 = arith.constant 0 : i32
    return %arg0, %c0_i32, %c0_i32_0 : i32, i32, i32
  }
  func.func @transform_1(%arg0: i32) -> (i32, i32) {
    %c0_i32 = arith.constant 0 : i32
    %c0_i32_0 = arith.constant 0 : i32
    %c0_i32_1 = arith.constant 0 : i32
    return %c0_i32, %c0_i32_0 : i32, i32
  }
  func.func @transform_2(%arg0: i32) -> (i32, i32) {
    %c0_i32 = arith.constant 0 : i32
    %c0_i32_0 = arith.constant 0 : i32
    %c0_i32_1 = arith.constant 0 : i32
    return %c0_i32, %c0_i32_0 : i32, i32
  }
  func.func @transform_3(%arg0: i32) -> (i32, i32) {
    %c0_i32 = arith.constant 0 : i32
    %c0_i32_0 = arith.constant 0 : i32
    %c0_i32_1 = arith.constant 0 : i32
    return %c0_i32, %c0_i32_0 : i32, i32
  }
  func.func @transform_4(%arg0: i32) -> (i32, i32) {
    %c0_i32 = arith.constant 0 : i32
    %c0_i32_0 = arith.constant 0 : i32
    %c0_i32_1 = arith.constant 0 : i32
    return %c0_i32, %c0_i32_0 : i32, i32
  }
  func.func @transform_5(%arg0: i32) -> (i32, i32) {
    %c0_i32 = arith.constant 0 : i32
    %c0_i32_0 = arith.constant 0 : i32
    %c0_i32_1 = arith.constant 0 : i32
    return %c0_i32, %c0_i32_0 : i32, i32
  }
  func.func @transform_6(%arg0: i32) -> (i32, i32) {
    %c0_i32 = arith.constant 0 : i32
    %c0_i32_0 = arith.constant 0 : i32
    %c0_i32_1 = arith.constant 0 : i32
    return %c0_i32, %c0_i32_0 : i32, i32
  }
  func.func @transform_7(%arg0: i32) -> (i32, i32) {
    %c0_i32 = arith.constant 0 : i32
    %c0_i32_0 = arith.constant 0 : i32
    %c0_i32_1 = arith.constant 0 : i32
    return %c0_i32, %c0_i32_0 : i32, i32
  }
  func.func @transform_8(%arg0: i32) -> (i32, i32) {
    %c0_i32 = arith.constant 0 : i32
    %c0_i32_0 = arith.constant 0 : i32
    %c0_i32_1 = arith.constant 0 : i32
    return %c0_i32, %c0_i32_0 : i32, i32
  }
  func.func @transform_9(%arg0: i32) -> (i32, i32, i32) {
    %c0_i32 = arith.constant 0 : i32
    %c0_i32_0 = arith.constant 0 : i32
    %c0_i32_1 = arith.constant 0 : i32
    return %arg0, %c0_i32, %c0_i32_0 : i32, i32, i32
  }
}

module attributes {stable_mosaic.version = 11 : i64} {
  func.func @_san_head_kernel(%arg0: i32, %arg1: memref<2x8x128xf32, #tpu.memory_space<vmem>>, %arg2: memref<128x64xf32, #tpu.memory_space<vmem>>, %arg3: memref<1x64xf32, #tpu.memory_space<vmem>>, %arg4: memref<64x32xf32, #tpu.memory_space<vmem>>, %arg5: memref<1x32xf32, #tpu.memory_space<vmem>>, %arg6: memref<32x128xf32, #tpu.memory_space<vmem>>, %arg7: memref<1x128xf32, #tpu.memory_space<vmem>>, %arg8: memref<2x128xf32, #tpu.memory_space<vmem>>) attributes {dimension_semantics = [#tpu.dimension_semantics<parallel>], iteration_bounds = array<i64: 1>, scalar_prefetch = 0 : i64, scratch_operands = 0 : i64, tpu.core_type = #tpu.core_type<tc>, window_params = [{transform_indices = @transform_0, window_bounds = array<i64: 2, 8, 128>}, {pipeline_mode = #tpu.pipeline_mode<synchronous>, transform_indices = @transform_1, window_bounds = array<i64: 128, 64>}, {pipeline_mode = #tpu.pipeline_mode<synchronous>, transform_indices = @transform_2, window_bounds = array<i64: 1, 64>}, {pipeline_mode = #tpu.pipeline_mode<synchronous>, transform_indices = @transform_3, window_bounds = array<i64: 64, 32>}, {pipeline_mode = #tpu.pipeline_mode<synchronous>, transform_indices = @transform_4, window_bounds = array<i64: 1, 32>}, {pipeline_mode = #tpu.pipeline_mode<synchronous>, transform_indices = @transform_5, window_bounds = array<i64: 32, 128>}, {pipeline_mode = #tpu.pipeline_mode<synchronous>, transform_indices = @transform_6, window_bounds = array<i64: 1, 128>}, {transform_indices = @transform_7, window_bounds = array<i64: 2, 128>}]} {
    %c0 = arith.constant 0 : index
    %c0_0 = arith.constant 0 : index
    %c0_1 = arith.constant 0 : index
    %0 = vector.load %arg1[%c0, %c0_0, %c0_1] : memref<2x8x128xf32, #tpu.memory_space<vmem>>, vector<2x8x128xf32>
    %cst = arith.constant dense<0.000000e+00> : vector<2x128xf32>
    %1 = vector.multi_reduction <add>, %0, %cst [1] : vector<2x8x128xf32> to vector<2x128xf32>
    %cst_2 = arith.constant 8.000000e+00 : f32
    %2 = vector.broadcast %cst_2 : f32 to vector<2x128xf32>
    %3 = arith.divf %1, %2 : vector<2x128xf32>
    %c0_3 = arith.constant 0 : index
    %c0_4 = arith.constant 0 : index
    %4 = vector.load %arg2[%c0_3, %c0_4] : memref<128x64xf32, #tpu.memory_space<vmem>>, vector<128x64xf32>
    %cst_5 = arith.constant dense<0.000000e+00> : vector<2x64xf32>
    %5 = tpu.matmul %3, %4, %cst_5 {dimension_numbers = #tpu.dot_dimension_numbers<[1], [0], [0], [1], [0, 0, 1, 1], [], []>} : vector<2x128xf32>, vector<128x64xf32>, vector<2x64xf32> -> vector<2x64xf32>
    %c0_6 = arith.constant 0 : index
    %c0_7 = arith.constant 0 : index
    %6 = vector.load %arg3[%c0_6, %c0_7] : memref<1x64xf32, #tpu.memory_space<vmem>>, vector<1x64xf32>
    %7 = vector.broadcast %6 : vector<1x64xf32> to vector<2x64xf32>
    %8 = arith.addf %5, %7 : vector<2x64xf32>
    %cst_8 = arith.constant 0.000000e+00 : f32
    %9 = vector.broadcast %cst_8 : f32 to vector<2x64xf32>
    %10 = arith.maximumf %8, %9 : vector<2x64xf32>
    %c0_9 = arith.constant 0 : index
    %c0_10 = arith.constant 0 : index
    %11 = vector.load %arg4[%c0_9, %c0_10] : memref<64x32xf32, #tpu.memory_space<vmem>>, vector<64x32xf32>
    %cst_11 = arith.constant dense<0.000000e+00> : vector<2x32xf32>
    %12 = tpu.matmul %10, %11, %cst_11 {dimension_numbers = #tpu.dot_dimension_numbers<[1], [0], [0], [1], [0, 0, 1, 1], [], []>} : vector<2x64xf32>, vector<64x32xf32>, vector<2x32xf32> -> vector<2x32xf32>
    %c0_12 = arith.constant 0 : index
    %c0_13 = arith.constant 0 : index
    %13 = vector.load %arg5[%c0_12, %c0_13] : memref<1x32xf32, #tpu.memory_space<vmem>>, vector<1x32xf32>
    %14 = vector.broadcast %13 : vector<1x32xf32> to vector<2x32xf32>
    %15 = arith.addf %12, %14 : vector<2x32xf32>
    %cst_14 = arith.constant 0.000000e+00 : f32
    %16 = vector.broadcast %cst_14 : f32 to vector<2x32xf32>
    %17 = arith.maximumf %15, %16 : vector<2x32xf32>
    %c0_15 = arith.constant 0 : index
    %c0_16 = arith.constant 0 : index
    %18 = vector.load %arg6[%c0_15, %c0_16] : memref<32x128xf32, #tpu.memory_space<vmem>>, vector<32x128xf32>
    %cst_17 = arith.constant dense<0.000000e+00> : vector<2x128xf32>
    %19 = tpu.matmul %17, %18, %cst_17 {dimension_numbers = #tpu.dot_dimension_numbers<[1], [0], [0], [1], [0, 0, 1, 1], [], []>} : vector<2x32xf32>, vector<32x128xf32>, vector<2x128xf32> -> vector<2x128xf32>
    %c0_18 = arith.constant 0 : index
    %c0_19 = arith.constant 0 : index
    %20 = vector.load %arg7[%c0_18, %c0_19] : memref<1x128xf32, #tpu.memory_space<vmem>>, vector<1x128xf32>
    %21 = vector.broadcast %20 : vector<1x128xf32> to vector<2x128xf32>
    %22 = arith.addf %19, %21 : vector<2x128xf32>
    %c0_20 = arith.constant 0 : index
    %c0_21 = arith.constant 0 : index
    %23 = vector.load %arg8[%c0_20, %c0_21] : memref<2x128xf32, #tpu.memory_space<vmem>>, vector<2x128xf32>
    tpu.vector_store %arg8[%c0_20, %c0_21], %22 {strides = array<i32>} : memref<2x128xf32, #tpu.memory_space<vmem>>, vector<2x128xf32>,
    return
  }
  func.func @transform_0(%arg0: i32) -> (i32, i32, i32) {
    %c0_i32 = arith.constant 0 : i32
    %c0_i32_0 = arith.constant 0 : i32
    %c0_i32_1 = arith.constant 0 : i32
    return %arg0, %c0_i32, %c0_i32_0 : i32, i32, i32
  }
  func.func @transform_1(%arg0: i32) -> (i32, i32) {
    %c0_i32 = arith.constant 0 : i32
    %c0_i32_0 = arith.constant 0 : i32
    %c0_i32_1 = arith.constant 0 : i32
    return %c0_i32, %c0_i32_0 : i32, i32
  }
  func.func @transform_2(%arg0: i32) -> (i32, i32) {
    %c0_i32 = arith.constant 0 : i32
    %c0_i32_0 = arith.constant 0 : i32
    %c0_i32_1 = arith.constant 0 : i32
    return %c0_i32, %c0_i32_0 : i32, i32
  }
  func.func @transform_3(%arg0: i32) -> (i32, i32) {
    %c0_i32 = arith.constant 0 : i32
    %c0_i32_0 = arith.constant 0 : i32
    %c0_i32_1 = arith.constant 0 : i32
    return %c0_i32, %c0_i32_0 : i32, i32
  }
  func.func @transform_4(%arg0: i32) -> (i32, i32) {
    %c0_i32 = arith.constant 0 : i32
    %c0_i32_0 = arith.constant 0 : i32
    %c0_i32_1 = arith.constant 0 : i32
    return %c0_i32, %c0_i32_0 : i32, i32
  }
  func.func @transform_5(%arg0: i32) -> (i32, i32) {
    %c0_i32 = arith.constant 0 : i32
    %c0_i32_0 = arith.constant 0 : i32
    %c0_i32_1 = arith.constant 0 : i32
    return %c0_i32, %c0_i32_0 : i32, i32
  }
  func.func @transform_6(%arg0: i32) -> (i32, i32) {
    %c0_i32 = arith.constant 0 : i32
    %c0_i32_0 = arith.constant 0 : i32
    %c0_i32_1 = arith.constant 0 : i32
    return %c0_i32, %c0_i32_0 : i32, i32
  }
  func.func @transform_7(%arg0: i32) -> (i32, i32) {
    %c0_i32 = arith.constant 0 : i32
    %c0_i32_0 = arith.constant 0 : i32
    return %arg0, %c0_i32 : i32, i32
  }
}

</mosaic_0001>

<bundles_post_ra>
// kernel: dynn_wrapper_forward.5
= control target key start
LH: loop header
LB: loop body
LE: loop exit
PB: predicated region body
PF: predicated region fallthrough
CT: control target
= control target key end

     0   :  { %8 = vsyncpa [#allocation3], 0  ;;  %s173_s12 = smov [#allocation2]   ;;  %s223_s0 = inlined_call_operand.vmem [shape: f32[16,16], index: 0, kind: input, shape index: {}]   ;;  %s224_s1 = inlined_call_operand.hbm [shape: f32[16,128], index: 1, kind: input, shape index: {}]   ;;  %s225_s2 = inlined_call_operand.vmem [shape: f32[1,128], index: 2, kind: input, shape index: {}]   ;;  %s226_s3 = inlined_call_operand.vmem [shape: f32[16,128], index: 3, kind: output, shape index: {}]  }
   0x1   :  { %s16_s13 = sshll.u32 %s173_s12, 4  ;;  %s149_s16 = scalar_lea.hbm %s224_s1, 256  ;;  %s17_s13 = int_to_ptr.vmem [resolvable:$true] %s16_s13 }
   0x2   :  { %p150_p0 = scmp.ne.s32.totalorder %s224_s1, %s149_s16  ;;  %p153_p1 = scmp.lt.u32.totalorder %s149_s16, %s224_s1 }
   0x4   :  { %p155_p2 = pnand %p153_p1, %p150_p0 }
   0x6   :  { %158 = shalt.err (!%p155_p2)
}
   0x7   :  { %s159_s21 = scalar_lea.vmem %s17_s13, 256  ;;  %p164_p4 = scmp.lt.s32.totalorder %s17_s13, %s17_s13 }
   0x8   :  { %p160_p3 = scmp.ne.s32.totalorder %s17_s13, %s159_s21  ;;  %p165_p5 = scmp.lt.s32.totalorder %s159_s21, %s159_s21 }
   0xa   :  { %p166_p6 = por %p165_p5, %p164_p4 }
   0xc   :  { %p167_p7 = pnand %p166_p6, %p160_p3 }
   0xe   :  { %170 = shalt.err (!%p167_p7)
}
   0xf   :  { %s174_s22 = smov 128   ;;  %s175_s23 = smov 8  }
  0x10   :  { %22 = dma.hbm_to_vmem [thread:$0]  %s224_s1, 256, %s17_s13, [#allocation3], %s174_s22, %s174_s22, %s175_s23  }
  0x11   :  { %171 = dma.done.wait [#allocation3], 256  }
  0x12   :  { %172 = vsyncadd [#allocation3], 4294967040  ;;  %vm39_vm0 = vcmask 130048   ;;  %v30_v0 = vld [vmem:[#allocation2] sm:$0xff]  ;;  %v31_v1 = vld [vmem:[#allocation2 + $0x8] sm:$0xff] }
  0x13   :  { %v28_v2 = vld [vmem:[%s223_s0] sm:$0xff]  ;;  %v142_v3 = vpack.c.bf16 %v31_v1, %v30_v0  ;;  %v29_v4 = vld [vmem:[%s223_s0 + $0x8] sm:$0xff] }
  0x14   :  { %139 = vmatprep.mubr.msk.f32.mxu0 %vm39_vm0, %v28_v2  ;;  %v128_v5 = vld [vmem:[%s225_s2] ss:$0 sm:$0xff] }
  0x15   :  { %143 = vmatprep.subr.bf16.mxu0 %v142_v3 }
  0x16   :  { %145 = vmatpush3.bf16.msra.mxu0 %v142_v3 }
  0x19   :  { %140 = vmatmul.mubr.msk.f32.vlgmr.msra.gmra.mrb[0].mxu0 %vm39_vm0, %v29_v4 }
  0xec   :  { %v141_v6 = vpop.f32.mrb[0].mxu0 }
  0xed   :  { %v118_v7 = vadd.f32 %v141_v6, %v128_v5  ;;  %v112_v8 = vpop.f32.mrb[1].mxu0 }
  0xee   :  { %v113_v9 = vadd.f32 %v128_v5, %v112_v8 }
  0xef   :  { %122 = vst [vmem:[%s226_s3 + $0x8] sm:$0xff] %v118_v7 }
  0xf0   :  { %121 = vst [vmem:[%s226_s3] sm:$0xff] %v113_v9 }
  0xf1   :  { %127 = vsyncpa [#allocation3], 1 }

// kernel: dynn_wrapper_forward.6
= control target key start
LH: loop header
LB: loop body
LE: loop exit
PB: predicated region body
PF: predicated region fallthrough
CT: control target
= control target key end

     0   :  { %s2636_s0 = inlined_call_operand.vmem [shape: f32[2,8,128], index: 0, kind: input, shape index: {}]   ;;  %s2637_s1 = inlined_call_operand.vmem [shape: f32[128,384], index: 1, kind: input, shape index: {}]   ;;  %s2638_s2 = inlined_call_operand.hbm [shape: f32[1,384], index: 2, kind: input, shape index: {}]   ;;  %s2639_s3 = inlined_call_operand.hbm [shape: f32[128,128], index: 3, kind: input, shape index: {}]   ;;  %s2640_s4 = inlined_call_operand.hbm [shape: f32[1,128], index: 4, kind: input, shape index: {}]   ;;  %s2641_s5 = inlined_call_operand.hbm [shape: f32[128,256], index: 5, kind: input, shape index: {}]   ;;  %s2642_s6 = inlined_call_operand.hbm [shape: f32[1,256], index: 6, kind: input, shape index: {}]   ;;  %s2643_s7 = inlined_call_operand.hbm [shape: f32[256,128], index: 7, kind: input, shape index: {}]   ;;  %s2644_s8 = inlined_call_operand.hbm [shape: f32[1,128], index: 8, kind: input, shape index: {}]   ;;  %s2645_s9 = inlined_call_operand.vmem [shape: f32[128,64], index: 9, kind: input, shape index: {}]   ;;  %s2646_s10 = inlined_call_operand.vmem [shape: f32[1,64], index: 10, kind: input, shape index: {}]   ;;  %s2647_s11 = inlined_call_operand.vmem [shape: f32[64,32], index: 11, kind: input, shape index: {}]   ;;  %s2648_s12 = inlined_call_operand.vmem [shape: f32[1,32], index: 12, kind: input, shape index: {}]   ;;  %s2649_s13 = inlined_call_operand.hbm [shape: f32[32,128], index: 13, kind: input, shape index: {}]   ;;  %s2650_s14 = inlined_call_operand.hbm [shape: f32[1,128], index: 14, kind: input, shape index: {}]   ;;  %s2651_s15 = inlined_call_operand.vmem [shape: f32[2,8,128], index: 15, kind: output, shape index: {0}]   ;;  %s2652_s16 = inlined_call_operand.hbm [shape: f32[2,128], index: 16, kind: output, shape index: {1}]  }
   0x1   :  { %2658 = sst [smem:[#allocation24_spill]] %s2636_s0 }
   0x2   :  { %22 = vsyncpa [#allocation3], 0 }
   0x3   :  { %23 = vsyncpa [#allocation6], 0 }
   0x4   :  { %24 = vsyncpa [#allocation9], 0 }
   0x5   :  { %25 = vsyncpa [#allocation12], 0 }
   0x6   :  { %26 = vsyncpa [#allocation15], 0 }
   0x7   :  { %27 = vsyncpa [#allocation4], 0  ;;  %s2091_s21 = smov [#allocation5]   ;;  %s1859_s25 = scalar_lea.hbm %s2639_s3, 2048 }
   0x8   :  { %s47_s22 = sshll.u32 %s2091_s21, 4  ;;  %p1860_p0 = scmp.ne.s32.totalorder %s2639_s3, %s1859_s25  ;;  %s48_s22 = int_to_ptr.vmem [resolvable:$true] %s47_s22 }
   0x9   :  { %p1863_p1 = scmp.lt.u32.totalorder %s1859_s25, %s2639_s3 }
   0xb   :  { %p1865_p2 = pnand %p1863_p1, %p1860_p0 }
   0xd   :  { %1868 = shalt.err (!%p1865_p2)
}
   0xe   :  { %s1869_s30 = scalar_lea.vmem %s48_s22, 2048  ;;  %p1874_p4 = scmp.lt.s32.totalorder %s48_s22, %s48_s22 }
   0xf   :  { %p1870_p3 = scmp.ne.s32.totalorder %s48_s22, %s1869_s30  ;;  %p1875_p5 = scmp.lt.s32.totalorder %s1869_s30, %s1869_s30 }
  0x11   :  { %p1876_p6 = por %p1875_p5, %p1874_p4 }
  0x13   :  { %p1877_p7 = pnand %p1876_p6, %p1870_p3 }
  0x15   :  { %1880 = shalt.err (!%p1877_p7)
}
  0x16   :  { %s2654_s0 = smov 128   ;;  %s2656_s17 = smov 8  }
  0x17   :  { %53 = dma.hbm_to_vmem [thread:$0]  %s2639_s3, 2048, %s48_s22, [#allocation6], %s2654_s0, %s2654_s0, %s2656_s17  }
  0x18   :  { %s2094_s20 = smov [#allocation8]   ;;  %s1881_s25 = scalar_lea.hbm %s2641_s5, 4096 }
  0x19   :  { %s69_s21 = sshll.u32 %s2094_s20, 4  ;;  %p1882_p8 = scmp.ne.s32.totalorder %s2641_s5, %s1881_s25  ;;  %s70_s21 = int_to_ptr.vmem [resolvable:$true] %s69_s21 }
  0x1a   :  { %p1885_p9 = scmp.lt.u32.totalorder %s1881_s25, %s2641_s5 }
  0x1c   :  { %p1887_p10 = pnand %p1885_p9, %p1882_p8 }
  0x1e   :  { %1890 = shalt.err (!%p1887_p10)
}
  0x1f   :  { %s1891_s30 = scalar_lea.vmem %s70_s21, 4096  ;;  %p1896_p12 = scmp.lt.s32.totalorder %s70_s21, %s70_s21 }
  0x20   :  { %p1892_p11 = scmp.ne.s32.totalorder %s70_s21, %s1891_s30  ;;  %p1897_p13 = scmp.lt.s32.totalorder %s1891_s30, %s1891_s30 }
  0x22   :  { %p1898_p0 = por %p1897_p13, %p1896_p12 }
  0x24   :  { %p1899_p1 = pnand %p1898_p0, %p1892_p11 }
  0x26   :  { %1902 = shalt.err (!%p1899_p1)
}
  0x27   :  { %s2095_s3 = smov 256   ;;  %s2096_s22 = smov 16  }
  0x28   :  { %75 = dma.hbm_to_vmem [thread:$0]  %s2641_s5, 4096, %s70_s21, [#allocation9], %s2095_s3, %s2095_s3, %s2096_s22  }
  0x29   :  { %s2097_s20 = smov [#allocation11]   ;;  %s2098_s24 = smov [#allocation14]  }
  0x2a   :  { %s91_s23 = sshll.u32 %s2097_s20, 4  ;;  %s121_s26 = sshll.u32 %s2098_s24, 4  ;;  %s92_s23 = int_to_ptr.vmem [resolvable:$true] %s91_s23  ;;  %s2220_s26 = int_to_ptr.vmem [resolvable:$true] %s121_s26 }
  0x2b   :  { %s1903_s28 = scalar_lea.hbm %s2643_s7, 4096 }
  0x2c   :  { %p1904_p2 = scmp.ne.s32.totalorder %s2643_s7, %s1903_s28  ;;  %p1907_p3 = scmp.lt.u32.totalorder %s1903_s28, %s2643_s7 }
  0x2e   :  { %p1909_p4 = pnand %p1907_p3, %p1904_p2 }
  0x30   :  { %1912 = shalt.err (!%p1909_p4)
}
  0x31   :  { %s1913_s5 = scalar_lea.vmem %s92_s23, 4096  ;;  %p1918_p6 = scmp.lt.s32.totalorder %s92_s23, %s92_s23 }
  0x32   :  { %p1914_p5 = scmp.ne.s32.totalorder %s92_s23, %s1913_s5  ;;  %p1919_p7 = scmp.lt.s32.totalorder %s1913_s5, %s1913_s5 }
  0x34   :  { %p1920_p8 = por %p1919_p7, %p1918_p6 }
  0x36   :  { %p1921_p9 = pnand %p1920_p8, %p1914_p5 }
  0x38   :  { %1924 = shalt.err (!%p1921_p9)
}
  0x39   :  { %s2659_s21 = smov 8   ;;  %s2660_s3 = smov 128  }
  0x3a   :  { %97 = dma.hbm_to_vmem [thread:$0]  %s2643_s7, 4096, %s92_s23, [#allocation12], %s2660_s3, %s2660_s3, %s2659_s21  }
  0x3b   :  { %s1925_s0 = scalar_lea.hbm %s2649_s13, 512 }
  0x3c   :  { %p1926_p10 = scmp.ne.s32.totalorder %s2649_s13, %s1925_s0  ;;  %p1929_p11 = scmp.lt.u32.totalorder %s1925_s0, %s2649_s13 }
  0x3e   :  { %p1931_p12 = pnand %p1929_p11, %p1926_p10 }
  0x40   :  { %1934 = shalt.err (!%p1931_p12)
}
  0x41   :  { %s1935_s28 = scalar_lea.vmem %s2220_s26, 512  ;;  %p1940_p0 = scmp.lt.s32.totalorder %s2220_s26, %s2220_s26 }
  0x42   :  { %p1936_p13 = scmp.ne.s32.totalorder %s2220_s26, %s1935_s28  ;;  %p1941_p1 = scmp.lt.s32.totalorder %s1935_s28, %s1935_s28 }
  0x44   :  { %p1942_p2 = por %p1941_p1, %p1940_p0 }
  0x46   :  { %p1943_p3 = pnand %p1942_p2, %p1936_p13 }
  0x48   :  { %1946 = shalt.err (!%p1943_p3)
}
  0x49   :  { %127 = dma.hbm_to_vmem [thread:$0]  %s2649_s13, 512, %s2220_s26, [#allocation15], %s2660_s3, %s2660_s3, %s2659_s21  }
  0x4a   :  { %s2099_s29 = smov [#allocation2]   ;;  %s2100_s5 = smov [#allocation7]  }
  0x4b   :  { %s38_s30 = sshll.u32 %s2099_s29, 4  ;;  %s60_s22 = sshll.u32 %s2100_s5, 4  ;;  %s39_s30 = int_to_ptr.vmem [resolvable:$true] %s38_s30  ;;  %s61_s22 = int_to_ptr.vmem [resolvable:$true] %s60_s22 }
  0x4c   :  { %s1947_s20 = scalar_lea.hbm %s2638_s2, 48 }
  0x4d   :  { %p1948_p4 = scmp.ne.s32.totalorder %s2638_s2, %s1947_s20  ;;  %p1951_p5 = scmp.lt.u32.totalorder %s1947_s20, %s2638_s2 }
  0x4f   :  { %p1953_p6 = pnand %p1951_p5, %p1948_p4 }
  0x51   :  { %1956 = shalt.err (!%p1953_p6)
}
  0x52   :  { %s1957_s13 = scalar_lea.vmem %s39_s30, 48  ;;  %s1961_s26 = scalar_lea.vmem %s39_s30, 64 }
  0x53   :  { %p1958_p7 = scmp.ne.s32.totalorder %s39_s30, %s1957_s13  ;;  %p1962_p8 = scmp.lt.s32.totalorder %s39_s30, %s39_s30 }
  0x54   :  { %p1963_p9 = scmp.lt.s32.totalorder %s1961_s26, %s1957_s13 }
  0x56   :  { %p1964_p10 = por %p1963_p9, %p1962_p8 }
  0x58   :  { %p1965_p11 = pnand %p1964_p10, %p1958_p7 }
  0x5a   :  { %1968 = shalt.err (!%p1965_p11)
}
  0x5b   :  { %41 = dma.hbm_to_vmem [thread:$0]  %s2638_s2, 48, %s39_s30, [#allocation3]  }
  0x5c   :  { %s1969_s7 = scalar_lea.hbm %s2640_s4, 16 }
  0x5d   :  { %p1970_p12 = scmp.ne.s32.totalorder %s2640_s4, %s1969_s7  ;;  %p1973_p13 = scmp.lt.u32.totalorder %s1969_s7, %s2640_s4 }
  0x5f   :  { %p1975_p0 = pnand %p1973_p13, %p1970_p12 }
  0x61   :  { %1978 = shalt.err (!%p1975_p0)
}
  0x62   :  { %s1979_s19 = scalar_lea.vmem %s61_s22, 16  ;;  %s1983_s20 = scalar_lea.vmem %s61_s22, 32 }
  0x63   :  { %p1980_p1 = scmp.ne.s32.totalorder %s61_s22, %s1979_s19  ;;  %p1984_p2 = scmp.lt.s32.totalorder %s61_s22, %s61_s22 }
  0x64   :  { %p1985_p3 = scmp.lt.s32.totalorder %s1983_s20, %s1979_s19 }
  0x66   :  { %p1986_p4 = por %p1985_p3, %p1984_p2 }
  0x68   :  { %p1987_p5 = pnand %p1986_p4, %p1980_p1 }
  0x6a   :  { %1990 = shalt.err (!%p1987_p5)
}
  0x6b   :  { %63 = dma.hbm_to_vmem [thread:$0]  %s2640_s4, 16, %s61_s22, [#allocation6]  }
  0x6c   :  { %s2101_s0 = smov [#allocation10]   ;;  %s2102_s24 = smov [#allocation13]  }
  0x6d   :  { %s82_s17 = sshll.u32 %s2101_s0, 4  ;;  %s104_s25 = sshll.u32 %s2102_s24, 4  ;;  %s83_s17 = int_to_ptr.vmem [resolvable:$true] %s82_s17  ;;  %s105_s25 = int_to_ptr.vmem [resolvable:$true] %s104_s25 }
  0x6e   :  { %s1991_s21 = scalar_lea.hbm %s2642_s6, 32 }
  0x6f   :  { %p1992_p6 = scmp.ne.s32.totalorder %s2642_s6, %s1991_s21  ;;  %p1995_p7 = scmp.lt.u32.totalorder %s1991_s21, %s2642_s6 }
  0x71   :  { %p1997_p8 = pnand %p1995_p7, %p1992_p6 }
  0x73   :  { %2000 = shalt.err (!%p1997_p8)
}
  0x74   :  { %s2001_s4 = scalar_lea.vmem %s83_s17, 32  ;;  %p2006_p10 = scmp.lt.s32.totalorder %s83_s17, %s83_s17 }
  0x75   :  { %p2002_p9 = scmp.ne.s32.totalorder %s83_s17, %s2001_s4  ;;  %p2007_p11 = scmp.lt.s32.totalorder %s2001_s4, %s2001_s4 }
  0x77   :  { %p2008_p12 = por %p2007_p11, %p2006_p10 }
  0x79   :  { %p2009_p13 = pnand %p2008_p12, %p2002_p9 }
  0x7b   :  { %2012 = shalt.err (!%p2009_p13)
}
  0x7c   :  { %85 = dma.hbm_to_vmem [thread:$0]  %s2642_s6, 32, %s83_s17, [#allocation9]  }
  0x7d   :  { %s2013_s18 = scalar_lea.hbm %s2644_s8, 16 }
  0x7e   :  { %p2014_p0 = scmp.ne.s32.totalorder %s2644_s8, %s2013_s18  ;;  %p2017_p1 = scmp.lt.u32.totalorder %s2013_s18, %s2644_s8 }
  0x80   :  { %p2019_p2 = pnand %p2017_p1, %p2014_p0 }
  0x82   :  { %2022 = shalt.err (!%p2019_p2)
}
  0x83   :  { %s2023_s0 = scalar_lea.vmem %s105_s25, 16  ;;  %s2027_s24 = scalar_lea.vmem %s105_s25, 32 }
  0x84   :  { %p2024_p3 = scmp.ne.s32.totalorder %s105_s25, %s2023_s0  ;;  %p2028_p4 = scmp.lt.s32.totalorder %s105_s25, %s105_s25 }
  0x85   :  { %p2029_p5 = scmp.lt.s32.totalorder %s2027_s24, %s2023_s0 }
  0x87   :  { %p2030_p6 = por %p2029_p5, %p2028_p4 }
  0x89   :  { %p2031_p7 = pnand %p2030_p6, %p2024_p3 }
  0x8b   :  { %2034 = shalt.err (!%p2031_p7)
}
  0x8c   :  { %107 = dma.hbm_to_vmem [thread:$0]  %s2644_s8, 16, %s105_s25, [#allocation12]  }
  0x8d   :  { %s2103_s13 = smov [#allocation16]   ;;  %s2035_s27 = scalar_lea.hbm %s2650_s14, 16 }
  0x8e   :  { %s134_s26 = sshll.u32 %s2103_s13, 4  ;;  %p2036_p8 = scmp.ne.s32.totalorder %s2650_s14, %s2035_s27  ;;  %s135_s26 = int_to_ptr.vmem [resolvable:$true] %s134_s26 }
  0x8f   :  { %p2039_p9 = scmp.lt.u32.totalorder %s2035_s27, %s2650_s14 }
  0x91   :  { %p2041_p10 = pnand %p2039_p9, %p2036_p8 }
  0x93   :  { %2044 = shalt.err (!%p2041_p10)
}
  0x94   :  { %s2045_s23 = scalar_lea.vmem %s135_s26, 16  ;;  %s2049_s8 = scalar_lea.vmem %s135_s26, 32 }
  0x95   :  { %p2046_p11 = scmp.ne.s32.totalorder %s135_s26, %s2045_s23  ;;  %p2050_p12 = scmp.lt.s32.totalorder %s135_s26, %s135_s26 }
  0x96   :  { %p2051_p13 = scmp.lt.s32.totalorder %s2049_s8, %s2045_s23 }
  0x98   :  { %p2052_p0 = por %p2051_p13, %p2050_p12 }
  0x9a   :  { %p2053_p1 = pnand %p2052_p0, %p2046_p11 }
  0x9c   :  { %2056 = shalt.err (!%p2053_p1)
}
  0x9d   :  { %137 = dma.hbm_to_vmem [thread:$0]  %s2650_s14, 16, %s135_s26, [#allocation15]  }
  0x9e   :  { %2079 = dma.done.wait [#allocation3], 48  }
  0x9f   :  { %2080 = vsyncadd [#allocation3], 4294967248 }
  0xa0   :  { %2081 = dma.done.wait [#allocation6], 2064  }
  0xa1   :  { %2082 = vsyncadd [#allocation6], 4294965232 }
  0xa2   :  { %2083 = dma.done.wait [#allocation9], 4128  }
  0xa3   :  { %2084 = vsyncadd [#allocation9], 4294963168 }
  0xa4   :  { %2085 = dma.done.wait [#allocation12], 4112  }
  0xa5   :  { %2086 = vsyncadd [#allocation12], 4294963184 }
  0xa6   :  { %2087 = dma.done.wait [#allocation15], 528  }
  0xa7   :  { %2088 = vsyncadd [#allocation15], 4294966768  ;;  %v2104_v0 = vmov 0.0   ;;  %v168_v1 = vld [vmem:[%s2637_s1 + $0x8] sm:$0xff]  ;;  %v171_v2 = vld [vmem:[%s2637_s1 + $0x20] sm:$0xff]  ;;  %s2661_s3 = sld [smem:[#allocation24_spill]] }
  0xa8   :  { %296 = vmatprep.mubr.f32.mxu0 %v2104_v0  ;;  %v167_v3 = vld [vmem:[%s2637_s1] sm:$0xff]  ;;  %v1632_v4 = vpack.c.bf16 %v171_v2, %v168_v1  ;;  %v170_v5 = vld [vmem:[%s2637_s1 + $0x18] sm:$0xff]  ;;  %v177_v7 = vld [vmem:[%s2637_s1 + $0x50] sm:$0xff]  ;;  %vm2105_vm0 = vmmov 0   ;;  %vm526_vm1 = vcmask 64512   ;;  %vm1082_vm2 = vcmask 1041409  }
  0xa9   :  { %v174_v6 = vld [vmem:[%s2637_s1 + $0x38] sm:$0xff]  ;;  %v1634_v8 = vpack.c.bf16 %v170_v5, %v167_v3  ;;  %v173_v10 = vld [vmem:[%s2637_s1 + $0x30] sm:$0xff]  ;;  %v176_v11 = vld [vmem:[%s2637_s1 + $0x48] sm:$0xff]  ;;  %vm1171_vm3 = vcmask 523264   ;;  %vm1257_vm4 = vcmask 261120  }
  0xaa   :  { %v1636_v9 = vpack.c.bf16 %v177_v7, %v174_v6  ;;  %v180_v12 = vld [vmem:[%s2637_s1 + $0x68] sm:$0xff]  ;;  %1633 = vmatprep.subr.bf16.mxu0 %v1632_v4  ;;  %v183_v13 = vld [vmem:[%s2637_s1 + $0x80] sm:$0xff]  ;;  %v1638_v14 = vpack.c.bf16 %v176_v11, %v173_v10  ;;  %v182_v17 = vld [vmem:[%s2637_s1 + $0x78] sm:$0xff] }
  0xab   :  { %1635 = vmatpush1.bf16.msra.mxu0 %v1634_v8  ;;  %v1640_v15 = vpack.c.bf16 %v183_v13, %v180_v12  ;;  %v179_v16 = vld [vmem:[%s2637_s1 + $0x60] sm:$0xff]  ;;  %v186_v18 = vld [vmem:[%s2637_s1 + $0x98] sm:$0xff]  ;;  %v189_v19 = vld [vmem:[%s2637_s1 + $0xb0] sm:$0xff]  ;;  %v217_v12 = vlaneseq }
  0xac   :  { %1637 = vmatprep.subr.bf16.mxu0 %v1636_v9  ;;  %v1642_v20 = vpack.c.bf16 %v182_v17, %v179_v16  ;;  %v1644_v21 = vpack.c.bf16 %v189_v19, %v186_v18  ;;  %v185_v22 = vld [vmem:[%s2637_s1 + $0x90] sm:$0xff]  ;;  %v188_v23 = vld [vmem:[%s2637_s1 + $0xa8] sm:$0xff]  ;;  %v195_v25 = vld [vmem:[%s2637_s1 + $0xe0] sm:$0xff] }
  0xad   :  { %v192_v24 = vld [vmem:[%s2637_s1 + $0xc8] sm:$0xff]  ;;  %v2375_v26 = vld [vmem:[%s2661_s3] sm:$0xff]  ;;  %v169_v27 = vld [vmem:[%s2637_s1 + $0x10] sm:$0xff]  ;;  %v1646_v29 = vpack.c.bf16 %v188_v23, %v185_v22  ;;  %v2483_v13 = vshrl.u32 %v217_v12, 7 }
  0xae   :  { %v172_v28 = vld [vmem:[%s2637_s1 + $0x28] sm:$0xff]  ;;  %1509 = vmatprep.mubr.f32.mxu1 %v2375_v26  ;;  %v191_v30 = vld [vmem:[%s2637_s1 + $0xc0] sm:$0xff]  ;;  %v178_v33 = vld [vmem:[%s2637_s1 + $0x58] sm:$0xff]  ;;  %v1648_v34 = vpack.c.bf16 %v195_v25, %v192_v24 }
  0xaf   :  { %1639 = vmatpush1.bf16.msra.mxu0 %v1638_v14  ;;  %v1664_v31 = vpack.c.bf16 %v172_v28, %v169_v27  ;;  %v175_v32 = vld [vmem:[%s2637_s1 + $0x40] sm:$0xff]  ;;  %v194_v35 = vld [vmem:[%s2637_s1 + $0xd8] sm:$0xff]  ;;  %v181_v37 = vld [vmem:[%s2637_s1 + $0x70] sm:$0xff]  ;;  %v223_v14 = vsub.s32 1, %v2483_v13  ;;  %v219_v16 = vsub.s32 0, %v2483_v13  ;;  %v227_v23 = vsub.s32 2, %v2483_v13 }
  0xb0   :  { %1641 = vmatprep.subr.bf16.mxu0 %v1640_v15  ;;  %v1668_v36 = vpack.c.bf16 %v178_v33, %v175_v32  ;;  %v184_v38 = vld [vmem:[%s2637_s1 + $0x88] sm:$0xff]  ;;  %v198_v39 = vld [vmem:[%s2637_s1 + $0xf8] sm:$0xff]  ;;  %v201_v40 = vld [vmem:[%s2637_s1 + $0x110] sm:$0xff]  ;;  %v1650_v41 = vpack.c.bf16 %v194_v35, %v191_v30 }
  0xb1   :  { %1665 = vmatprep.subr.bf16.mxu1 %v1664_v31  ;;  %v197_v42 = vld [vmem:[%s2637_s1 + $0xf0] sm:$0xff]  ;;  %v1672_v43 = vpack.c.bf16 %v184_v38, %v181_v37  ;;  %v1652_v44 = vpack.c.bf16 %v201_v40, %v198_v39  ;;  %v200_v45 = vld [vmem:[%s2637_s1 + $0x108] sm:$0xff]  ;;  %v187_v46 = vld [vmem:[%s2637_s1 + $0xa0] sm:$0xff] }
  0xb2   :  { %1667 = vmatpush3.bf16.msra.mxu1 %v1664_v31  ;;  %v190_v47 = vld [vmem:[%s2637_s1 + $0xb8] sm:$0xff]  ;;  %v204_v48 = vld [vmem:[%s2637_s1 + $0x128] sm:$0xff]  ;;  %v207_v49 = vld [vmem:[%s2637_s1 + $0x140] sm:$0xff]  ;;  %v1654_v50 = vpack.c.bf16 %v200_v45, %v197_v42 }
  0xb3   :  { %1643 = vmatpush1.bf16.msra.mxu0 %v1642_v20  ;;  %1669 = vmatprep.subr.bf16.mxu1 %v1668_v36  ;;  %v203_v51 = vld [vmem:[%s2637_s1 + $0x120] sm:$0xff]  ;;  %v1676_v52 = vpack.c.bf16 %v190_v47, %v187_v46  ;;  %v1656_v53 = vpack.c.bf16 %v207_v49, %v204_v48  ;;  %v206_v54 = vld [vmem:[%s2637_s1 + $0x138] sm:$0xff]  ;;  %v193_v55 = vld [vmem:[%s2637_s1 + $0xd0] sm:$0xff] }
  0xb4   :  { %1645 = vmatprep.subr.bf16.mxu0 %v1644_v21  ;;  %v196_v56 = vld [vmem:[%s2637_s1 + $0xe8] sm:$0xff]  ;;  %v210_v57 = vld [vmem:[%s2637_s1 + $0x158] sm:$0xff]  ;;  %v213_v58 = vld [vmem:[%s2637_s1 + $0x170] sm:$0xff]  ;;  %v1658_v59 = vpack.c.bf16 %v206_v54, %v203_v51 }
  0xb5   :  { %v209_v60 = vld [vmem:[%s2637_s1 + $0x150] sm:$0xff]  ;;  %v1680_v61 = vpack.c.bf16 %v196_v56, %v193_v55  ;;  %v1660_v62 = vpack.c.bf16 %v213_v58, %v210_v57  ;;  %v212_v63 = vld [vmem:[%s2637_s1 + $0x168] sm:$0xff]  ;;  %v199_v1 = vld [vmem:[%s2637_s1 + $0x100] sm:$0xff] }
  0xb6   :  { %1671 = vmatpush3.bf16.msra.mxu1 %v1668_v36  ;;  %v202_v2 = vld [vmem:[%s2637_s1 + $0x118] sm:$0xff]  ;;  %v1662_v3 = vpack.c.bf16 %v212_v63, %v209_v60  ;;  %v205_v5 = vld [vmem:[%s2637_s1 + $0x130] sm:$0xff]  ;;  %v208_v6 = vld [vmem:[%s2637_s1 + $0x148] sm:$0xff] }
  0xb7   :  { %1647 = vmatpush1.bf16.msra.mxu0 %v1646_v29  ;;  %1673 = vmatprep.subr.bf16.mxu1 %v1672_v43  ;;  %v1684_v4 = vpack.c.bf16 %v202_v2, %v199_v1  ;;  %v1688_v7 = vpack.c.bf16 %v208_v6, %v205_v5  ;;  %v211_v8 = vld [vmem:[%s2637_s1 + $0x160] sm:$0xff]  ;;  %v214_v9 = vld [vmem:[%s2637_s1 + $0x178] sm:$0xff]  ;;  %v2474_v10 = vld [vmem:[%s2661_s3 + $0x8] sm:$0xff] }
  0xb8   :  { %1649 = vmatprep.subr.bf16.mxu0 %v1648_v34  ;;  %v1692_v11 = vpack.c.bf16 %v214_v9, %v211_v8  ;;  %v215_v15 = vld [vmem:[#allocation2] sm:$0x7]  ;;  %v697_v57 = vld [vmem:[#allocation5 + $0x10] sm:$0xff]  ;;  %v700_v63 = vld [vmem:[#allocation5 + $0x28] sm:$0xff] }
  0xb9   :  { %v224_v17 = vrot.slane %v215_v15, %v223_v14  ;;  %v220_v19 = vrot.slane %v215_v15, %v219_v16  ;;  %v228_v28 = vrot.slane %v215_v15, %v227_v23  ;;  %v698_v58 = vld [vmem:[#allocation5 + $0x18] sm:$0xff]  ;;  %v704_v8 = vld [vmem:[#allocation5 + $0x48] sm:$0xff] }
  0xba   :  { %1675 = vmatpush3.bf16.msra.mxu1 %v1672_v43  ;;  %v702_v5 = vld [vmem:[#allocation5 + $0x38] sm:$0xff]  ;;  %v798_v23 = vld [vmem:[#allocation8 + $0x8] sm:$0xff] }
  0xbb   :  { %1651 = vmatpush1.bf16.msra.mxu0 %v1650_v41  ;;  %1677 = vmatprep.subr.bf16.mxu1 %v1676_v52  ;;  %v706_v12 = vld [vmem:[#allocation5 + $0x58] sm:$0xff]  ;;  %v1059_v13 = vld [vmem:[%s2645_s9 + $0x10] sm:$0xff] }
  0xbc   :  { %1653 = vmatprep.subr.bf16.mxu0 %v1652_v44 }
  0xbe   :  { %1679 = vmatpush3.bf16.msra.mxu1 %v1676_v52  ;;  %v695_v52 = vld [vmem:[#allocation5] sm:$0xff] }
  0xbf   :  { %1655 = vmatpush1.bf16.msra.mxu0 %v1654_v50  ;;  %1681 = vmatprep.subr.bf16.mxu1 %v1680_v61 }
  0xc0   :  { %1657 = vmatprep.subr.bf16.mxu0 %v1656_v53  ;;  %v696_v53 = vld [vmem:[#allocation5 + $0x8] sm:$0xff] }
  0xc1   :  { %v1696_v54 = vpack.c.bf16 %v696_v53, %v695_v52  ;;  %v815_v52 = vld [vmem:[#allocation8 + $0x90] sm:$0xff]  ;;  %v818_v53 = vld [vmem:[#allocation8 + $0xa8] sm:$0xff] }
  0xc2   :  { %1683 = vmatpush3.bf16.msra.mxu1 %v1680_v61  ;;  %v1700_v61 = vpack.c.bf16 %v698_v58, %v697_v57  ;;  %v817_v57 = vld [vmem:[#allocation8 + $0xa0] sm:$0xff]  ;;  %v819_v58 = vld [vmem:[#allocation8 + $0xb0] sm:$0xff] }
  0xc3   :  { %1659 = vmatpush1.bf16.msra.mxu0 %v1658_v59  ;;  %1685 = vmatprep.subr.bf16.mxu1 %v1684_v4 }
  0xc4   :  { %1661 = vmatprep.subr.bf16.mxu0 %v1660_v62  ;;  %v699_v62 = vld [vmem:[#allocation5 + $0x20] sm:$0xff] }
  0xc6   :  { %1687 = vmatpush3.bf16.msra.mxu1 %v1684_v4  ;;  %v701_v4 = vld [vmem:[#allocation5 + $0x30] sm:$0xff] }
  0xc7   :  { %1663 = vmatpush1.bf16.msra.mxu0 %v1662_v3  ;;  %1689 = vmatprep.subr.bf16.mxu1 %v1688_v7  ;;  %v1704_v3 = vpack.c.bf16 %v700_v63, %v699_v62  ;;  %v1708_v6 = vpack.c.bf16 %v702_v5, %v701_v4  ;;  %v821_v63 = vld [vmem:[#allocation8 + $0xc0] sm:$0xff] }
  0xc8   :  { %1517 = vmatprep.subr.mxu0 %v2104_v0 }
  0xca   :  { %297 = vmatmul.mubr.f32.vlgmr.msra.gmra.mrb[0].mxu0 %v2375_v26  ;;  %1691 = vmatpush3.bf16.msra.mxu1 %v1688_v7  ;;  %v703_v7 = vld [vmem:[#allocation5 + $0x40] sm:$0xff] }
  0xcb   :  { %302 = vmatprep.mubr.f32.mxu0 %v2104_v0  ;;  %1693 = vmatprep.subr.bf16.mxu1 %v1692_v11  ;;  %v1712_v9 = vpack.c.bf16 %v704_v8, %v703_v7  ;;  %v826_v7 = vld [vmem:[#allocation8 + $0xe8] sm:$0xff]  ;;  %v828_v8 = vld [vmem:[#allocation8 + $0xf8] sm:$0xff] }
  0xce   :  { %303 = vmatmul.mubr.f32.gmra.mrb[2].mxu0 %v2474_v10  ;;  %1695 = vmatpush3.bf16.msra.mxu1 %v1692_v11  ;;  %v705_v11 = vld [vmem:[#allocation5 + $0x50] sm:$0xff] }
  0xcf   :  { %1512 = vmatprep.subr.mxu1 %v2104_v0  ;;  %1519 = vmatprep.mubr.msk.f32.mxu0 %vm2105_vm0, %v2104_v0  ;;  %v1716_v15 = vpack.c.bf16 %v706_v12, %v705_v11  ;;  %v825_v11 = vld [vmem:[#allocation8 + $0xe0] sm:$0xff]  ;;  %v827_v12 = vld [vmem:[#allocation8 + $0xf0] sm:$0xff] }
  0xd1   :  { %1510 = vmatmul.mubr.f32.vlgmr.msra.gmra.mrb[0].mxu1 %v2474_v10 }
  0xd2   :  { %1514 = vmatprep.mubr.msk.f32.mxu1 %vm2105_vm0, %v2104_v0 }
 0x19d   :  { %v298_v18 = vpop.f32.mrb[0].mxu0 }
 0x19e   :  { %v300_v20 = vpop.f32.mrb[1].mxu0  ;;  %v299_v24 = vadd.f32 %v298_v18, %v220_v19  ;;  %v708_v18 = vld [vmem:[#allocation5 + $0x68] sm:$0xff] }
 0x19f   :  { %v301_v21 = vadd.f32 %v300_v20, %v224_v17  ;;  %v709_v20 = vld [vmem:[#allocation5 + $0x70] sm:$0xff] }
 0x1a1   :  { %v304_v22 = vpop.f32.mrb[2].mxu0  ;;  %1513 = vmatpush3.xpose.msra.mxu1 %v301_v21  ;;  %v710_v21 = vld [vmem:[#allocation5 + $0x78] sm:$0xff] }
 0x1a2   :  { %v306_v25 = vpop.f32.mrb[3].mxu0  ;;  %1522 = vmatprep.subr.mxu1 %v2104_v0  ;;  %v305_v29 = vadd.f32 %v304_v22, %v220_v19  ;;  %v1724_v22 = vpack.c.bf16 %v710_v21, %v709_v20  ;;  %v923_v21 = vld [vmem:[#allocation11 + $0x8] sm:$0xff] }
 0x1a3   :  { %v307_v27 = vadd.f32 %v306_v25, %v224_v17  ;;  %v707_v17 = vld [vmem:[#allocation5 + $0x60] sm:$0xff] }
 0x1a4   :  { %1515 = vmatmul.mubr.f32.vlgmr.msra.gmra.mrb[2].mxu1 %v299_v24  ;;  %v1511_v30 = vpop.f32.mrb[0].mxu1  ;;  %v1720_v19 = vpack.c.bf16 %v708_v18, %v707_v17  ;;  %v800_v24 = vld [vmem:[#allocation8 + $0x18] sm:$0xff]  ;;  %v797_v25 = vld [vmem:[#allocation8] sm:$0xff]  ;;  %v939_v18 = vld [vmem:[#allocation11 + $0x88] sm:$0xff] }
 0x1a5   :  { %1518 = vmatpush3.xpose.msra.mxu0 %v307_v27  ;;  %1524 = vmatprep.mubr.msk.f32.mxu1 %vm2105_vm0, %v2104_v0  ;;  %v381_v31 = vadd.f32 %v1511_v30, %v228_v28  ;;  %v375_v32 = vpop.f32.mrb[1].mxu1  ;;  %v1728_v27 = vpack.c.bf16 %v800_v24, %v798_v23  ;;  %v804_v30 = vld [vmem:[#allocation8 + $0x38] sm:$0xff]  ;;  %v938_v17 = vld [vmem:[#allocation11 + $0x80] sm:$0xff] }
 0x1a6   :  { %1527 = vmatprep.subr.mxu0 %v2104_v0  ;;  %v376_v33 = vadd.f32 %v375_v32, %v228_v28  ;;  %v799_v28 = vld [vmem:[#allocation8 + $0x10] sm:$0xff]  ;;  %v1760_v20 = vpack.c.bf16 %v939_v18, %v938_v17  ;;  %v941_v23 = vld [vmem:[#allocation11 + $0x98] sm:$0xff] }
 0x1a8   :  { %1520 = vmatmul.mubr.f32.vlgmr.msra.gmra.mrb[4].mxu0 %v305_v29  ;;  %1523 = vmatpush3.msra.mxu1 %v376_v33  ;;  %v802_v29 = vld [vmem:[#allocation8 + $0x28] sm:$0xff]  ;;  %v801_v33 = vld [vmem:[#allocation8 + $0x20] sm:$0xff] }
 0x1a9   :  { %1529 = vmatprep.mubr.msk.f32.mxu0 %vm2105_vm0, %v2104_v0  ;;  %1528 = vmatpush3.msra.mxu0 %v381_v31  ;;  %v1730_v31 = vpack.c.bf16 %v799_v28, %v797_v25  ;;  %v1732_v32 = vpack.c.bf16 %v804_v30, %v802_v29  ;;  %v925_v28 = vld [vmem:[#allocation11 + $0x18] sm:$0xff]  ;;  %v942_v29 = vld [vmem:[#allocation11 + $0xa0] sm:$0xff]  ;;  %v943_v30 = vld [vmem:[#allocation11 + $0xa8] sm:$0xff] }
 0x1aa   :  { %1697 = vmatprep.subr.bf16.mxu1 %v1696_v54  ;;  %1729 = vmatprep.subr.bf16.mxu0 %v1728_v27  ;;  %v924_v27 = vld [vmem:[#allocation11 + $0x10] sm:$0xff] }
 0x277   :  { %v450_v34 = vpop.f32.mrb[2].mxu1 }
 0x278   :  { %v524_v35 = vmul.f32 0.088388346, %v450_v34  ;;  %v1516_v36 = vpop.f32.mrb[3].mxu1  ;;  %v803_v34 = vld [vmem:[#allocation8 + $0x30] sm:$0xff] }
 0x279   :  { %v808_v36 = vld [vmem:[#allocation8 + $0x58] sm:$0xff] }
 0x27a   :  { %v527_v37 = vsel %vm526_vm1, %v524_v35, -inf }
 0x27b   :  { %v520_v38 = vpop.f32.mrb[4].mxu0  ;;  %528 = vmax.xlane.f32.xlu0 %v527_v37  ;;  %v1734_v37 = vpack.c.bf16 %v803_v34, %v801_v33  ;;  %v926_v33 = vld [vmem:[#allocation11 + $0x20] sm:$0xff]  ;;  %v927_v34 = vld [vmem:[#allocation11 + $0x28] sm:$0xff] }
 0x27c   :  { %v525_v39 = vmul.f32 0.088388346, %v520_v38  ;;  %v1521_v40 = vpop.f32.mrb[5].mxu0 }
 0x27d   :  { %v807_v40 = vld [vmem:[#allocation8 + $0x50] sm:$0xff] }
 0x27e   :  { %v530_v41 = vsel %vm526_vm1, %v525_v39, -inf }
 0x27f   :  { %531 = vmax.xlane.f32.xlu0 %v530_v41  ;;  %v810_v41 = vld [vmem:[#allocation8 + $0x68] sm:$0xff] }
 0x308   :  { %v529_v42 = vpop.xlane.xlu0 %528 }
 0x309   :  { %v533_v43 = vsub.f32 %v524_v35, %v529_v42  ;;  %v806_v35 = vld [vmem:[#allocation8 + $0x48] sm:$0xff]  ;;  %v812_v42 = vld [vmem:[#allocation8 + $0x78] sm:$0xff] }
 0x30a   :  { %v1736_v38 = vpack.c.bf16 %v808_v36, %v806_v35  ;;  %v944_v35 = vld [vmem:[#allocation11 + $0xb0] sm:$0xff]  ;;  %v945_v36 = vld [vmem:[#allocation11 + $0xb8] sm:$0xff] }
 0x30b   :  { %v535_v44 = vmul.f32 1.442695, %v533_v43 }
 0x30c   :  { %v532_v45 = vpop.xlane.xlu0 %531 }
 0x30d   :  { %1851 = vpow2.f32 %v535_v44  ;;  %v534_v46 = vsub.f32 %v525_v39, %v532_v45  ;;  %v805_v39 = vld [vmem:[#allocation8 + $0x40] sm:$0xff]  ;;  %v1740_v44 = vpack.c.bf16 %v812_v42, %v810_v41  ;;  %v947_v42 = vld [vmem:[#allocation11 + $0xc8] sm:$0xff] }
 0x30e   :  { %v1738_v43 = vpack.c.bf16 %v807_v40, %v805_v39  ;;  %v809_v45 = vld [vmem:[#allocation8 + $0x60] sm:$0xff]  ;;  %v928_v39 = vld [vmem:[#allocation11 + $0x30] sm:$0xff] }
 0x30f   :  { %v537_v47 = vmul.f32 1.442695, %v534_v46  ;;  %v811_v46 = vld [vmem:[#allocation8 + $0x70] sm:$0xff]  ;;  %v929_v40 = vld [vmem:[#allocation11 + $0x38] sm:$0xff]  ;;  %v946_v41 = vld [vmem:[#allocation11 + $0xc0] sm:$0xff] }
 0x311   :  { %1853 = vpow2.f32 %v537_v47  ;;  %v814_v47 = vld [vmem:[#allocation8 + $0x88] sm:$0xff] }
 0x317   :  { %v1852_v48 = vpop.eup %1851 }
 0x318   :  { %v539_v49 = vsel %vm526_vm1, %v1852_v48, 0.0 }
 0x319   :  { %540 = vadd.xlane.f32.xlu1 %v539_v49  ;;  %v1742_v49 = vpack.c.bf16 %v811_v46, %v809_v45  ;;  %v930_v45 = vld [vmem:[#allocation11 + $0x40] sm:$0xff]  ;;  %v931_v46 = vld [vmem:[#allocation11 + $0x48] sm:$0xff] }
 0x31b   :  { %v1854_v50 = vpop.eup %1853 }
 0x31c   :  { %v542_v51 = vsel %vm526_vm1, %v1854_v50, 0.0 }
 0x31d   :  { %543 = vadd.xlane.f32.xlu1 %v542_v51  ;;  %v813_v51 = vld [vmem:[#allocation8 + $0x80] sm:$0xff] }
 0x3a6   :  { %v541_v55 = vpop.xlane.xlu1 %540 }
 0x3a7   :  { %1855 = vrcp.f32 %v541_v55  ;;  %v1746_v55 = vpack.c.bf16 %v815_v52, %v813_v51  ;;  %v932_v51 = vld [vmem:[#allocation11 + $0x50] sm:$0xff]  ;;  %v933_v52 = vld [vmem:[#allocation11 + $0x58] sm:$0xff] }
 0x3aa   :  { %v544_v56 = vpop.xlane.xlu1 %543 }
 0x3ab   :  { %1857 = vrcp.f32 %v544_v56 }
 0x3b1   :  { %v1856_v59 = vpop.eup %1855 }
 0x3b2   :  { %v547_v60 = vmul.f32 %v1856_v59, %v1852_v48  ;;  %v816_v48 = vld [vmem:[#allocation8 + $0x98] sm:$0xff]  ;;  %v822_v59 = vld [vmem:[#allocation8 + $0xc8] sm:$0xff] }
 0x3b4   :  { %1525 = vmatmul.mubr.msk.f32.vlgmr.msra.gmra.mrb[4].mxu1 %vm526_vm1, %v547_v60  ;;  %v824_v60 = vld [vmem:[#allocation8 + $0xd8] sm:$0xff] }
 0x3b5   :  { %v1858_v1 = vpop.eup %1857  ;;  %1699 = vmatpush3.bf16.msra.mxu1 %v1696_v54  ;;  %v820_v54 = vld [vmem:[#allocation8 + $0xb8] sm:$0xff]  ;;  %v1752_v62 = vpack.c.bf16 %v824_v60, %v822_v59 }
 0x3b6   :  { %v548_v2 = vmul.f32 %v1858_v1, %v1854_v50  ;;  %1701 = vmatprep.subr.bf16.mxu1 %v1700_v61  ;;  %v1744_v50 = vpack.c.bf16 %v816_v48, %v814_v47  ;;  %v1748_v56 = vpack.c.bf16 %v820_v54, %v818_v53  ;;  %v823_v1 = vld [vmem:[#allocation8 + $0xd0] sm:$0xff]  ;;  %v949_v48 = vld [vmem:[#allocation11 + $0xd8] sm:$0xff]  ;;  %v950_v53 = vld [vmem:[#allocation11 + $0xe0] sm:$0xff] }
 0x3b7   :  { %v948_v47 = vld [vmem:[#allocation11 + $0xd0] sm:$0xff]  ;;  %v951_v54 = vld [vmem:[#allocation11 + $0xe8] sm:$0xff] }
 0x3b8   :  { %1530 = vmatmul.mubr.msk.f32.vlgmr.msra.gmra.mrb[6].mxu0 %vm526_vm1, %v548_v2  ;;  %v1754_v2 = vpack.c.bf16 %v823_v1, %v821_v63  ;;  %v934_v1 = vld [vmem:[#allocation11 + $0x60] sm:$0xff] }
 0x3b9   :  { %1703 = vmatpush3.bf16.msra.mxu1 %v1700_v61  ;;  %905 = vmatprep.mubr.f32.mxu0 %v2104_v0  ;;  %v1750_v61 = vpack.c.bf16 %v819_v58, %v817_v57  ;;  %v1357_v58 = vld [vmem:[#allocation7] ss:$0 sm:$0xff] }
 0x3ba   :  { %1705 = vmatprep.subr.bf16.mxu1 %v1704_v3  ;;  %1731 = vmatpush1.bf16.msra.mxu0 %v1730_v31  ;;  %v1766_v31 = vpack.c.bf16 %v925_v28, %v924_v27 }
 0x3bb   :  { %1733 = vmatprep.subr.bf16.mxu0 %v1732_v32  ;;  %v1768_v32 = vpack.c.bf16 %v943_v30, %v942_v29 }
 0x3bd   :  { %1707 = vmatpush3.bf16.msra.mxu1 %v1704_v3 }
 0x3be   :  { %1709 = vmatprep.subr.bf16.mxu1 %v1708_v6  ;;  %1735 = vmatpush1.bf16.msra.mxu0 %v1734_v37  ;;  %v1770_v37 = vpack.c.bf16 %v927_v34, %v926_v33  ;;  %v1062_v33 = vld [vmem:[%s2645_s9 + $0x28] sm:$0xff] }
 0x3bf   :  { %1737 = vmatprep.subr.bf16.mxu0 %v1736_v38  ;;  %v1772_v38 = vpack.c.bf16 %v945_v36, %v944_v35  ;;  %v1063_v35 = vld [vmem:[%s2645_s9 + $0x30] sm:$0xff]  ;;  %v1064_v36 = vld [vmem:[%s2645_s9 + $0x38] sm:$0xff] }
 0x3c1   :  { %1711 = vmatpush3.bf16.msra.mxu1 %v1708_v6 }
 0x3c2   :  { %1713 = vmatprep.subr.bf16.mxu1 %v1712_v9  ;;  %1739 = vmatpush1.bf16.msra.mxu0 %v1738_v43  ;;  %v1774_v43 = vpack.c.bf16 %v929_v40, %v928_v39  ;;  %v1066_v39 = vld [vmem:[%s2645_s9 + $0x48] sm:$0xff] }
 0x3c3   :  { %1741 = vmatprep.subr.bf16.mxu0 %v1740_v44  ;;  %v1776_v44 = vpack.c.bf16 %v947_v42, %v946_v41  ;;  %v1067_v41 = vld [vmem:[%s2645_s9 + $0x50] sm:$0xff]  ;;  %v1068_v42 = vld [vmem:[%s2645_s9 + $0x58] sm:$0xff] }
 0x3c5   :  { %1715 = vmatpush3.bf16.msra.mxu1 %v1712_v9  ;;  %v1756_v9 = vpack.c.bf16 %v828_v8, %v826_v7  ;;  %v1057_v8 = vld [vmem:[%s2645_s9] sm:$0xff] }
 0x3c6   :  { %1717 = vmatprep.subr.bf16.mxu1 %v1716_v15  ;;  %1743 = vmatpush1.bf16.msra.mxu0 %v1742_v49  ;;  %v1778_v49 = vpack.c.bf16 %v931_v46, %v930_v45  ;;  %v1070_v45 = vld [vmem:[%s2645_s9 + $0x68] sm:$0xff] }
 0x3c7   :  { %1745 = vmatprep.subr.bf16.mxu0 %v1744_v50  ;;  %v1780_v50 = vpack.c.bf16 %v949_v48, %v948_v47  ;;  %v1071_v47 = vld [vmem:[%s2645_s9 + $0x70] sm:$0xff]  ;;  %v1072_v48 = vld [vmem:[%s2645_s9 + $0x78] sm:$0xff] }
 0x3c9   :  { %1719 = vmatpush3.bf16.msra.mxu1 %v1716_v15  ;;  %v1758_v15 = vpack.c.bf16 %v827_v12, %v825_v11  ;;  %v2106_v11 = vmov 0.0|0.0  }
 0x3ca   :  { %1721 = vmatprep.subr.bf16.mxu1 %v1720_v19  ;;  %1747 = vmatpush1.bf16.msra.mxu0 %v1746_v55  ;;  %v1782_v55 = vpack.c.bf16 %v933_v52, %v932_v51  ;;  %v1157_v51 = vld [vmem:[%s2647_s11 + $0x8] sm:$0xff]  ;;  %v1158_v52 = vld [vmem:[%s2647_s11 + $0x10] sm:$0xff] }
 0x3cb   :  { %1749 = vmatprep.subr.bf16.mxu0 %v1748_v56  ;;  %v1784_v56 = vpack.c.bf16 %v951_v54, %v950_v53  ;;  %v1159_v54 = vld [vmem:[%s2647_s11 + $0x18] sm:$0xff] }
 0x3cd   :  { %1723 = vmatpush3.bf16.msra.mxu1 %v1720_v19  ;;  %v922_v19 = vld [vmem:[#allocation11] sm:$0xff] }
 0x3ce   :  { %1725 = vmatprep.subr.bf16.mxu1 %v1724_v22  ;;  %1751 = vmatpush1.bf16.msra.mxu0 %v1750_v61  ;;  %v1762_v24 = vpack.c.bf16 %v923_v21, %v922_v19 }
 0x3cf   :  { %1753 = vmatprep.subr.bf16.mxu0 %v1752_v62 }
 0x3d1   :  { %1727 = vmatpush3.bf16.msra.mxu1 %v1724_v22  ;;  %v940_v22 = vld [vmem:[#allocation11 + $0x90] sm:$0xff] }
 0x3d2   :  { %1755 = vmatpush1.bf16.msra.mxu0 %v1754_v2  ;;  %v1764_v25 = vpack.c.bf16 %v941_v23, %v940_v22  ;;  %1761 = vmatprep.subr.bf16.mxu1 %v1760_v20  ;;  %v935_v2 = vld [vmem:[#allocation11 + $0x68] sm:$0xff] }
 0x3d3   :  { %1757 = vmatprep.subr.bf16.mxu0 %v1756_v9  ;;  %v1058_v9 = vld [vmem:[%s2645_s9 + $0x8] sm:$0xff] }
 0x3d4   :  { %v1793_v12 = vpack.c.bf16 %v1058_v9, %v1057_v8 }
 0x3d6   :  { %1759 = vmatpush1.bf16.msra.mxu0 %v1758_v15  ;;  %v829_v15 = vld [vmem:[#allocation10] sm:$0x3] }
 0x3d7   :  { %1792 = vmatprep.subr.bf16.mxu0 %v2106_v11  ;;  %v834_v17 = vrot.slane %v829_v15, %v219_v16  ;;  %v838_v18 = vrot.slane %v829_v15, %v223_v14  ;;  %v1060_v14 = vld [vmem:[%s2645_s9 + $0x18] sm:$0xff] }
 0x3d8   :  { %v1796_v16 = vpack.c.bf16 %v1060_v14, %v1059_v13 }
 0x487   :  { %v618_v3 = vpop.f32.mrb[4].mxu1 }
 0x488   :  { %v1526_v4 = vpop.f32.mrb[5].mxu1  ;;  %1564 = vmatprep.mubr.f32.mxu1 %v618_v3  ;;  %v1786_v3 = vpack.c.bf16 %v935_v2, %v934_v1  ;;  %v1358_v1 = vld [vmem:[#allocation13] ss:$0 sm:$0xff] }
 0x489   :  { %v953_v4 = vld [vmem:[#allocation11 + $0xf8] sm:$0xff] }
 0x48b   :  { %v691_v5 = vpop.f32.mrb[6].mxu0 }
 0x48c   :  { %v1531_v6 = vpop.f32.mrb[7].mxu0  ;;  %1565 = vmatmul.mubr.f32.vlgmr.msra.gmra.mrb[6].mxu1 %v691_v5  ;;  %v936_v5 = vld [vmem:[#allocation11 + $0x70] sm:$0xff] }
 0x48d   :  { %1763 = vmatpush3.bf16.msra.mxu1 %v1762_v24  ;;  %v937_v6 = vld [vmem:[#allocation11 + $0x78] sm:$0xff] }
 0x48e   :  { %1765 = vmatprep.subr.bf16.mxu1 %v1764_v25  ;;  %v1790_v7 = vpack.c.bf16 %v937_v6, %v936_v5 }
 0x491   :  { %1767 = vmatpush3.bf16.msra.mxu1 %v1766_v31 }
 0x492   :  { %1769 = vmatprep.subr.bf16.mxu1 %v1768_v32  ;;  %v1061_v32 = vld [vmem:[%s2645_s9 + $0x20] sm:$0xff] }
 0x493   :  { %v1799_v34 = vpack.c.bf16 %v1062_v33, %v1061_v32  ;;  %v1248_v33 = vld [vmem:[#allocation14 + $0x10] sm:$0xff] }
 0x495   :  { %1771 = vmatpush3.bf16.msra.mxu1 %v1770_v37  ;;  %v1802_v37 = vpack.c.bf16 %v1064_v36, %v1063_v35  ;;  %v1360_v36 = vld [vmem:[%s2648_s12] ss:$0 sm:$0xff] }
 0x496   :  { %1773 = vmatprep.subr.bf16.mxu1 %v1772_v38  ;;  %v1065_v38 = vld [vmem:[%s2645_s9 + $0x40] sm:$0xff] }
 0x497   :  { %v1805_v40 = vpack.c.bf16 %v1066_v39, %v1065_v38 }
 0x499   :  { %1775 = vmatpush3.bf16.msra.mxu1 %v1774_v43  ;;  %v1808_v43 = vpack.c.bf16 %v1068_v42, %v1067_v41 }
 0x49a   :  { %1777 = vmatprep.subr.bf16.mxu1 %v1776_v44  ;;  %v1069_v44 = vld [vmem:[%s2645_s9 + $0x60] sm:$0xff] }
 0x49b   :  { %v1811_v46 = vpack.c.bf16 %v1070_v45, %v1069_v44 }
 0x49d   :  { %1779 = vmatpush3.bf16.msra.mxu1 %v1778_v49  ;;  %v1814_v49 = vpack.c.bf16 %v1072_v48, %v1071_v47 }
 0x49e   :  { %1781 = vmatprep.subr.bf16.mxu1 %v1780_v50  ;;  %v1156_v50 = vld [vmem:[%s2647_s11] sm:$0xff] }
 0x49f   :  { %v1817_v53 = vpack.c.bf16 %v1157_v51, %v1156_v50 }
 0x4a1   :  { %1783 = vmatpush3.bf16.msra.mxu1 %v1782_v55  ;;  %v1820_v55 = vpack.c.bf16 %v1159_v54, %v1158_v52 }
 0x4a2   :  { %1785 = vmatprep.subr.bf16.mxu1 %v1784_v56  ;;  %v1160_v56 = vld [vmem:[%s2647_s11 + $0x20] sm:$0xff] }
 0x4a5   :  { %1787 = vmatpush3.bf16.msra.mxu1 %v1786_v3 }
 0x55f   :  { %v1566_v57 = vpop.f32.mrb[6].mxu1 }
 0x560   :  { %v777_v59 = vpop.f32.mrb[7].mxu1  ;;  %v787_v61 = vadd.f32 %v1566_v57, %v2474_v10  ;;  %v1161_v57 = vld [vmem:[%s2647_s11 + $0x28] sm:$0xff] }
 0x561   :  { %v786_v60 = vadd.f32 %v777_v59, %v2375_v26  ;;  %v952_v26 = vld [vmem:[#allocation11 + $0xf0] sm:$0xff] }
 0x562   :  { %v2511_v63 = vadd.f32 %v1357_v58, %v787_v61  ;;  %v1788_v10 = vpack.c.bf16 %v953_v4, %v952_v26 }
 0x563   :  { %v2507_v62 = vadd.f32 %v1357_v58, %v786_v60  ;;  %v1823_v58 = vpack.c.bf16 %v1161_v57, %v1160_v56 }
 0x564   :  { %1789 = vmatprep.subr.bf16.mxu1 %v1788_v10 }
 0x565   :  { %906 = vmatmul.mubr.f32.vlgmr.msra.gmra.mrb[8].mxu0 %v2507_v62  ;;  %1791 = vmatpush3.bf16.msra.mxu1 %v1790_v7 }
 0x566   :  { %911 = vmatprep.mubr.f32.mxu0 %v2104_v0  ;;  %1816 = vmatprep.subr.bf16.mxu1 %v2106_v11 }
 0x567   :  { %1794 = vmatpush3.bf16.msra.mxu0 %v1793_v12 }
 0x568   :  { %1795 = vmatprep.subr.bf16.mxu0 %v2106_v11 }
 0x569   :  { %912 = vmatmul.mubr.f32.gmra.mrb[10].mxu0 %v2511_v63 }
 0x56a   :  { %1599 = vmatprep.mubr.msk.f32.mxu0 %vm2105_vm0, %v2104_v0 }
 0x56b   :  { %1797 = vmatpush3.bf16.msra.mxu0 %v1796_v16 }
 0x56c   :  { %1798 = vmatprep.subr.bf16.mxu0 %v2106_v11 }
 0x56f   :  { %1800 = vmatpush3.bf16.msra.mxu0 %v1799_v34  ;;  %v1249_v34 = vld [vmem:[#allocation14 + $0x18] sm:$0xff] }
 0x570   :  { %1801 = vmatprep.subr.bf16.mxu0 %v2106_v11  ;;  %v1832_v35 = vpack.c.bf16 %v1249_v34, %v1248_v33 }
 0x573   :  { %1803 = vmatpush3.bf16.msra.mxu0 %v1802_v37 }
 0x574   :  { %1804 = vmatprep.subr.bf16.mxu0 %v2106_v11 }
 0x577   :  { %1806 = vmatpush3.bf16.msra.mxu0 %v1805_v40  ;;  %v1362_v40 = vld [vmem:[#allocation16] ss:$0 sm:$0xff] }
 0x578   :  { %1807 = vmatprep.subr.bf16.mxu0 %v2106_v11 }
 0x57b   :  { %1809 = vmatpush3.bf16.msra.mxu0 %v1808_v43 }
 0x57c   :  { %1810 = vmatprep.subr.bf16.mxu0 %v2106_v11 }
 0x57f   :  { %1812 = vmatpush3.bf16.msra.mxu0 %v1811_v46 }
 0x580   :  { %1813 = vmatprep.subr.bf16.mxu0 %v2106_v11 }
 0x583   :  { %1815 = vmatpush3.bf16.msra.mxu0 %v1814_v49 }
 0x584   :  { %1828 = vmatprep.subr.bf16.mxu0 %v2106_v11 }
 0x638   :  { %v907_v19 = vpop.f32.mrb[8].mxu0 }
 0x639   :  { %v908_v20 = vadd.f32 %v907_v19, %v834_v17  ;;  %v909_v21 = vpop.f32.mrb[9].mxu0 }
 0x63a   :  { %v910_v22 = vadd.f32 %v909_v21, %v838_v18 }
 0x63b   :  { %v918_v25 = vmax.f32 %v908_v20, 0.0 }
 0x63c   :  { %v919_v23 = vmax.f32 %v910_v22, 0.0  ;;  %v913_v24 = vpop.f32.mrb[10].mxu0 }
 0x63d   :  { %v914_v27 = vadd.f32 %v913_v24, %v834_v17  ;;  %v915_v28 = vpop.f32.mrb[11].mxu0 }
 0x63e   :  { %v916_v29 = vadd.f32 %v915_v28, %v838_v18  ;;  %1018 = vmatprep.mubr.f32.mxu1 %v919_v23 }
 0x63f   :  { %1019 = vmatmul.mubr.f32.vlgmr.msra.gmra.mrb[8].mxu1 %v918_v25  ;;  %v920_v31 = vmax.f32 %v914_v27, 0.0  ;;  %v1162_v25 = vld [vmem:[%s2647_s11 + $0x30] sm:$0xff]  ;;  %v1163_v27 = vld [vmem:[%s2647_s11 + $0x38] sm:$0xff] }
 0x640   :  { %v921_v30 = vmax.f32 %v916_v29, 0.0  ;;  %1818 = vmatpush3.bf16.msra.mxu1 %v1817_v53  ;;  %v1826_v28 = vpack.c.bf16 %v1163_v27, %v1162_v25  ;;  %v1246_v29 = vld [vmem:[#allocation14] sm:$0xff] }
 0x641   :  { %1819 = vmatprep.subr.bf16.mxu1 %v2106_v11 }
 0x642   :  { %1023 = vmatprep.mubr.f32.mxu1 %v921_v30  ;;  %v1247_v30 = vld [vmem:[#allocation14 + $0x8] sm:$0xff] }
 0x643   :  { %1024 = vmatmul.mubr.f32.gmra.mrb[10].mxu1 %v920_v31  ;;  %v1829_v31 = vpack.c.bf16 %v1247_v30, %v1246_v29 }
 0x644   :  { %1618 = vmatprep.mubr.msk.f32.mxu1 %vm2105_vm0, %v2104_v0  ;;  %1821 = vmatpush3.bf16.msra.mxu1 %v1820_v55 }
 0x645   :  { %1822 = vmatprep.subr.bf16.mxu1 %v2106_v11 }
 0x648   :  { %1824 = vmatpush3.bf16.msra.mxu1 %v1823_v58 }
 0x649   :  { %1825 = vmatprep.subr.bf16.mxu1 %v2106_v11 }
 0x64c   :  { %1827 = vmatpush3.bf16.msra.mxu1 %v1826_v28 }
 0x712   :  { %v1440_v59 = vpop.f32.mrb[8].mxu1 }
 0x713   :  { %v1441_v60 = vpop.f32.mrb[9].mxu1 }
 0x714   :  { %v1442_v61 = vadd.f32 %v1441_v60, %v1440_v59 }
 0x716   :  { %v1029_v2 = vadd.f32 %v1442_v61, %v2507_v62  ;;  %v1443_v3 = vpop.f32.mrb[10].mxu1 }
 0x717   :  { %v1444_v26 = vpop.f32.mrb[11].mxu1 }
 0x718   :  { %v1038_v4 = vadd.f32 %v1358_v1, %v1029_v2  ;;  %v1445_v10 = vadd.f32 %v1444_v26, %v1443_v3 }
 0x71a   :  { %1040 = vst [vmem:[%s2651_s15] sm:$0xff] %v1038_v4  ;;  %v1042_v5 = vrot.slane %v1038_v4, 4  ;;  %v1030_v6 = vadd.f32 %v1445_v10, %v2511_v63 }
 0x71c   :  { %v1043_v7 = vadd.f32 %v1042_v5, %v1038_v4  ;;  %v1039_v8 = vadd.f32 %v1358_v1, %v1030_v6 }
 0x71e   :  { %v1044_v9 = vrot.slane %v1043_v7, 2  ;;  %1041 = vst [vmem:[%s2651_s15 + $0x8] sm:$0xff] %v1039_v8  ;;  %v1048_v12 = vrot.slane %v1039_v8, 4 }
 0x720   :  { %v1045_v62 = vadd.f32 %v1044_v9, %v1043_v7  ;;  %v1049_v15 = vadd.f32 %v1048_v12, %v1039_v8 }
 0x722   :  { %v1050_v17 = vrot.slane %v1049_v15, 2  ;;  %v1046_v18 = vrot.slane %v1045_v62, 1 }
 0x724   :  { %v1051_v19 = vadd.f32 %v1050_v17, %v1049_v15  ;;  %v1047_v20 = vadd.f32 %v1046_v18, %v1045_v62 }
 0x726   :  { %v1052_v21 = vrot.slane %v1051_v19, 1  ;;  %v1055_v23 = vmul.f32 0.125, %v1047_v20 }
 0x728   :  { %v1053_v22 = vadd.f32 %v1052_v21, %v1051_v19 }
 0x72a   :  { %v1056_v24 = vmul.f32 0.125, %v1053_v22 }
 0x72c   :  { %v1083_v63 = vsel %vm1082_vm2, %v1056_v24, %v1055_v23 }
 0x72d   :  { %1600 = vmatmul.mubr.f32.vlgmr.msra.gmra.mrb[12].mxu0 %v1083_v63 }
 0x72e   :  { %1629 = vmatprep.mubr.msk.f32.mxu0 %vm2105_vm0, %v2104_v0  ;;  %1830 = vmatpush3.bf16.msra.mxu0 %v1829_v31  ;;  %v1359_v0 = vld [vmem:[%s2646_s10] ss:$0 sm:$0xff]  ;;  %s2107_s10 = smov [#allocation17]  }
 0x72f   :  { %1831 = vmatprep.subr.bf16.mxu0 %v2106_v11  ;;  %s1340_s24 = sshll.u32 %s2107_s10, 4  ;;  %s1341_s24 = int_to_ptr.vmem [resolvable:$true] %s1340_s24 }
 0x730   :  { %s2057_s6 = scalar_lea.vmem %s1341_s24, 32  ;;  %p2062_p3 = scmp.lt.s32.totalorder %s1341_s24, %s1341_s24 }
 0x731   :  { %p2058_p2 = scmp.ne.s32.totalorder %s1341_s24, %s2057_s6  ;;  %p2063_p4 = scmp.lt.s32.totalorder %s2057_s6, %s2057_s6 }
 0x732   :  { %1833 = vmatpush3.bf16.msra.mxu0 %v1832_v35 }
 0x733   :  { %p2064_p5 = por %p2063_p4, %p2062_p3 }
 0x735   :  { %p2065_p6 = pnand %p2064_p5, %p2058_p2 }
 0x800   :  { %v1151_v13 = vpop.f32.mrb[12].mxu0 }
 0x801   :  { %v1152_v14 = vadd.f32 %v1359_v0, %v1151_v13  ;;  %v1601_v16 = vpop.f32.mrb[13].mxu0 }
 0x803   :  { %v1155_v32 = vmax.f32 %v1152_v14, 0.0 }
 0x805   :  { %1619 = vmatmul.mubr.msk.f32.vlgmr.msra.gmra.mrb[12].mxu1 %vm1171_vm3, %v1155_v32 }
 0x8d8   :  { %v1241_v37 = vpop.f32.mrb[12].mxu1 }
 0x8d9   :  { %v1242_v11 = vadd.f32 %v1360_v36, %v1241_v37  ;;  %v1620_v38 = vpop.f32.mrb[13].mxu1 }
 0x8db   :  { %v1245_v39 = vmax.f32 %v1242_v11, 0.0 }
 0x8dd   :  { %1630 = vmatmul.mubr.msk.f32.vlgmr.msra.gmra.mrb[14].mxu0 %vm1257_vm4, %v1245_v39 }
 0x9b0   :  { %v1327_v41 = vpop.f32.mrb[14].mxu0 }
 0x9b1   :  { %v1328_v42 = vadd.f32 %v1362_v40, %v1327_v41  ;;  %v1631_v43 = vpop.f32.mrb[15].mxu0 }
 0x9b3   :  { %1331 = vst [vmem:[#allocation17] sm:$0x3] %v1328_v42 }
 0x9b4   :  { %2068 = shalt.err (!%p2065_p6)
}
 0x9b5   :  { %s2069_s13 = scalar_lea.hbm %s2652_s16, 32 }
 0x9b6   :  { %p2070_p7 = scmp.ne.s32.totalorder %s2652_s16, %s2069_s13  ;;  %p2073_p8 = scmp.lt.u32.totalorder %s2069_s13, %s2652_s16 }
 0x9b8   :  { %p2075_p9 = pnand %p2073_p8, %p2070_p7 }
 0x9ba   :  { %2078 = shalt.err (!%p2075_p9)
}
 0x9bb   :  { %1343 = dma.vmem_to_hbm [thread:$0]  %s1341_s24, 32, %s2652_s16, [#allocation4]  }
 0x9bc   :  { %2089 = dma.done.wait [#allocation4], 32  }
 0x9bd   :  { %2090 = vsyncadd [#allocation4], 4294967264 }
 0x9be   :  { %1349 = vsyncpa [#allocation3], 1 }
 0x9bf   :  { %1350 = vsyncpa [#allocation6], 1 }
 0x9c0   :  { %1351 = vsyncpa [#allocation9], 1 }
 0x9c1   :  { %1352 = vsyncpa [#allocation12], 1 }
 0x9c2   :  { %1353 = vsyncpa [#allocation15], 1 }
 0x9c3   :  { %1354 = vsyncpa [#allocation4], 1 }

// kernel: dynn_wrapper_forward.8
= control target key start
LH: loop header
LB: loop body
LE: loop exit
PB: predicated region body
PF: predicated region fallthrough
CT: control target
= control target key end

     0   :  { %v1259_v3 = vmov 0.0   ;;  %vm1260_vm0 = vmmov 0   ;;  %v84_v51 = vlaneseq  ;;  %vm393_vm1 = vcmask 64512   ;;  %s1769_s1 = inlined_call_operand.vmem [shape: f32[128,384], index: 1, kind: input, shape index: {}]   ;;  %s1770_s0 = inlined_call_operand.vmem [shape: f32[2,8,128], index: 0, kind: input, shape index: {}]   ;;  %s1771_s2 = inlined_call_operand.vmem [shape: f32[1,384], index: 2, kind: input, shape index: {}]   ;;  %s1772_s3 = inlined_call_operand.vmem [shape: f32[128,128], index: 3, kind: input, shape index: {}]   ;;  %s1773_s5 = inlined_call_operand.vmem [shape: f32[128,256], index: 5, kind: input, shape index: {}]   ;;  %s1774_s7 = inlined_call_operand.vmem [shape: f32[256,128], index: 7, kind: input, shape index: {}]   ;;  %s1775_s4 = inlined_call_operand.vmem [shape: f32[1,128], index: 4, kind: input, shape index: {}]   ;;  %s1776_s6 = inlined_call_operand.vmem [shape: f32[1,256], index: 6, kind: input, shape index: {}]   ;;  %s1777_s8 = inlined_call_operand.vmem [shape: f32[1,128], index: 8, kind: input, shape index: {}]   ;;  %s1778_s9 = inlined_call_operand.vmem [shape: f32[2,8,128], index: 9, kind: output, shape index: {}]  }
   0x1   :  { %v35_v0 = vld [vmem:[%s1769_s1 + $0x8] sm:$0xff]  ;;  %v38_v1 = vld [vmem:[%s1769_s1 + $0x20] sm:$0xff]  ;;  %163 = vmatprep.mubr.f32.mxu0 %v1259_v3  ;;  %v37_v5 = vld [vmem:[%s1769_s1 + $0x18] sm:$0xff] }
   0x2   :  { %v34_v2 = vld [vmem:[%s1769_s1] sm:$0xff]  ;;  %v1089_v4 = vpack.c.bf16 %v38_v1, %v35_v0  ;;  %v41_v6 = vld [vmem:[%s1769_s1 + $0x38] sm:$0xff]  ;;  %v44_v7 = vld [vmem:[%s1769_s1 + $0x50] sm:$0xff]  ;;  %v1425_v52 = vshrl.u32 %v84_v51, 7 }
   0x3   :  { %v1091_v8 = vpack.c.bf16 %v37_v5, %v34_v2  ;;  %v1093_v9 = vpack.c.bf16 %v44_v7, %v41_v6  ;;  %v40_v10 = vld [vmem:[%s1769_s1 + $0x30] sm:$0xff]  ;;  %v43_v11 = vld [vmem:[%s1769_s1 + $0x48] sm:$0xff]  ;;  %v50_v13 = vld [vmem:[%s1769_s1 + $0x80] sm:$0xff] }
   0x4   :  { %v47_v12 = vld [vmem:[%s1769_s1 + $0x68] sm:$0xff]  ;;  %1090 = vmatprep.subr.bf16.mxu0 %v1089_v4  ;;  %v1095_v14 = vpack.c.bf16 %v43_v11, %v40_v10  ;;  %v46_v16 = vld [vmem:[%s1769_s1 + $0x60] sm:$0xff]  ;;  %v49_v17 = vld [vmem:[%s1769_s1 + $0x78] sm:$0xff]  ;;  %v90_v53 = vsub.s32 1, %v1425_v52  ;;  %v86_v55 = vsub.s32 0, %v1425_v52 }
   0x5   :  { %1092 = vmatpush1.bf16.msra.mxu0 %v1091_v8  ;;  %v1097_v15 = vpack.c.bf16 %v50_v13, %v47_v12  ;;  %v53_v18 = vld [vmem:[%s1769_s1 + $0x98] sm:$0xff]  ;;  %v56_v19 = vld [vmem:[%s1769_s1 + $0xb0] sm:$0xff]  ;;  %v1099_v20 = vpack.c.bf16 %v49_v17, %v46_v16  ;;  %v55_v23 = vld [vmem:[%s1769_s1 + $0xa8] sm:$0xff] }
   0x6   :  { %1094 = vmatprep.subr.bf16.mxu0 %v1093_v9  ;;  %v1101_v21 = vpack.c.bf16 %v56_v19, %v53_v18  ;;  %v52_v22 = vld [vmem:[%s1769_s1 + $0x90] sm:$0xff]  ;;  %v59_v24 = vld [vmem:[%s1769_s1 + $0xc8] sm:$0xff]  ;;  %v62_v25 = vld [vmem:[%s1769_s1 + $0xe0] sm:$0xff] }
   0x7   :  { %v1369_v26 = vld [vmem:[%s1770_s0] sm:$0xff]  ;;  %v1103_v27 = vpack.c.bf16 %v55_v23, %v52_v22  ;;  %v1105_v28 = vpack.c.bf16 %v62_v25, %v59_v24  ;;  %v61_v30 = vld [vmem:[%s1769_s1 + $0xd8] sm:$0xff]  ;;  %v68_v32 = vld [vmem:[%s1769_s1 + $0x110] sm:$0xff] }
   0x8   :  { %1031 = vmatprep.mubr.f32.mxu1 %v1369_v26  ;;  %v58_v29 = vld [vmem:[%s1769_s1 + $0xc0] sm:$0xff]  ;;  %v65_v31 = vld [vmem:[%s1769_s1 + $0xf8] sm:$0xff]  ;;  %v64_v35 = vld [vmem:[%s1769_s1 + $0xf0] sm:$0xff] }
   0x9   :  { %1096 = vmatpush1.bf16.msra.mxu0 %v1095_v14  ;;  %v1107_v33 = vpack.c.bf16 %v61_v30, %v58_v29  ;;  %v1109_v34 = vpack.c.bf16 %v68_v32, %v65_v31  ;;  %v67_v36 = vld [vmem:[%s1769_s1 + $0x108] sm:$0xff]  ;;  %v74_v38 = vld [vmem:[%s1769_s1 + $0x140] sm:$0xff]  ;;  %v73_v42 = vld [vmem:[%s1769_s1 + $0x138] sm:$0xff] }
   0xa   :  { %1098 = vmatprep.subr.bf16.mxu0 %v1097_v15  ;;  %v71_v37 = vld [vmem:[%s1769_s1 + $0x128] sm:$0xff]  ;;  %v1111_v39 = vpack.c.bf16 %v67_v36, %v64_v35  ;;  %v70_v41 = vld [vmem:[%s1769_s1 + $0x120] sm:$0xff]  ;;  %v77_v43 = vld [vmem:[%s1769_s1 + $0x158] sm:$0xff] }
   0xb   :  { %v1113_v40 = vpack.c.bf16 %v74_v38, %v71_v37  ;;  %v80_v44 = vld [vmem:[%s1769_s1 + $0x170] sm:$0xff]  ;;  %v1115_v45 = vpack.c.bf16 %v73_v42, %v70_v41  ;;  %v79_v48 = vld [vmem:[%s1769_s1 + $0x168] sm:$0xff]  ;;  %v1431_v54 = vld [vmem:[%s1771_s2] sm:$0x7] }
   0xc   :  { %v1117_v46 = vpack.c.bf16 %v80_v44, %v77_v43  ;;  %v76_v47 = vld [vmem:[%s1769_s1 + $0x150] sm:$0xff]  ;;  %v1420_v50 = vld [vmem:[%s1770_s0 + $0x8] sm:$0xff]  ;;  %v91_v56 = vrot.slane %v1431_v54, %v90_v53  ;;  %v87_v58 = vrot.slane %v1431_v54, %v86_v55  ;;  %v42_v5 = vld [vmem:[%s1769_s1 + $0x40] sm:$0xff] }
   0xd   :  { %1100 = vmatpush1.bf16.msra.mxu0 %v1099_v20  ;;  %v1119_v49 = vpack.c.bf16 %v79_v48, %v76_v47  ;;  %v36_v2 = vld [vmem:[%s1769_s1 + $0x10] sm:$0xff]  ;;  %v39_v4 = vld [vmem:[%s1769_s1 + $0x28] sm:$0xff]  ;;  %v45_v7 = vld [vmem:[%s1769_s1 + $0x58] sm:$0xff] }
   0xe   :  { %1102 = vmatprep.subr.bf16.mxu0 %v1101_v21  ;;  %v1121_v6 = vpack.c.bf16 %v39_v4, %v36_v2  ;;  %v1125_v8 = vpack.c.bf16 %v45_v7, %v42_v5  ;;  %v48_v9 = vld [vmem:[%s1769_s1 + $0x70] sm:$0xff]  ;;  %v51_v10 = vld [vmem:[%s1769_s1 + $0x88] sm:$0xff]  ;;  %v54_v12 = vld [vmem:[%s1769_s1 + $0xa0] sm:$0xff] }
   0xf   :  { %v1129_v11 = vpack.c.bf16 %v51_v10, %v48_v9  ;;  %v57_v13 = vld [vmem:[%s1769_s1 + $0xb8] sm:$0xff]  ;;  %v60_v15 = vld [vmem:[%s1769_s1 + $0xd0] sm:$0xff]  ;;  %v63_v16 = vld [vmem:[%s1769_s1 + $0xe8] sm:$0xff] }
  0x10   :  { %1122 = vmatprep.subr.bf16.mxu1 %v1121_v6  ;;  %v1133_v14 = vpack.c.bf16 %v57_v13, %v54_v12  ;;  %v1137_v17 = vpack.c.bf16 %v63_v16, %v60_v15  ;;  %v66_v18 = vld [vmem:[%s1769_s1 + $0x100] sm:$0xff]  ;;  %v69_v19 = vld [vmem:[%s1769_s1 + $0x118] sm:$0xff]  ;;  %v72_v21 = vld [vmem:[%s1769_s1 + $0x130] sm:$0xff] }
  0x11   :  { %1104 = vmatpush1.bf16.msra.mxu0 %v1103_v27  ;;  %1124 = vmatpush3.bf16.msra.mxu1 %v1121_v6  ;;  %v1141_v20 = vpack.c.bf16 %v69_v19, %v66_v18  ;;  %v75_v22 = vld [vmem:[%s1769_s1 + $0x148] sm:$0xff]  ;;  %v78_v24 = vld [vmem:[%s1769_s1 + $0x160] sm:$0xff]  ;;  %v81_v25 = vld [vmem:[%s1769_s1 + $0x178] sm:$0xff] }
  0x12   :  { %1106 = vmatprep.subr.bf16.mxu0 %v1105_v28  ;;  %1126 = vmatprep.subr.bf16.mxu1 %v1125_v8  ;;  %v1145_v23 = vpack.c.bf16 %v75_v22, %v72_v21  ;;  %v1149_v27 = vpack.c.bf16 %v81_v25, %v78_v24  ;;  %v569_v2 = vld [vmem:[%s1772_s3 + $0x38] sm:$0xff]  ;;  %v570_v5 = vld [vmem:[%s1772_s3 + $0x40] sm:$0xff]  ;;  %v571_v6 = vld [vmem:[%s1772_s3 + $0x48] sm:$0xff] }
  0x13   :  { %v1169_v7 = vpack.c.bf16 %v571_v6, %v570_v5  ;;  %v573_v9 = vld [vmem:[%s1772_s3 + $0x58] sm:$0xff]  ;;  %v575_v12 = vld [vmem:[%s1772_s3 + $0x68] sm:$0xff]  ;;  %v664_v25 = vld [vmem:[%s1773_s5] sm:$0xff] }
  0x14   :  { %v577_v21 = vld [vmem:[%s1772_s3 + $0x78] sm:$0xff]  ;;  %v690_v5 = vld [vmem:[%s1773_s5 + $0xd0] sm:$0xff] }
  0x15   :  { %1108 = vmatpush1.bf16.msra.mxu0 %v1107_v33  ;;  %1128 = vmatpush3.bf16.msra.mxu1 %v1125_v8  ;;  %v572_v8 = vld [vmem:[%s1772_s3 + $0x50] sm:$0xff]  ;;  %v667_v24 = vld [vmem:[%s1773_s5 + $0x18] sm:$0xff] }
  0x16   :  { %1110 = vmatprep.subr.bf16.mxu0 %v1109_v34  ;;  %1130 = vmatprep.subr.bf16.mxu1 %v1129_v11  ;;  %v1173_v10 = vpack.c.bf16 %v573_v9, %v572_v8 }
  0x19   :  { %1112 = vmatpush1.bf16.msra.mxu0 %v1111_v39  ;;  %1132 = vmatpush3.bf16.msra.mxu1 %v1129_v11  ;;  %v574_v11 = vld [vmem:[%s1772_s3 + $0x60] sm:$0xff] }
  0x1a   :  { %1114 = vmatprep.subr.bf16.mxu0 %v1113_v40  ;;  %1134 = vmatprep.subr.bf16.mxu1 %v1133_v14  ;;  %v1177_v13 = vpack.c.bf16 %v575_v12, %v574_v11  ;;  %v693_v11 = vld [vmem:[%s1773_s5 + $0xe8] sm:$0xff]  ;;  %v695_v12 = vld [vmem:[%s1773_s5 + $0xf8] sm:$0xff] }
  0x1d   :  { %1116 = vmatpush1.bf16.msra.mxu0 %v1115_v45  ;;  %1136 = vmatpush3.bf16.msra.mxu1 %v1133_v14 }
  0x1e   :  { %1118 = vmatprep.subr.bf16.mxu0 %v1117_v46  ;;  %1138 = vmatprep.subr.bf16.mxu1 %v1137_v17  ;;  %v94_v46 = vsub.s32 2, %v1425_v52 }
  0x20   :  { %v95_v47 = vrot.slane %v1431_v54, %v94_v46  ;;  %v678_v46 = vld [vmem:[%s1773_s5 + $0x70] sm:$0xff] }
  0x21   :  { %1120 = vmatpush1.bf16.msra.mxu0 %v1119_v49  ;;  %1140 = vmatpush3.bf16.msra.mxu1 %v1137_v17 }
  0x22   :  { %1034 = vmatprep.subr.mxu0 %v1259_v3  ;;  %1142 = vmatprep.subr.bf16.mxu1 %v1141_v20 }
  0x24   :  { %164 = vmatmul.mubr.f32.vlgmr.msra.gmra.mrb[0].mxu0 %v1369_v26 }
  0x25   :  { %169 = vmatprep.mubr.f32.mxu0 %v1259_v3  ;;  %1144 = vmatpush3.bf16.msra.mxu1 %v1141_v20  ;;  %v576_v20 = vld [vmem:[%s1772_s3 + $0x70] sm:$0xff] }
  0x26   :  { %1146 = vmatprep.subr.bf16.mxu1 %v1145_v23  ;;  %v1181_v22 = vpack.c.bf16 %v577_v21, %v576_v20  ;;  %v790_v21 = vld [vmem:[%s1774_s7 + $0x8] sm:$0xff] }
  0x28   :  { %170 = vmatmul.mubr.f32.gmra.mrb[2].mxu0 %v1420_v50 }
  0x29   :  { %1036 = vmatprep.mubr.msk.f32.mxu0 %vm1260_vm0, %v1259_v3  ;;  %1148 = vmatpush3.bf16.msra.mxu1 %v1145_v23  ;;  %v665_v23 = vld [vmem:[%s1773_s5 + $0x8] sm:$0xff] }
  0x2a   :  { %1150 = vmatprep.subr.bf16.mxu1 %v1149_v27 }
  0x2d   :  { %1152 = vmatpush3.bf16.msra.mxu1 %v1149_v27  ;;  %v1185_v27 = vpack.c.bf16 %v667_v24, %v665_v23  ;;  %v808_v23 = vld [vmem:[%s1774_s7 + $0x98] sm:$0xff] }
  0x30   :  { %1032 = vmatmul.mubr.f32.vlgmr.msra.gmra.mrb[0].mxu1 %v1420_v50 }
  0xf7   :  { %v165_v57 = vpop.f32.mrb[0].mxu0 }
  0xf8   :  { %v167_v59 = vpop.f32.mrb[1].mxu0  ;;  %v166_v62 = vadd.f32 %v165_v57, %v87_v58  ;;  %v562_v57 = vld [vmem:[%s1772_s3] sm:$0xff] }
  0xf9   :  { %v168_v60 = vadd.f32 %v167_v59, %v91_v56  ;;  %v564_v59 = vld [vmem:[%s1772_s3 + $0x10] sm:$0xff] }
  0xfb   :  { %v171_v61 = vpop.f32.mrb[2].mxu0  ;;  %1035 = vmatpush3.xpose.msra.mxu0 %v168_v60  ;;  %v565_v60 = vld [vmem:[%s1772_s3 + $0x18] sm:$0xff] }
  0xfc   :  { %v173_v63 = vpop.f32.mrb[3].mxu0  ;;  %1039 = vmatprep.subr.mxu0 %v1259_v3  ;;  %v172_v1 = vadd.f32 %v171_v61, %v87_v58  ;;  %v563_v58 = vld [vmem:[%s1772_s3 + $0x8] sm:$0xff]  ;;  %v1157_v61 = vpack.c.bf16 %v565_v60, %v564_v59  ;;  %v687_v59 = vld [vmem:[%s1773_s5 + $0xb8] sm:$0xff] }
  0xfd   :  { %v174_v0 = vadd.f32 %v173_v63, %v91_v56  ;;  %v1153_v54 = vpack.c.bf16 %v563_v58, %v562_v57  ;;  %v567_v63 = vld [vmem:[%s1772_s3 + $0x28] sm:$0xff]  ;;  %v682_v57 = vld [vmem:[%s1773_s5 + $0x90] sm:$0xff] }
  0xfe   :  { %1037 = vmatmul.mubr.f32.vlgmr.msra.gmra.mrb[4].mxu0 %v166_v62  ;;  %v566_v62 = vld [vmem:[%s1772_s3 + $0x20] sm:$0xff]  ;;  %v685_v58 = vld [vmem:[%s1773_s5 + $0xa8] sm:$0xff] }
  0xff   :  { %1040 = vmatpush3.xpose.msra.mxu0 %v174_v0  ;;  %1041 = vmatprep.mubr.msk.f32.mxu0 %vm1260_vm0, %v1259_v3  ;;  %v1161_v0 = vpack.c.bf16 %v567_v63, %v566_v62  ;;  %v1205_v60 = vpack.c.bf16 %v687_v59, %v685_v58  ;;  %v686_v62 = vld [vmem:[%s1773_s5 + $0xb0] sm:$0xff]  ;;  %v689_v63 = vld [vmem:[%s1773_s5 + $0xc8] sm:$0xff]  ;;  %v817_v58 = vld [vmem:[%s1774_s7 + $0xe0] sm:$0xff] }
 0x100   :  { %1044 = vmatprep.subr.mxu0 %v1259_v3  ;;  %1154 = vmatprep.subr.bf16.mxu1 %v1153_v54  ;;  %v818_v59 = vld [vmem:[%s1774_s7 + $0xe8] sm:$0xff] }
 0x101   :  { %1156 = vmatpush3.bf16.msra.mxu1 %v1153_v54 }
 0x102   :  { %1042 = vmatmul.mubr.f32.vlgmr.msra.gmra.mrb[6].mxu0 %v172_v1  ;;  %1158 = vmatprep.subr.bf16.mxu1 %v1157_v61  ;;  %v568_v1 = vld [vmem:[%s1772_s3 + $0x30] sm:$0xff] }
 0x103   :  { %1046 = vmatprep.mubr.msk.f32.mxu0 %vm1260_vm0, %v1259_v3  ;;  %v1033_v48 = vpop.f32.mrb[0].mxu1  ;;  %v1165_v4 = vpack.c.bf16 %v569_v2, %v568_v1 }
 0x104   :  { %v242_v49 = vpop.f32.mrb[1].mxu1  ;;  %v248_v51 = vadd.f32 %v1033_v48, %v95_v47  ;;  %v683_v48 = vld [vmem:[%s1773_s5 + $0x98] sm:$0xff] }
 0x105   :  { %v243_v56 = vadd.f32 %v242_v49, %v95_v47  ;;  %1160 = vmatpush3.bf16.msra.mxu1 %v1157_v61  ;;  %v681_v47 = vld [vmem:[%s1773_s5 + $0x88] sm:$0xff]  ;;  %v684_v61 = vld [vmem:[%s1773_s5 + $0xa0] sm:$0xff] }
 0x106   :  { %1162 = vmatprep.subr.bf16.mxu1 %v1161_v0  ;;  %v1207_v1 = vpack.c.bf16 %v686_v62, %v684_v61  ;;  %v915_v62 = vld [vmem:[%s1775_s4] ss:$0 sm:$0xff] }
 0x107   :  { %1045 = vmatpush3.msra.mxu0 %v243_v56  ;;  %v680_v56 = vld [vmem:[%s1773_s5 + $0x80] sm:$0xff] }
 0x108   :  { %1049 = vmatprep.subr.mxu0 %v1259_v3  ;;  %v1203_v54 = vpack.c.bf16 %v682_v57, %v680_v56  ;;  %v799_v56 = vld [vmem:[%s1774_s7 + $0x50] sm:$0xff]  ;;  %v800_v57 = vld [vmem:[%s1774_s7 + $0x58] sm:$0xff] }
 0x109   :  { %1164 = vmatpush3.bf16.msra.mxu1 %v1161_v0  ;;  %v691_v0 = vld [vmem:[%s1773_s5 + $0xd8] sm:$0xff] }
 0x10a   :  { %1166 = vmatprep.subr.bf16.mxu1 %v1165_v4  ;;  %v1209_v2 = vpack.c.bf16 %v691_v0, %v689_v63 }
 0x10d   :  { %1168 = vmatpush3.bf16.msra.mxu1 %v1165_v4  ;;  %v688_v4 = vld [vmem:[%s1773_s5 + $0xc0] sm:$0xff] }
 0x10e   :  { %1170 = vmatprep.subr.bf16.mxu1 %v1169_v7  ;;  %v1211_v6 = vpack.c.bf16 %v690_v5, %v688_v4  ;;  %v801_v5 = vld [vmem:[%s1774_s7 + $0x60] sm:$0xff] }
 0x111   :  { %1172 = vmatpush3.bf16.msra.mxu1 %v1169_v7 }
 0x112   :  { %1174 = vmatprep.subr.bf16.mxu1 %v1173_v10 }
 0x115   :  { %1176 = vmatpush3.bf16.msra.mxu1 %v1173_v10 }
 0x116   :  { %1178 = vmatprep.subr.bf16.mxu1 %v1177_v13 }
 0x119   :  { %1180 = vmatpush3.bf16.msra.mxu1 %v1177_v13  ;;  %v1213_v13 = vpack.c.bf16 %v695_v12, %v693_v11  ;;  %v696_v11 = vld [vmem:[%s1776_s6] sm:$0x3] }
 0x11a   :  { %1182 = vmatprep.subr.bf16.mxu1 %v1181_v22  ;;  %v701_v12 = vrot.slane %v696_v11, %v86_v55 }
 0x11d   :  { %1184 = vmatpush3.bf16.msra.mxu1 %v1181_v22  ;;  %v807_v22 = vld [vmem:[%s1774_s7 + $0x90] sm:$0xff] }
 0x1d1   :  { %v317_v28 = vpop.f32.mrb[4].mxu0 }
 0x1d2   :  { %v391_v29 = vmul.f32 0.088388346, %v317_v28  ;;  %v1038_v30 = vpop.f32.mrb[5].mxu0  ;;  %v666_v28 = vld [vmem:[%s1773_s5 + $0x10] sm:$0xff] }
 0x1d3   :  { %v671_v30 = vld [vmem:[%s1773_s5 + $0x38] sm:$0xff] }
 0x1d4   :  { %v394_v31 = vsel %vm393_vm1, %v391_v29, -inf }
 0x1d5   :  { %395 = vmax.xlane.f32.xlu0 %v394_v31  ;;  %v387_v32 = vpop.f32.mrb[6].mxu0  ;;  %v1187_v31 = vpack.c.bf16 %v666_v28, %v664_v25  ;;  %v1221_v25 = vpack.c.bf16 %v808_v23, %v807_v22  ;;  %v792_v28 = vld [vmem:[%s1774_s7 + $0x18] sm:$0xff] }
 0x1d6   :  { %v392_v33 = vmul.f32 0.088388346, %v387_v32  ;;  %v1043_v34 = vpop.f32.mrb[7].mxu0 }
 0x1d7   :  { %v670_v34 = vld [vmem:[%s1773_s5 + $0x30] sm:$0xff] }
 0x1d8   :  { %v397_v35 = vsel %vm393_vm1, %v392_v33, -inf }
 0x1d9   :  { %398 = vmax.xlane.f32.xlu0 %v397_v35  ;;  %v673_v35 = vld [vmem:[%s1773_s5 + $0x48] sm:$0xff] }
 0x262   :  { %v396_v36 = vpop.xlane.xlu0 %395 }
 0x263   :  { %v400_v37 = vsub.f32 %v391_v29, %v396_v36  ;;  %v669_v29 = vld [vmem:[%s1773_s5 + $0x28] sm:$0xff]  ;;  %v675_v36 = vld [vmem:[%s1773_s5 + $0x58] sm:$0xff] }
 0x264   :  { %v1189_v32 = vpack.c.bf16 %v671_v30, %v669_v29  ;;  %v809_v29 = vld [vmem:[%s1774_s7 + $0xa0] sm:$0xff]  ;;  %v810_v30 = vld [vmem:[%s1774_s7 + $0xa8] sm:$0xff] }
 0x265   :  { %v402_v38 = vmul.f32 1.442695, %v400_v37 }
 0x266   :  { %v399_v39 = vpop.xlane.xlu0 %398 }
 0x267   :  { %1251 = vpow2.f32 %v402_v38  ;;  %v401_v40 = vsub.f32 %v392_v33, %v399_v39  ;;  %v668_v33 = vld [vmem:[%s1773_s5 + $0x20] sm:$0xff]  ;;  %v1193_v38 = vpack.c.bf16 %v675_v36, %v673_v35  ;;  %v811_v35 = vld [vmem:[%s1774_s7 + $0xb0] sm:$0xff]  ;;  %v812_v36 = vld [vmem:[%s1774_s7 + $0xb8] sm:$0xff] }
 0x268   :  { %v1191_v37 = vpack.c.bf16 %v670_v34, %v668_v33  ;;  %v672_v39 = vld [vmem:[%s1773_s5 + $0x40] sm:$0xff]  ;;  %v794_v34 = vld [vmem:[%s1774_s7 + $0x28] sm:$0xff] }
 0x269   :  { %v404_v41 = vmul.f32 1.442695, %v401_v40  ;;  %v674_v40 = vld [vmem:[%s1773_s5 + $0x50] sm:$0xff]  ;;  %v793_v33 = vld [vmem:[%s1774_s7 + $0x20] sm:$0xff] }
 0x26b   :  { %1253 = vpow2.f32 %v404_v41  ;;  %v677_v41 = vld [vmem:[%s1773_s5 + $0x68] sm:$0xff] }
 0x271   :  { %v1252_v42 = vpop.eup %1251 }
 0x272   :  { %v406_v43 = vsel %vm393_vm1, %v1252_v42, 0.0 }
 0x273   :  { %407 = vadd.xlane.f32.xlu1 %v406_v43  ;;  %v1195_v43 = vpack.c.bf16 %v674_v40, %v672_v39  ;;  %v795_v39 = vld [vmem:[%s1774_s7 + $0x30] sm:$0xff]  ;;  %v796_v40 = vld [vmem:[%s1774_s7 + $0x38] sm:$0xff] }
 0x275   :  { %v1254_v44 = vpop.eup %1253 }
 0x276   :  { %v409_v45 = vsel %vm393_vm1, %v1254_v44, 0.0 }
 0x277   :  { %410 = vadd.xlane.f32.xlu1 %v409_v45  ;;  %v676_v45 = vld [vmem:[%s1773_s5 + $0x60] sm:$0xff] }
 0x278   :  { %v1199_v49 = vpack.c.bf16 %v678_v46, %v676_v45  ;;  %v797_v45 = vld [vmem:[%s1774_s7 + $0x40] sm:$0xff]  ;;  %v798_v46 = vld [vmem:[%s1774_s7 + $0x48] sm:$0xff] }
 0x300   :  { %v408_v14 = vpop.xlane.xlu1 %407 }
 0x301   :  { %1255 = vrcp.f32 %v408_v14  ;;  %v692_v14 = vld [vmem:[%s1773_s5 + $0xe0] sm:$0xff] }
 0x304   :  { %v411_v15 = vpop.xlane.xlu1 %410 }
 0x305   :  { %1257 = vrcp.f32 %v411_v15  ;;  %v694_v15 = vld [vmem:[%s1773_s5 + $0xf0] sm:$0xff] }
 0x30b   :  { %v1256_v16 = vpop.eup %1255 }
 0x30c   :  { %v414_v17 = vmul.f32 %v1256_v16, %v1252_v42  ;;  %v679_v42 = vld [vmem:[%s1773_s5 + $0x78] sm:$0xff]  ;;  %v1215_v16 = vpack.c.bf16 %v694_v15, %v692_v14 }
 0x30e   :  { %1047 = vmatmul.mubr.msk.f32.vlgmr.msra.gmra.mrb[8].mxu0 %vm393_vm1, %v414_v17  ;;  %v805_v17 = vld [vmem:[%s1774_s7 + $0x80] sm:$0xff] }
 0x30f   :  { %v1258_v18 = vpop.eup %1257  ;;  %1050 = vmatpush3.msra.mxu0 %v248_v51  ;;  %1051 = vmatprep.mubr.msk.f32.mxu0 %vm1260_vm0, %v1259_v3  ;;  %v1201_v51 = vpack.c.bf16 %v683_v48, %v681_v47  ;;  %v815_v47 = vld [vmem:[%s1774_s7 + $0xd0] sm:$0xff]  ;;  %v816_v48 = vld [vmem:[%s1774_s7 + $0xd8] sm:$0xff] }
 0x310   :  { %v415_v19 = vmul.f32 %v1258_v18, %v1254_v44  ;;  %1186 = vmatprep.subr.bf16.mxu0 %v1185_v27  ;;  %v1197_v44 = vpack.c.bf16 %v679_v42, %v677_v41  ;;  %v806_v18 = vld [vmem:[%s1774_s7 + $0x88] sm:$0xff]  ;;  %v791_v27 = vld [vmem:[%s1774_s7 + $0x10] sm:$0xff]  ;;  %v813_v41 = vld [vmem:[%s1774_s7 + $0xc0] sm:$0xff] }
 0x311   :  { %v1217_v20 = vpack.c.bf16 %v806_v18, %v805_v17  ;;  %v814_v42 = vld [vmem:[%s1774_s7 + $0xc8] sm:$0xff] }
 0x312   :  { %1052 = vmatmul.mubr.msk.f32.vlgmr.msra.gmra.mrb[10].mxu0 %vm393_vm1, %v415_v19  ;;  %v789_v19 = vld [vmem:[%s1774_s7] sm:$0xff] }
 0x313   :  { %772 = vmatprep.mubr.f32.mxu0 %v1259_v3  ;;  %1188 = vmatpush1.bf16.msra.mxu0 %v1187_v31  ;;  %v1219_v24 = vpack.c.bf16 %v790_v21, %v789_v19  ;;  %v1223_v31 = vpack.c.bf16 %v792_v28, %v791_v27 }
 0x314   :  { %1190 = vmatprep.subr.bf16.mxu0 %v1189_v32  ;;  %1218 = vmatprep.subr.bf16.mxu1 %v1217_v20  ;;  %v1225_v32 = vpack.c.bf16 %v810_v30, %v809_v29 }
 0x317   :  { %1192 = vmatpush1.bf16.msra.mxu0 %v1191_v37  ;;  %v1227_v37 = vpack.c.bf16 %v794_v34, %v793_v33 }
 0x318   :  { %1194 = vmatprep.subr.bf16.mxu0 %v1193_v38  ;;  %v1229_v38 = vpack.c.bf16 %v812_v36, %v811_v35 }
 0x31b   :  { %1196 = vmatpush1.bf16.msra.mxu0 %v1195_v43  ;;  %v1231_v43 = vpack.c.bf16 %v796_v40, %v795_v39 }
 0x31c   :  { %1198 = vmatprep.subr.bf16.mxu0 %v1197_v44  ;;  %v1233_v44 = vpack.c.bf16 %v814_v42, %v813_v41 }
 0x31f   :  { %1200 = vmatpush1.bf16.msra.mxu0 %v1199_v49  ;;  %v1235_v49 = vpack.c.bf16 %v798_v46, %v797_v45 }
 0x320   :  { %1202 = vmatprep.subr.bf16.mxu0 %v1201_v51  ;;  %v1237_v51 = vpack.c.bf16 %v816_v48, %v815_v47 }
 0x323   :  { %1204 = vmatpush1.bf16.msra.mxu0 %v1203_v54  ;;  %v1239_v54 = vpack.c.bf16 %v800_v57, %v799_v56 }
 0x324   :  { %1206 = vmatprep.subr.bf16.mxu0 %v1205_v60  ;;  %v1241_v60 = vpack.c.bf16 %v818_v59, %v817_v58 }
 0x327   :  { %1208 = vmatpush1.bf16.msra.mxu0 %v1207_v1 }
 0x328   :  { %1210 = vmatprep.subr.bf16.mxu0 %v1209_v2 }
 0x32b   :  { %1212 = vmatpush1.bf16.msra.mxu0 %v1211_v6  ;;  %v802_v6 = vld [vmem:[%s1774_s7 + $0x68] sm:$0xff] }
 0x32c   :  { %1214 = vmatprep.subr.bf16.mxu0 %v1213_v13  ;;  %v705_v13 = vrot.slane %v696_v11, %v90_v53  ;;  %v916_v53 = vld [vmem:[%s1777_s8] ss:$0 sm:$0xff] }
 0x32f   :  { %1216 = vmatpush1.bf16.msra.mxu0 %v1215_v16 }
 0x3e1   :  { %v485_v7 = vpop.f32.mrb[8].mxu0 }
 0x3e2   :  { %v1048_v8 = vpop.f32.mrb[9].mxu0  ;;  %1086 = vmatprep.mubr.f32.mxu1 %v485_v7  ;;  %v1243_v7 = vpack.c.bf16 %v802_v6, %v801_v5 }
 0x3e3   :  { %v803_v8 = vld [vmem:[%s1774_s7 + $0x70] sm:$0xff] }
 0x3e5   :  { %v558_v9 = vpop.f32.mrb[10].mxu0 }
 0x3e6   :  { %v1053_v10 = vpop.f32.mrb[11].mxu0  ;;  %1087 = vmatmul.mubr.f32.vlgmr.msra.gmra.mrb[2].mxu1 %v558_v9  ;;  %v804_v9 = vld [vmem:[%s1774_s7 + $0x78] sm:$0xff] }
 0x3e7   :  { %1220 = vmatpush3.bf16.msra.mxu1 %v1219_v24  ;;  %v1247_v10 = vpack.c.bf16 %v804_v9, %v803_v8 }
 0x3e8   :  { %1222 = vmatprep.subr.bf16.mxu1 %v1221_v25 }
 0x3eb   :  { %1224 = vmatpush3.bf16.msra.mxu1 %v1223_v31 }
 0x3ec   :  { %1226 = vmatprep.subr.bf16.mxu1 %v1225_v32 }
 0x3ef   :  { %1228 = vmatpush3.bf16.msra.mxu1 %v1227_v37 }
 0x3f0   :  { %1230 = vmatprep.subr.bf16.mxu1 %v1229_v38 }
 0x3f3   :  { %1232 = vmatpush3.bf16.msra.mxu1 %v1231_v43 }
 0x3f4   :  { %1234 = vmatprep.subr.bf16.mxu1 %v1233_v44 }
 0x3f7   :  { %1236 = vmatpush3.bf16.msra.mxu1 %v1235_v49 }
 0x3f8   :  { %1238 = vmatprep.subr.bf16.mxu1 %v1237_v51 }
 0x3fb   :  { %1240 = vmatpush3.bf16.msra.mxu1 %v1239_v54 }
 0x3fc   :  { %1242 = vmatprep.subr.bf16.mxu1 %v1241_v60 }
 0x3ff   :  { %1244 = vmatpush3.bf16.msra.mxu1 %v1243_v7 }
 0x4b9   :  { %v1088_v61 = vpop.f32.mrb[2].mxu1 }
 0x4ba   :  { %v644_v63 = vpop.f32.mrb[3].mxu1  ;;  %v654_v1 = vadd.f32 %v1088_v61, %v1420_v50 }
 0x4bb   :  { %v653_v0 = vadd.f32 %v644_v63, %v1369_v26  ;;  %v819_v26 = vld [vmem:[%s1774_s7 + $0xf0] sm:$0xff] }
 0x4bc   :  { %v663_v4 = vadd.f32 %v915_v62, %v654_v1 }
 0x4bd   :  { %v662_v2 = vadd.f32 %v915_v62, %v653_v0 }
 0x4bf   :  { %773 = vmatmul.mubr.f32.vlgmr.msra.gmra.mrb[12].mxu0 %v662_v2 }
 0x4c0   :  { %778 = vmatprep.mubr.f32.mxu0 %v1259_v3  ;;  %v820_v3 = vld [vmem:[%s1774_s7 + $0xf8] sm:$0xff] }
 0x4c1   :  { %v1245_v50 = vpack.c.bf16 %v820_v3, %v819_v26 }
 0x4c3   :  { %779 = vmatmul.mubr.f32.gmra.mrb[14].mxu0 %v663_v4  ;;  %1246 = vmatprep.subr.bf16.mxu1 %v1245_v50 }
 0x4c4   :  { %1248 = vmatpush3.bf16.msra.mxu1 %v1247_v10 }
 0x592   :  { %v774_v14 = vpop.f32.mrb[12].mxu0 }
 0x593   :  { %v775_v15 = vadd.f32 %v774_v14, %v701_v12  ;;  %v776_v16 = vpop.f32.mrb[13].mxu0 }
 0x594   :  { %v777_v17 = vadd.f32 %v776_v16, %v705_v13 }
 0x595   :  { %v785_v20 = vmax.f32 %v775_v15, 0.0 }
 0x596   :  { %v786_v18 = vmax.f32 %v777_v17, 0.0  ;;  %v780_v19 = vpop.f32.mrb[14].mxu0 }
 0x597   :  { %v781_v21 = vadd.f32 %v780_v19, %v701_v12  ;;  %v782_v22 = vpop.f32.mrb[15].mxu0 }
 0x598   :  { %v783_v23 = vadd.f32 %v782_v22, %v705_v13  ;;  %885 = vmatprep.mubr.f32.mxu1 %v786_v18 }
 0x599   :  { %886 = vmatmul.mubr.f32.vlgmr.msra.gmra.mrb[4].mxu1 %v785_v20  ;;  %v787_v25 = vmax.f32 %v781_v21, 0.0 }
 0x59a   :  { %v788_v24 = vmax.f32 %v783_v23, 0.0 }
 0x59c   :  { %890 = vmatprep.mubr.f32.mxu1 %v788_v24 }
 0x59d   :  { %891 = vmatmul.mubr.f32.gmra.mrb[6].mxu1 %v787_v25 }
 0x66c   :  { %v993_v55 = vpop.f32.mrb[4].mxu1 }
 0x66d   :  { %v994_v27 = vpop.f32.mrb[5].mxu1 }
 0x66e   :  { %v995_v52 = vadd.f32 %v994_v27, %v993_v55 }
 0x670   :  { %v896_v28 = vadd.f32 %v995_v52, %v662_v2  ;;  %v996_v29 = vpop.f32.mrb[6].mxu1 }
 0x671   :  { %v997_v30 = vpop.f32.mrb[7].mxu1 }
 0x672   :  { %v905_v31 = vadd.f32 %v916_v53, %v896_v28  ;;  %v998_v32 = vadd.f32 %v997_v30, %v996_v29 }
 0x674   :  { %907 = vst [vmem:[%s1778_s9] sm:$0xff] %v905_v31  ;;  %v897_v33 = vadd.f32 %v998_v32, %v663_v4 }
 0x676   :  { %v906_v34 = vadd.f32 %v916_v53, %v897_v33 }
 0x678   :  { %908 = vst [vmem:[%s1778_s9 + $0x8] sm:$0xff] %v906_v34 }

// kernel: dynn_wrapper_forward.7
= control target key start
LH: loop header
LB: loop body
LE: loop exit
PB: predicated region body
PF: predicated region fallthrough
CT: control target
= control target key end

     0   :  { %s2428_s0 = inlined_call_operand.vmem [shape: f32[2,8,128], index: 0, kind: input, shape index: {}]   ;;  %s2429_s1 = inlined_call_operand.vmem [shape: f32[128,384], index: 1, kind: input, shape index: {}]   ;;  %s2430_s2 = inlined_call_operand.vmem [shape: f32[1,384], index: 2, kind: input, shape index: {}]   ;;  %s2431_s3 = inlined_call_operand.vmem [shape: f32[128,128], index: 3, kind: input, shape index: {}]   ;;  %s2432_s4 = inlined_call_operand.vmem [shape: f32[1,128], index: 4, kind: input, shape index: {}]   ;;  %s2433_s5 = inlined_call_operand.vmem [shape: f32[128,256], index: 5, kind: input, shape index: {}]   ;;  %s2434_s6 = inlined_call_operand.vmem [shape: f32[1,256], index: 6, kind: input, shape index: {}]   ;;  %s2435_s7 = inlined_call_operand.vmem [shape: f32[256,128], index: 7, kind: input, shape index: {}]   ;;  %s2436_s8 = inlined_call_operand.vmem [shape: f32[1,128], index: 8, kind: input, shape index: {}]   ;;  %s2437_s9 = inlined_call_operand.vmem [shape: f32[128,64], index: 9, kind: input, shape index: {}]   ;;  %s2438_s10 = inlined_call_operand.vmem [shape: f32[1,64], index: 10, kind: input, shape index: {}]   ;;  %s2439_s11 = inlined_call_operand.vmem [shape: f32[64,32], index: 11, kind: input, shape index: {}]   ;;  %s2440_s12 = inlined_call_operand.vmem [shape: f32[1,32], index: 12, kind: input, shape index: {}]   ;;  %s2441_s13 = inlined_call_operand.vmem [shape: f32[32,128], index: 13, kind: input, shape index: {}]   ;;  %s2442_s14 = inlined_call_operand.vmem [shape: f32[1,128], index: 14, kind: input, shape index: {}]   ;;  %s2443_s15 = inlined_call_operand.vmem [shape: f32[2,8,128], index: 15, kind: output, shape index: {0}]   ;;  %s2444_s16 = inlined_call_operand.hbm [shape: f32[2,128], index: 16, kind: output, shape index: {1}]  }
   0x1   :  { %2446 = sst [smem:[#allocation5_spill]] %s2428_s0 }
   0x2   :  { %v56_v0 = vld [vmem:[%s2429_s1 + $0x8] sm:$0xff]  ;;  %v59_v1 = vld [vmem:[%s2429_s1 + $0x20] sm:$0xff]  ;;  %v58_v4 = vld [vmem:[%s2429_s1 + $0x18] sm:$0xff]  ;;  %v1753_v7 = vmov 0.0   ;;  %s2447_s29 = sld [smem:[#allocation5_spill]] }
   0x3   :  { %v55_v2 = vld [vmem:[%s2429_s1] sm:$0xff]  ;;  %v1515_v3 = vpack.c.bf16 %v59_v1, %v56_v0  ;;  %v62_v5 = vld [vmem:[%s2429_s1 + $0x38] sm:$0xff]  ;;  %v65_v6 = vld [vmem:[%s2429_s1 + $0x50] sm:$0xff]  ;;  %184 = vmatprep.mubr.f32.mxu0 %v1753_v7 }
   0x4   :  { %v1517_v8 = vpack.c.bf16 %v58_v4, %v55_v2  ;;  %v1519_v9 = vpack.c.bf16 %v65_v6, %v62_v5  ;;  %v61_v10 = vld [vmem:[%s2429_s1 + $0x30] sm:$0xff]  ;;  %v64_v11 = vld [vmem:[%s2429_s1 + $0x48] sm:$0xff]  ;;  %v71_v13 = vld [vmem:[%s2429_s1 + $0x80] sm:$0xff] }
   0x5   :  { %v68_v12 = vld [vmem:[%s2429_s1 + $0x68] sm:$0xff]  ;;  %1516 = vmatprep.subr.bf16.mxu0 %v1515_v3  ;;  %v1521_v14 = vpack.c.bf16 %v64_v11, %v61_v10  ;;  %v67_v16 = vld [vmem:[%s2429_s1 + $0x60] sm:$0xff]  ;;  %v70_v17 = vld [vmem:[%s2429_s1 + $0x78] sm:$0xff] }
   0x6   :  { %1518 = vmatpush1.bf16.msra.mxu0 %v1517_v8  ;;  %v1523_v15 = vpack.c.bf16 %v71_v13, %v68_v12  ;;  %v74_v18 = vld [vmem:[%s2429_s1 + $0x98] sm:$0xff]  ;;  %v77_v19 = vld [vmem:[%s2429_s1 + $0xb0] sm:$0xff]  ;;  %v1525_v20 = vpack.c.bf16 %v70_v17, %v67_v16  ;;  %v76_v23 = vld [vmem:[%s2429_s1 + $0xa8] sm:$0xff] }
   0x7   :  { %1520 = vmatprep.subr.bf16.mxu0 %v1519_v9  ;;  %v1527_v21 = vpack.c.bf16 %v77_v19, %v74_v18  ;;  %v73_v22 = vld [vmem:[%s2429_s1 + $0x90] sm:$0xff]  ;;  %v80_v24 = vld [vmem:[%s2429_s1 + $0xc8] sm:$0xff]  ;;  %v83_v25 = vld [vmem:[%s2429_s1 + $0xe0] sm:$0xff] }
   0x8   :  { %v1900_v26 = vld [vmem:[%s2447_s29] sm:$0xff]  ;;  %v57_v27 = vld [vmem:[%s2429_s1 + $0x10] sm:$0xff]  ;;  %v60_v28 = vld [vmem:[%s2429_s1 + $0x28] sm:$0xff]  ;;  %v1529_v29 = vpack.c.bf16 %v76_v23, %v73_v22  ;;  %v1531_v34 = vpack.c.bf16 %v83_v25, %v80_v24 }
   0x9   :  { %1392 = vmatprep.mubr.f32.mxu1 %v1900_v26  ;;  %v79_v30 = vld [vmem:[%s2429_s1 + $0xc0] sm:$0xff]  ;;  %v1547_v31 = vpack.c.bf16 %v60_v28, %v57_v27  ;;  %v66_v33 = vld [vmem:[%s2429_s1 + $0x58] sm:$0xff]  ;;  %v69_v37 = vld [vmem:[%s2429_s1 + $0x70] sm:$0xff] }
   0xa   :  { %1522 = vmatpush1.bf16.msra.mxu0 %v1521_v14  ;;  %v63_v32 = vld [vmem:[%s2429_s1 + $0x40] sm:$0xff]  ;;  %v82_v35 = vld [vmem:[%s2429_s1 + $0xd8] sm:$0xff]  ;;  %v72_v38 = vld [vmem:[%s2429_s1 + $0x88] sm:$0xff] }
   0xb   :  { %1524 = vmatprep.subr.bf16.mxu0 %v1523_v15  ;;  %v1551_v36 = vpack.c.bf16 %v66_v33, %v63_v32  ;;  %v86_v39 = vld [vmem:[%s2429_s1 + $0xf8] sm:$0xff]  ;;  %v89_v40 = vld [vmem:[%s2429_s1 + $0x110] sm:$0xff]  ;;  %1548 = vmatprep.subr.bf16.mxu1 %v1547_v31  ;;  %v1533_v41 = vpack.c.bf16 %v82_v35, %v79_v30  ;;  %v88_v43 = vld [vmem:[%s2429_s1 + $0x108] sm:$0xff]  ;;  %v1555_v44 = vpack.c.bf16 %v72_v38, %v69_v37 }
   0xc   :  { %1550 = vmatpush3.bf16.msra.mxu1 %v1547_v31  ;;  %v85_v42 = vld [vmem:[%s2429_s1 + $0xf0] sm:$0xff]  ;;  %v1535_v45 = vpack.c.bf16 %v89_v40, %v86_v39  ;;  %v75_v46 = vld [vmem:[%s2429_s1 + $0xa0] sm:$0xff]  ;;  %v78_v47 = vld [vmem:[%s2429_s1 + $0xb8] sm:$0xff] }
   0xd   :  { %1552 = vmatprep.subr.bf16.mxu1 %v1551_v36 }
   0xe   :  { %1526 = vmatpush1.bf16.msra.mxu0 %v1525_v20 }
   0xf   :  { %1528 = vmatprep.subr.bf16.mxu0 %v1527_v21 }
  0x12   :  { %1530 = vmatpush1.bf16.msra.mxu0 %v1529_v29 }
  0x13   :  { %1532 = vmatprep.subr.bf16.mxu0 %v1531_v34 }
  0x14   :  { %22 = vsyncpa [#allocation3], 0  ;;  %v92_v48 = vld [vmem:[%s2429_s1 + $0x128] sm:$0xff]  ;;  %v95_v49 = vld [vmem:[%s2429_s1 + $0x140] sm:$0xff]  ;;  %1554 = vmatpush3.bf16.msra.mxu1 %v1551_v36  ;;  %v1537_v50 = vpack.c.bf16 %v88_v43, %v85_v42  ;;  %v1559_v52 = vpack.c.bf16 %v78_v47, %v75_v46  ;;  %vm1754_vm0 = vmmov 0   ;;  %v105_v12 = vlaneseq  ;;  %s1756_s19 = smov [#allocation2]  }
  0x15   :  { %v91_v51 = vld [vmem:[%s2429_s1 + $0x120] sm:$0xff]  ;;  %1556 = vmatprep.subr.bf16.mxu1 %v1555_v44  ;;  %v1539_v53 = vpack.c.bf16 %v95_v49, %v92_v48  ;;  %v94_v54 = vld [vmem:[%s2429_s1 + $0x138] sm:$0xff]  ;;  %v81_v55 = vld [vmem:[%s2429_s1 + $0xd0] sm:$0xff]  ;;  %vm414_vm1 = vcmask 64512   ;;  %vm970_vm2 = vcmask 1041409   ;;  %vm1059_vm3 = vcmask 523264  }
  0x16   :  { %1534 = vmatpush1.bf16.msra.mxu0 %v1533_v41  ;;  %v84_v56 = vld [vmem:[%s2429_s1 + $0xe8] sm:$0xff]  ;;  %v98_v57 = vld [vmem:[%s2429_s1 + $0x158] sm:$0xff]  ;;  %v101_v58 = vld [vmem:[%s2429_s1 + $0x170] sm:$0xff]  ;;  %v1541_v59 = vpack.c.bf16 %v94_v54, %v91_v51  ;;  %v2008_v13 = vshrl.u32 %v105_v12, 7  ;;  %vm1145_vm4 = vcmask 261120   ;;  %s1228_s20 = sshll.u32 %s1756_s19, 4  ;;  %s1229_s20 = int_to_ptr.vmem [resolvable:$true] %s1228_s20 }
  0x17   :  { %1536 = vmatprep.subr.bf16.mxu0 %v1535_v45  ;;  %v97_v60 = vld [vmem:[%s2429_s1 + $0x150] sm:$0xff]  ;;  %v1563_v61 = vpack.c.bf16 %v84_v56, %v81_v55  ;;  %v1543_v62 = vpack.c.bf16 %v101_v58, %v98_v57  ;;  %v100_v63 = vld [vmem:[%s2429_s1 + $0x168] sm:$0xff]  ;;  %v87_v0 = vld [vmem:[%s2429_s1 + $0x100] sm:$0xff]  ;;  %p1734_p1 = scmp.lt.s32.totalorder %s1229_s20, %s1229_s20 }
  0x18   :  { %1558 = vmatpush3.bf16.msra.mxu1 %v1555_v44  ;;  %v90_v1 = vld [vmem:[%s2429_s1 + $0x118] sm:$0xff]  ;;  %v1545_v2 = vpack.c.bf16 %v100_v63, %v97_v60  ;;  %v93_v4 = vld [vmem:[%s2429_s1 + $0x130] sm:$0xff]  ;;  %v96_v5 = vld [vmem:[%s2429_s1 + $0x148] sm:$0xff]  ;;  %v111_v14 = vsub.s32 1, %v2008_v13  ;;  %v107_v16 = vsub.s32 0, %v2008_v13  ;;  %v115_v23 = vsub.s32 2, %v2008_v13 }
  0x19   :  { %1560 = vmatprep.subr.bf16.mxu1 %v1559_v52  ;;  %v1567_v3 = vpack.c.bf16 %v90_v1, %v87_v0  ;;  %v1571_v6 = vpack.c.bf16 %v96_v5, %v93_v4  ;;  %v99_v8 = vld [vmem:[%s2429_s1 + $0x160] sm:$0xff]  ;;  %v102_v9 = vld [vmem:[%s2429_s1 + $0x178] sm:$0xff]  ;;  %v1999_v10 = vld [vmem:[%s2447_s29 + $0x8] sm:$0xff] }
  0x1a   :  { %1538 = vmatpush1.bf16.msra.mxu0 %v1537_v50  ;;  %v1575_v11 = vpack.c.bf16 %v102_v9, %v99_v8  ;;  %v103_v15 = vld [vmem:[%s2430_s2] sm:$0x7]  ;;  %v585_v57 = vld [vmem:[%s2431_s3 + $0x10] sm:$0xff]  ;;  %v586_v58 = vld [vmem:[%s2431_s3 + $0x18] sm:$0xff] }
  0x1b   :  { %1540 = vmatprep.subr.bf16.mxu0 %v1539_v53  ;;  %v112_v17 = vrot.slane %v103_v15, %v111_v14  ;;  %v108_v19 = vrot.slane %v103_v15, %v107_v16  ;;  %v116_v28 = vrot.slane %v103_v15, %v115_v23  ;;  %v584_v53 = vld [vmem:[%s2431_s3 + $0x8] sm:$0xff]  ;;  %v590_v4 = vld [vmem:[%s2431_s3 + $0x38] sm:$0xff]  ;;  %v947_v13 = vld [vmem:[%s2437_s9 + $0x10] sm:$0xff] }
  0x1c   :  { %1562 = vmatpush3.bf16.msra.mxu1 %v1559_v52  ;;  %v583_v52 = vld [vmem:[%s2431_s3] sm:$0xff]  ;;  %v588_v63 = vld [vmem:[%s2431_s3 + $0x28] sm:$0xff]  ;;  %v594_v12 = vld [vmem:[%s2431_s3 + $0x58] sm:$0xff] }
  0x1d   :  { %1564 = vmatprep.subr.bf16.mxu1 %v1563_v61  ;;  %v1579_v54 = vpack.c.bf16 %v584_v53, %v583_v52  ;;  %v592_v8 = vld [vmem:[%s2431_s3 + $0x48] sm:$0xff]  ;;  %v703_v52 = vld [vmem:[%s2433_s5 + $0x90] sm:$0xff] }
  0x1e   :  { %1542 = vmatpush1.bf16.msra.mxu0 %v1541_v59  ;;  %v686_v23 = vld [vmem:[%s2433_s5 + $0x8] sm:$0xff] }
  0x1f   :  { %1544 = vmatprep.subr.bf16.mxu0 %v1543_v62  ;;  %v587_v62 = vld [vmem:[%s2431_s3 + $0x20] sm:$0xff]  ;;  %v706_v53 = vld [vmem:[%s2433_s5 + $0xa8] sm:$0xff] }
  0x20   :  { %1566 = vmatpush3.bf16.msra.mxu1 %v1563_v61  ;;  %v1583_v61 = vpack.c.bf16 %v586_v58, %v585_v57  ;;  %v705_v57 = vld [vmem:[%s2433_s5 + $0xa0] sm:$0xff]  ;;  %v707_v58 = vld [vmem:[%s2433_s5 + $0xb0] sm:$0xff] }
  0x21   :  { %1568 = vmatprep.subr.bf16.mxu1 %v1567_v3 }
  0x22   :  { %1546 = vmatpush1.bf16.msra.mxu0 %v1545_v2  ;;  %v1587_v2 = vpack.c.bf16 %v588_v63, %v587_v62  ;;  %v709_v63 = vld [vmem:[%s2433_s5 + $0xc0] sm:$0xff] }
  0x23   :  { %1400 = vmatprep.subr.mxu0 %v1753_v7 }
  0x24   :  { %1570 = vmatpush3.bf16.msra.mxu1 %v1567_v3  ;;  %v589_v3 = vld [vmem:[%s2431_s3 + $0x30] sm:$0xff] }
  0x25   :  { %185 = vmatmul.mubr.f32.vlgmr.msra.gmra.mrb[0].mxu0 %v1900_v26  ;;  %1572 = vmatprep.subr.bf16.mxu1 %v1571_v6  ;;  %v1591_v5 = vpack.c.bf16 %v590_v4, %v589_v3 }
  0x26   :  { %190 = vmatprep.mubr.f32.mxu0 %v1753_v7 }
  0x28   :  { %1574 = vmatpush3.bf16.msra.mxu1 %v1571_v6  ;;  %v591_v6 = vld [vmem:[%s2431_s3 + $0x40] sm:$0xff] }
  0x29   :  { %191 = vmatmul.mubr.f32.gmra.mrb[2].mxu0 %v1999_v10  ;;  %1576 = vmatprep.subr.bf16.mxu1 %v1575_v11  ;;  %v1595_v9 = vpack.c.bf16 %v592_v8, %v591_v6  ;;  %v714_v6 = vld [vmem:[%s2433_s5 + $0xe8] sm:$0xff]  ;;  %v716_v8 = vld [vmem:[%s2433_s5 + $0xf8] sm:$0xff] }
  0x2a   :  { %1402 = vmatprep.mubr.msk.f32.mxu0 %vm1754_vm0, %v1753_v7 }
  0x2c   :  { %1578 = vmatpush3.bf16.msra.mxu1 %v1575_v11  ;;  %v593_v11 = vld [vmem:[%s2431_s3 + $0x50] sm:$0xff] }
  0x2d   :  { %1395 = vmatprep.subr.mxu1 %v1753_v7  ;;  %v1599_v15 = vpack.c.bf16 %v594_v12, %v593_v11  ;;  %v713_v11 = vld [vmem:[%s2433_s5 + $0xe0] sm:$0xff]  ;;  %v715_v12 = vld [vmem:[%s2433_s5 + $0xf0] sm:$0xff] }
  0x2f   :  { %1393 = vmatmul.mubr.f32.vlgmr.msra.gmra.mrb[0].mxu1 %v1999_v10 }
  0x30   :  { %1397 = vmatprep.mubr.msk.f32.mxu1 %vm1754_vm0, %v1753_v7 }
  0xf8   :  { %v186_v18 = vpop.f32.mrb[0].mxu0 }
  0xf9   :  { %v188_v20 = vpop.f32.mrb[1].mxu0  ;;  %v187_v24 = vadd.f32 %v186_v18, %v108_v19  ;;  %v596_v18 = vld [vmem:[%s2431_s3 + $0x68] sm:$0xff] }
  0xfa   :  { %v189_v21 = vadd.f32 %v188_v20, %v112_v17  ;;  %v597_v20 = vld [vmem:[%s2431_s3 + $0x70] sm:$0xff] }
  0xfc   :  { %v192_v22 = vpop.f32.mrb[2].mxu0  ;;  %1396 = vmatpush3.xpose.msra.mxu1 %v189_v21  ;;  %v598_v21 = vld [vmem:[%s2431_s3 + $0x78] sm:$0xff] }
  0xfd   :  { %v194_v25 = vpop.f32.mrb[3].mxu0  ;;  %1405 = vmatprep.subr.mxu1 %v1753_v7  ;;  %v193_v29 = vadd.f32 %v192_v22, %v108_v19  ;;  %v1607_v22 = vpack.c.bf16 %v598_v21, %v597_v20  ;;  %v811_v21 = vld [vmem:[%s2435_s7 + $0x8] sm:$0xff] }
  0xfe   :  { %v195_v27 = vadd.f32 %v194_v25, %v112_v17  ;;  %v595_v17 = vld [vmem:[%s2431_s3 + $0x60] sm:$0xff] }
  0xff   :  { %1398 = vmatmul.mubr.f32.vlgmr.msra.gmra.mrb[2].mxu1 %v187_v24  ;;  %v1603_v19 = vpack.c.bf16 %v596_v18, %v595_v17  ;;  %v688_v24 = vld [vmem:[%s2433_s5 + $0x18] sm:$0xff]  ;;  %v685_v25 = vld [vmem:[%s2433_s5] sm:$0xff]  ;;  %v827_v18 = vld [vmem:[%s2435_s7 + $0x88] sm:$0xff] }
 0x100   :  { %1401 = vmatpush3.xpose.msra.mxu0 %v195_v27  ;;  %1407 = vmatprep.mubr.msk.f32.mxu1 %vm1754_vm0, %v1753_v7  ;;  %v1611_v27 = vpack.c.bf16 %v688_v24, %v686_v23  ;;  %v826_v17 = vld [vmem:[%s2435_s7 + $0x80] sm:$0xff]  ;;  %v829_v23 = vld [vmem:[%s2435_s7 + $0x98] sm:$0xff] }
 0x101   :  { %1410 = vmatprep.subr.mxu0 %v1753_v7  ;;  %v1643_v20 = vpack.c.bf16 %v827_v18, %v826_v17 }
 0x102   :  { %v1394_v30 = vpop.f32.mrb[0].mxu1 }
 0x103   :  { %1403 = vmatmul.mubr.f32.vlgmr.msra.gmra.mrb[4].mxu0 %v193_v29  ;;  %v269_v31 = vadd.f32 %v1394_v30, %v116_v28  ;;  %v263_v32 = vpop.f32.mrb[1].mxu1  ;;  %v690_v29 = vld [vmem:[%s2433_s5 + $0x28] sm:$0xff]  ;;  %v692_v30 = vld [vmem:[%s2433_s5 + $0x38] sm:$0xff] }
 0x104   :  { %1412 = vmatprep.mubr.msk.f32.mxu0 %vm1754_vm0, %v1753_v7  ;;  %v264_v33 = vadd.f32 %v263_v32, %v116_v28  ;;  %v687_v28 = vld [vmem:[%s2433_s5 + $0x10] sm:$0xff]  ;;  %v1615_v32 = vpack.c.bf16 %v692_v30, %v690_v29  ;;  %v830_v29 = vld [vmem:[%s2435_s7 + $0xa0] sm:$0xff]  ;;  %v831_v30 = vld [vmem:[%s2435_s7 + $0xa8] sm:$0xff] }
 0x105   :  { %1411 = vmatpush3.msra.mxu0 %v269_v31  ;;  %v1613_v31 = vpack.c.bf16 %v687_v28, %v685_v25  ;;  %v813_v28 = vld [vmem:[%s2435_s7 + $0x18] sm:$0xff] }
 0x106   :  { %1406 = vmatpush3.msra.mxu1 %v264_v33  ;;  %v689_v33 = vld [vmem:[%s2433_s5 + $0x20] sm:$0xff]  ;;  %1612 = vmatprep.subr.bf16.mxu0 %v1611_v27  ;;  %v812_v27 = vld [vmem:[%s2435_s7 + $0x10] sm:$0xff] }
 0x107   :  { %1580 = vmatprep.subr.bf16.mxu1 %v1579_v54 }
 0x1d2   :  { %v338_v34 = vpop.f32.mrb[2].mxu1 }
 0x1d3   :  { %v412_v35 = vmul.f32 0.088388346, %v338_v34  ;;  %v1399_v36 = vpop.f32.mrb[3].mxu1  ;;  %v691_v34 = vld [vmem:[%s2433_s5 + $0x30] sm:$0xff] }
 0x1d4   :  { %v696_v36 = vld [vmem:[%s2433_s5 + $0x58] sm:$0xff] }
 0x1d5   :  { %v415_v37 = vsel %vm414_vm1, %v412_v35, -inf }
 0x1d6   :  { %v408_v38 = vpop.f32.mrb[4].mxu0  ;;  %416 = vmax.xlane.f32.xlu0 %v415_v37  ;;  %v1617_v37 = vpack.c.bf16 %v691_v34, %v689_v33  ;;  %v814_v33 = vld [vmem:[%s2435_s7 + $0x20] sm:$0xff]  ;;  %v815_v34 = vld [vmem:[%s2435_s7 + $0x28] sm:$0xff] }
 0x1d7   :  { %v413_v39 = vmul.f32 0.088388346, %v408_v38  ;;  %v1404_v40 = vpop.f32.mrb[5].mxu0 }
 0x1d8   :  { %v695_v40 = vld [vmem:[%s2433_s5 + $0x50] sm:$0xff] }
 0x1d9   :  { %v418_v41 = vsel %vm414_vm1, %v413_v39, -inf }
 0x1da   :  { %419 = vmax.xlane.f32.xlu0 %v418_v41  ;;  %v698_v41 = vld [vmem:[%s2433_s5 + $0x68] sm:$0xff] }
 0x263   :  { %v417_v42 = vpop.xlane.xlu0 %416 }
 0x264   :  { %v421_v43 = vsub.f32 %v412_v35, %v417_v42  ;;  %v694_v35 = vld [vmem:[%s2433_s5 + $0x48] sm:$0xff]  ;;  %v700_v42 = vld [vmem:[%s2433_s5 + $0x78] sm:$0xff] }
 0x265   :  { %v1619_v38 = vpack.c.bf16 %v696_v36, %v694_v35  ;;  %v832_v35 = vld [vmem:[%s2435_s7 + $0xb0] sm:$0xff]  ;;  %v833_v36 = vld [vmem:[%s2435_s7 + $0xb8] sm:$0xff] }
 0x266   :  { %v423_v44 = vmul.f32 1.442695, %v421_v43 }
 0x267   :  { %v420_v45 = vpop.xlane.xlu0 %419 }
 0x268   :  { %1721 = vpow2.f32 %v423_v44  ;;  %v422_v46 = vsub.f32 %v413_v39, %v420_v45  ;;  %v693_v39 = vld [vmem:[%s2433_s5 + $0x40] sm:$0xff]  ;;  %v1623_v44 = vpack.c.bf16 %v700_v42, %v698_v41  ;;  %v835_v42 = vld [vmem:[%s2435_s7 + $0xc8] sm:$0xff] }
 0x269   :  { %v1621_v43 = vpack.c.bf16 %v695_v40, %v693_v39  ;;  %v697_v45 = vld [vmem:[%s2433_s5 + $0x60] sm:$0xff]  ;;  %v816_v39 = vld [vmem:[%s2435_s7 + $0x30] sm:$0xff]  ;;  %v817_v40 = vld [vmem:[%s2435_s7 + $0x38] sm:$0xff] }
 0x26a   :  { %v425_v47 = vmul.f32 1.442695, %v422_v46  ;;  %v699_v46 = vld [vmem:[%s2433_s5 + $0x70] sm:$0xff]  ;;  %v834_v41 = vld [vmem:[%s2435_s7 + $0xc0] sm:$0xff] }
 0x26c   :  { %1723 = vpow2.f32 %v425_v47  ;;  %v702_v47 = vld [vmem:[%s2433_s5 + $0x88] sm:$0xff] }
 0x272   :  { %v1722_v48 = vpop.eup %1721 }
 0x273   :  { %v427_v49 = vsel %vm414_vm1, %v1722_v48, 0.0 }
 0x274   :  { %428 = vadd.xlane.f32.xlu1 %v427_v49  ;;  %v1625_v49 = vpack.c.bf16 %v699_v46, %v697_v45  ;;  %v818_v45 = vld [vmem:[%s2435_s7 + $0x40] sm:$0xff]  ;;  %v819_v46 = vld [vmem:[%s2435_s7 + $0x48] sm:$0xff] }
 0x276   :  { %v1724_v50 = vpop.eup %1723 }
 0x277   :  { %v430_v51 = vsel %vm414_vm1, %v1724_v50, 0.0 }
 0x278   :  { %431 = vadd.xlane.f32.xlu1 %v430_v51  ;;  %v701_v51 = vld [vmem:[%s2433_s5 + $0x80] sm:$0xff] }
 0x301   :  { %v429_v55 = vpop.xlane.xlu1 %428 }
 0x302   :  { %1725 = vrcp.f32 %v429_v55  ;;  %v1629_v55 = vpack.c.bf16 %v703_v52, %v701_v51  ;;  %v820_v51 = vld [vmem:[%s2435_s7 + $0x50] sm:$0xff]  ;;  %v821_v52 = vld [vmem:[%s2435_s7 + $0x58] sm:$0xff] }
 0x305   :  { %v432_v56 = vpop.xlane.xlu1 %431 }
 0x306   :  { %1727 = vrcp.f32 %v432_v56 }
 0x30c   :  { %v1726_v59 = vpop.eup %1725 }
 0x30d   :  { %v435_v60 = vmul.f32 %v1726_v59, %v1722_v48  ;;  %v704_v48 = vld [vmem:[%s2433_s5 + $0x98] sm:$0xff]  ;;  %v710_v59 = vld [vmem:[%s2433_s5 + $0xc8] sm:$0xff] }
 0x30f   :  { %1408 = vmatmul.mubr.msk.f32.vlgmr.msra.gmra.mrb[4].mxu1 %vm414_vm1, %v435_v60  ;;  %v712_v60 = vld [vmem:[%s2433_s5 + $0xd8] sm:$0xff] }
 0x310   :  { %v1728_v0 = vpop.eup %1727  ;;  %1582 = vmatpush3.bf16.msra.mxu1 %v1579_v54  ;;  %v708_v54 = vld [vmem:[%s2433_s5 + $0xb8] sm:$0xff]  ;;  %v1635_v62 = vpack.c.bf16 %v712_v60, %v710_v59 }
 0x311   :  { %v436_v1 = vmul.f32 %v1728_v0, %v1724_v50  ;;  %1584 = vmatprep.subr.bf16.mxu1 %v1583_v61  ;;  %v1627_v50 = vpack.c.bf16 %v704_v48, %v702_v47  ;;  %v1631_v56 = vpack.c.bf16 %v708_v54, %v706_v53  ;;  %v711_v0 = vld [vmem:[%s2433_s5 + $0xd0] sm:$0xff]  ;;  %v837_v48 = vld [vmem:[%s2435_s7 + $0xd8] sm:$0xff]  ;;  %v838_v53 = vld [vmem:[%s2435_s7 + $0xe0] sm:$0xff] }
 0x312   :  { %v836_v47 = vld [vmem:[%s2435_s7 + $0xd0] sm:$0xff]  ;;  %v839_v54 = vld [vmem:[%s2435_s7 + $0xe8] sm:$0xff] }
 0x313   :  { %1413 = vmatmul.mubr.msk.f32.vlgmr.msra.gmra.mrb[6].mxu0 %vm414_vm1, %v436_v1  ;;  %v1637_v1 = vpack.c.bf16 %v711_v0, %v709_v63  ;;  %v822_v0 = vld [vmem:[%s2435_s7 + $0x60] sm:$0xff] }
 0x314   :  { %1586 = vmatpush3.bf16.msra.mxu1 %v1583_v61  ;;  %793 = vmatprep.mubr.f32.mxu0 %v1753_v7  ;;  %v1633_v61 = vpack.c.bf16 %v707_v58, %v705_v57  ;;  %v1240_v58 = vld [vmem:[%s2432_s4] ss:$0 sm:$0xff] }
 0x315   :  { %1588 = vmatprep.subr.bf16.mxu1 %v1587_v2  ;;  %1614 = vmatpush1.bf16.msra.mxu0 %v1613_v31  ;;  %v1649_v31 = vpack.c.bf16 %v813_v28, %v812_v27 }
 0x316   :  { %1616 = vmatprep.subr.bf16.mxu0 %v1615_v32  ;;  %v1651_v32 = vpack.c.bf16 %v831_v30, %v830_v29 }
 0x318   :  { %1590 = vmatpush3.bf16.msra.mxu1 %v1587_v2 }
 0x319   :  { %1592 = vmatprep.subr.bf16.mxu1 %v1591_v5  ;;  %1618 = vmatpush1.bf16.msra.mxu0 %v1617_v37  ;;  %v1653_v37 = vpack.c.bf16 %v815_v34, %v814_v33  ;;  %v950_v33 = vld [vmem:[%s2437_s9 + $0x28] sm:$0xff] }
 0x31a   :  { %1620 = vmatprep.subr.bf16.mxu0 %v1619_v38  ;;  %v1655_v38 = vpack.c.bf16 %v833_v36, %v832_v35  ;;  %v951_v35 = vld [vmem:[%s2437_s9 + $0x30] sm:$0xff]  ;;  %v952_v36 = vld [vmem:[%s2437_s9 + $0x38] sm:$0xff] }
 0x31c   :  { %1594 = vmatpush3.bf16.msra.mxu1 %v1591_v5 }
 0x31d   :  { %1596 = vmatprep.subr.bf16.mxu1 %v1595_v9  ;;  %1622 = vmatpush1.bf16.msra.mxu0 %v1621_v43  ;;  %v1657_v43 = vpack.c.bf16 %v817_v40, %v816_v39  ;;  %v954_v39 = vld [vmem:[%s2437_s9 + $0x48] sm:$0xff] }
 0x31e   :  { %1624 = vmatprep.subr.bf16.mxu0 %v1623_v44  ;;  %v1659_v44 = vpack.c.bf16 %v835_v42, %v834_v41  ;;  %v955_v41 = vld [vmem:[%s2437_s9 + $0x50] sm:$0xff]  ;;  %v956_v42 = vld [vmem:[%s2437_s9 + $0x58] sm:$0xff] }
 0x320   :  { %1598 = vmatpush3.bf16.msra.mxu1 %v1595_v9  ;;  %v1639_v9 = vpack.c.bf16 %v716_v8, %v714_v6  ;;  %v945_v8 = vld [vmem:[%s2437_s9] sm:$0xff] }
 0x321   :  { %1600 = vmatprep.subr.bf16.mxu1 %v1599_v15  ;;  %1626 = vmatpush1.bf16.msra.mxu0 %v1625_v49  ;;  %v1661_v49 = vpack.c.bf16 %v819_v46, %v818_v45  ;;  %v958_v45 = vld [vmem:[%s2437_s9 + $0x68] sm:$0xff] }
 0x322   :  { %1628 = vmatprep.subr.bf16.mxu0 %v1627_v50  ;;  %v1663_v50 = vpack.c.bf16 %v837_v48, %v836_v47  ;;  %v959_v47 = vld [vmem:[%s2437_s9 + $0x70] sm:$0xff]  ;;  %v960_v48 = vld [vmem:[%s2437_s9 + $0x78] sm:$0xff] }
 0x324   :  { %1602 = vmatpush3.bf16.msra.mxu1 %v1599_v15  ;;  %v1641_v15 = vpack.c.bf16 %v715_v12, %v713_v11  ;;  %v1755_v11 = vmov 0.0|0.0  }
 0x325   :  { %1604 = vmatprep.subr.bf16.mxu1 %v1603_v19  ;;  %1630 = vmatpush1.bf16.msra.mxu0 %v1629_v55  ;;  %v1665_v55 = vpack.c.bf16 %v821_v52, %v820_v51  ;;  %v1045_v51 = vld [vmem:[%s2439_s11 + $0x8] sm:$0xff]  ;;  %v1046_v52 = vld [vmem:[%s2439_s11 + $0x10] sm:$0xff] }
 0x326   :  { %1632 = vmatprep.subr.bf16.mxu0 %v1631_v56  ;;  %v1667_v56 = vpack.c.bf16 %v839_v54, %v838_v53  ;;  %v1047_v54 = vld [vmem:[%s2439_s11 + $0x18] sm:$0xff] }
 0x328   :  { %1606 = vmatpush3.bf16.msra.mxu1 %v1603_v19  ;;  %v810_v19 = vld [vmem:[%s2435_s7] sm:$0xff] }
 0x329   :  { %1608 = vmatprep.subr.bf16.mxu1 %v1607_v22  ;;  %1634 = vmatpush1.bf16.msra.mxu0 %v1633_v61  ;;  %v1645_v24 = vpack.c.bf16 %v811_v21, %v810_v19 }
 0x32a   :  { %1636 = vmatprep.subr.bf16.mxu0 %v1635_v62 }
 0x32c   :  { %1610 = vmatpush3.bf16.msra.mxu1 %v1607_v22  ;;  %v828_v22 = vld [vmem:[%s2435_s7 + $0x90] sm:$0xff] }
 0x32d   :  { %1638 = vmatpush1.bf16.msra.mxu0 %v1637_v1  ;;  %v1647_v25 = vpack.c.bf16 %v829_v23, %v828_v22  ;;  %1644 = vmatprep.subr.bf16.mxu1 %v1643_v20  ;;  %v840_v1 = vld [vmem:[%s2435_s7 + $0xf0] sm:$0xff] }
 0x32e   :  { %1640 = vmatprep.subr.bf16.mxu0 %v1639_v9  ;;  %v946_v9 = vld [vmem:[%s2437_s9 + $0x8] sm:$0xff] }
 0x32f   :  { %v1676_v12 = vpack.c.bf16 %v946_v9, %v945_v8 }
 0x331   :  { %1642 = vmatpush1.bf16.msra.mxu0 %v1641_v15  ;;  %v717_v15 = vld [vmem:[%s2434_s6] sm:$0x3] }
 0x332   :  { %1675 = vmatprep.subr.bf16.mxu0 %v1755_v11  ;;  %v722_v17 = vrot.slane %v717_v15, %v107_v16  ;;  %v726_v18 = vrot.slane %v717_v15, %v111_v14  ;;  %v948_v14 = vld [vmem:[%s2437_s9 + $0x18] sm:$0xff] }
 0x333   :  { %v1679_v16 = vpack.c.bf16 %v948_v14, %v947_v13 }
 0x3e2   :  { %v506_v2 = vpop.f32.mrb[4].mxu1 }
 0x3e3   :  { %v1409_v3 = vpop.f32.mrb[5].mxu1  ;;  %1447 = vmatprep.mubr.f32.mxu1 %v506_v2  ;;  %v841_v2 = vld [vmem:[%s2435_s7 + $0xf8] sm:$0xff] }
 0x3e4   :  { %v1671_v3 = vpack.c.bf16 %v841_v2, %v840_v1 }
 0x3e6   :  { %v579_v4 = vpop.f32.mrb[6].mxu0 }
 0x3e7   :  { %v1414_v5 = vpop.f32.mrb[7].mxu0  ;;  %1448 = vmatmul.mubr.f32.vlgmr.msra.gmra.mrb[6].mxu1 %v579_v4  ;;  %v824_v4 = vld [vmem:[%s2435_s7 + $0x70] sm:$0xff] }
 0x3e8   :  { %1646 = vmatpush3.bf16.msra.mxu1 %v1645_v24  ;;  %v825_v5 = vld [vmem:[%s2435_s7 + $0x78] sm:$0xff] }
 0x3e9   :  { %1648 = vmatprep.subr.bf16.mxu1 %v1647_v25  ;;  %v1673_v6 = vpack.c.bf16 %v825_v5, %v824_v4 }
 0x3ec   :  { %1650 = vmatpush3.bf16.msra.mxu1 %v1649_v31 }
 0x3ed   :  { %1652 = vmatprep.subr.bf16.mxu1 %v1651_v32  ;;  %v949_v32 = vld [vmem:[%s2437_s9 + $0x20] sm:$0xff] }
 0x3ee   :  { %v1682_v34 = vpack.c.bf16 %v950_v33, %v949_v32  ;;  %v1136_v33 = vld [vmem:[%s2441_s13 + $0x10] sm:$0xff] }
 0x3f0   :  { %1654 = vmatpush3.bf16.msra.mxu1 %v1653_v37  ;;  %v1685_v37 = vpack.c.bf16 %v952_v36, %v951_v35 }
 0x3f1   :  { %1656 = vmatprep.subr.bf16.mxu1 %v1655_v38  ;;  %v953_v38 = vld [vmem:[%s2437_s9 + $0x40] sm:$0xff] }
 0x3f2   :  { %v1688_v40 = vpack.c.bf16 %v954_v39, %v953_v38 }
 0x3f4   :  { %1658 = vmatpush3.bf16.msra.mxu1 %v1657_v43  ;;  %v1691_v43 = vpack.c.bf16 %v956_v42, %v955_v41 }
 0x3f5   :  { %1660 = vmatprep.subr.bf16.mxu1 %v1659_v44  ;;  %v957_v44 = vld [vmem:[%s2437_s9 + $0x60] sm:$0xff] }
 0x3f6   :  { %v1694_v46 = vpack.c.bf16 %v958_v45, %v957_v44 }
 0x3f8   :  { %1662 = vmatpush3.bf16.msra.mxu1 %v1661_v49  ;;  %v1697_v49 = vpack.c.bf16 %v960_v48, %v959_v47 }
 0x3f9   :  { %1664 = vmatprep.subr.bf16.mxu1 %v1663_v50  ;;  %v1044_v50 = vld [vmem:[%s2439_s11] sm:$0xff] }
 0x3fa   :  { %v1700_v53 = vpack.c.bf16 %v1045_v51, %v1044_v50 }
 0x3fc   :  { %1666 = vmatpush3.bf16.msra.mxu1 %v1665_v55  ;;  %v1703_v55 = vpack.c.bf16 %v1047_v54, %v1046_v52 }
 0x3fd   :  { %1668 = vmatprep.subr.bf16.mxu1 %v1667_v56  ;;  %v1048_v56 = vld [vmem:[%s2439_s11 + $0x20] sm:$0xff] }
 0x4ba   :  { %v1449_v57 = vpop.f32.mrb[6].mxu1 }
 0x4bb   :  { %v665_v59 = vpop.f32.mrb[7].mxu1  ;;  %v675_v61 = vadd.f32 %v1449_v57, %v1999_v10  ;;  %v1049_v57 = vld [vmem:[%s2439_s11 + $0x28] sm:$0xff] }
 0x4bc   :  { %v674_v60 = vadd.f32 %v665_v59, %v1900_v26  ;;  %v823_v26 = vld [vmem:[%s2435_s7 + $0x68] sm:$0xff] }
 0x4bd   :  { %v2264_v63 = vadd.f32 %v1240_v58, %v675_v61  ;;  %v1669_v10 = vpack.c.bf16 %v823_v26, %v822_v0  ;;  %v1241_v0 = vld [vmem:[%s2436_s8] ss:$0 sm:$0xff] }
 0x4be   :  { %v2260_v62 = vadd.f32 %v1240_v58, %v674_v60  ;;  %v1706_v58 = vpack.c.bf16 %v1049_v57, %v1048_v56 }
 0x4bf   :  { %1670 = vmatpush3.bf16.msra.mxu1 %v1669_v10 }
 0x4c0   :  { %794 = vmatmul.mubr.f32.vlgmr.msra.gmra.mrb[8].mxu0 %v2260_v62  ;;  %1672 = vmatprep.subr.bf16.mxu1 %v1671_v3 }
 0x4c1   :  { %799 = vmatprep.mubr.f32.mxu0 %v1753_v7  ;;  %1677 = vmatpush3.bf16.msra.mxu0 %v1676_v12 }
 0x4c2   :  { %1678 = vmatprep.subr.bf16.mxu0 %v1755_v11 }
 0x4c3   :  { %1674 = vmatpush3.bf16.msra.mxu1 %v1673_v6 }
 0x4c4   :  { %800 = vmatmul.mubr.f32.gmra.mrb[10].mxu0 %v2264_v63  ;;  %1699 = vmatprep.subr.bf16.mxu1 %v1755_v11 }
 0x4c5   :  { %1482 = vmatprep.mubr.msk.f32.mxu0 %vm1754_vm0, %v1753_v7  ;;  %1680 = vmatpush3.bf16.msra.mxu0 %v1679_v16 }
 0x4c6   :  { %1681 = vmatprep.subr.bf16.mxu0 %v1755_v11 }
 0x4c9   :  { %1683 = vmatpush3.bf16.msra.mxu0 %v1682_v34  ;;  %v1137_v34 = vld [vmem:[%s2441_s13 + $0x18] sm:$0xff] }
 0x4ca   :  { %1684 = vmatprep.subr.bf16.mxu0 %v1755_v11  ;;  %v1715_v35 = vpack.c.bf16 %v1137_v34, %v1136_v33 }
 0x4cd   :  { %1686 = vmatpush3.bf16.msra.mxu0 %v1685_v37 }
 0x4ce   :  { %1687 = vmatprep.subr.bf16.mxu0 %v1755_v11 }
 0x4d1   :  { %1689 = vmatpush3.bf16.msra.mxu0 %v1688_v40  ;;  %v1245_v40 = vld [vmem:[%s2442_s14] ss:$0 sm:$0xff] }
 0x4d2   :  { %1690 = vmatprep.subr.bf16.mxu0 %v1755_v11 }
 0x4d5   :  { %1692 = vmatpush3.bf16.msra.mxu0 %v1691_v43 }
 0x4d6   :  { %1693 = vmatprep.subr.bf16.mxu0 %v1755_v11 }
 0x4d9   :  { %1695 = vmatpush3.bf16.msra.mxu0 %v1694_v46 }
 0x4da   :  { %1696 = vmatprep.subr.bf16.mxu0 %v1755_v11 }
 0x4dd   :  { %1698 = vmatpush3.bf16.msra.mxu0 %v1697_v49 }
 0x4de   :  { %1711 = vmatprep.subr.bf16.mxu0 %v1755_v11 }
 0x593   :  { %v795_v19 = vpop.f32.mrb[8].mxu0 }
 0x594   :  { %v796_v20 = vadd.f32 %v795_v19, %v722_v17  ;;  %v797_v21 = vpop.f32.mrb[9].mxu0 }
 0x595   :  { %v798_v22 = vadd.f32 %v797_v21, %v726_v18 }
 0x596   :  { %v806_v25 = vmax.f32 %v796_v20, 0.0 }
 0x597   :  { %v807_v23 = vmax.f32 %v798_v22, 0.0  ;;  %v801_v24 = vpop.f32.mrb[10].mxu0 }
 0x598   :  { %v802_v27 = vadd.f32 %v801_v24, %v722_v17  ;;  %v803_v28 = vpop.f32.mrb[11].mxu0 }
 0x599   :  { %v804_v29 = vadd.f32 %v803_v28, %v726_v18  ;;  %906 = vmatprep.mubr.f32.mxu1 %v807_v23 }
 0x59a   :  { %907 = vmatmul.mubr.f32.vlgmr.msra.gmra.mrb[8].mxu1 %v806_v25  ;;  %v808_v31 = vmax.f32 %v802_v27, 0.0  ;;  %v1050_v25 = vld [vmem:[%s2439_s11 + $0x30] sm:$0xff]  ;;  %v1051_v27 = vld [vmem:[%s2439_s11 + $0x38] sm:$0xff] }
 0x59b   :  { %v809_v30 = vmax.f32 %v804_v29, 0.0  ;;  %1701 = vmatpush3.bf16.msra.mxu1 %v1700_v53  ;;  %v1709_v28 = vpack.c.bf16 %v1051_v27, %v1050_v25  ;;  %v1134_v29 = vld [vmem:[%s2441_s13] sm:$0xff] }
 0x59c   :  { %1702 = vmatprep.subr.bf16.mxu1 %v1755_v11 }
 0x59d   :  { %911 = vmatprep.mubr.f32.mxu1 %v809_v30  ;;  %v1135_v30 = vld [vmem:[%s2441_s13 + $0x8] sm:$0xff]  ;;  %s1729_s13 = scalar_lea.vmem %s1229_s20, 32 }
 0x59e   :  { %912 = vmatmul.mubr.f32.gmra.mrb[10].mxu1 %v808_v31  ;;  %v1712_v31 = vpack.c.bf16 %v1135_v30, %v1134_v29  ;;  %p1730_p0 = scmp.ne.s32.totalorder %s1229_s20, %s1729_s13  ;;  %p1735_p2 = scmp.lt.s32.totalorder %s1729_s13, %s1729_s13 }
 0x59f   :  { %1501 = vmatprep.mubr.msk.f32.mxu1 %vm1754_vm0, %v1753_v7  ;;  %1704 = vmatpush3.bf16.msra.mxu1 %v1703_v55 }
 0x5a0   :  { %1705 = vmatprep.subr.bf16.mxu1 %v1755_v11  ;;  %p1736_p3 = por %p1735_p2, %p1734_p1 }
 0x5a2   :  { %p1737_p4 = pnand %p1736_p3, %p1730_p0 }
 0x5a3   :  { %1707 = vmatpush3.bf16.msra.mxu1 %v1706_v58 }
 0x5a4   :  { %1708 = vmatprep.subr.bf16.mxu1 %v1755_v11 }
 0x5a7   :  { %1710 = vmatpush3.bf16.msra.mxu1 %v1709_v28 }
 0x66d   :  { %v1323_v59 = vpop.f32.mrb[8].mxu1 }
 0x66e   :  { %v1324_v60 = vpop.f32.mrb[9].mxu1 }
 0x66f   :  { %v1325_v61 = vadd.f32 %v1324_v60, %v1323_v59 }
 0x671   :  { %v917_v26 = vadd.f32 %v1325_v61, %v2260_v62  ;;  %v1326_v10 = vpop.f32.mrb[10].mxu1 }
 0x672   :  { %v1327_v1 = vpop.f32.mrb[11].mxu1 }
 0x673   :  { %v926_v2 = vadd.f32 %v1241_v0, %v917_v26  ;;  %v1328_v3 = vadd.f32 %v1327_v1, %v1326_v10 }
 0x675   :  { %928 = vst [vmem:[%s2443_s15] sm:$0xff] %v926_v2  ;;  %v930_v4 = vrot.slane %v926_v2, 4  ;;  %v918_v5 = vadd.f32 %v1328_v3, %v2264_v63 }
 0x677   :  { %v931_v6 = vadd.f32 %v930_v4, %v926_v2  ;;  %v927_v8 = vadd.f32 %v1241_v0, %v918_v5 }
 0x679   :  { %v932_v9 = vrot.slane %v931_v6, 2  ;;  %929 = vst [vmem:[%s2443_s15 + $0x8] sm:$0xff] %v927_v8  ;;  %v936_v12 = vrot.slane %v927_v8, 4 }
 0x67b   :  { %v933_v62 = vadd.f32 %v932_v9, %v931_v6  ;;  %v937_v15 = vadd.f32 %v936_v12, %v927_v8 }
 0x67d   :  { %v938_v17 = vrot.slane %v937_v15, 2  ;;  %v934_v18 = vrot.slane %v933_v62, 1 }
 0x67f   :  { %v939_v19 = vadd.f32 %v938_v17, %v937_v15  ;;  %v935_v20 = vadd.f32 %v934_v18, %v933_v62 }
 0x681   :  { %v940_v21 = vrot.slane %v939_v19, 1  ;;  %v943_v23 = vmul.f32 0.125, %v935_v20 }
 0x683   :  { %v941_v22 = vadd.f32 %v940_v21, %v939_v19 }
 0x685   :  { %v944_v24 = vmul.f32 0.125, %v941_v22 }
 0x687   :  { %v971_v63 = vsel %vm970_vm2, %v944_v24, %v943_v23 }
 0x688   :  { %1483 = vmatmul.mubr.f32.vlgmr.msra.gmra.mrb[12].mxu0 %v971_v63 }
 0x689   :  { %1512 = vmatprep.mubr.msk.f32.mxu0 %vm1754_vm0, %v1753_v7  ;;  %1713 = vmatpush3.bf16.msra.mxu0 %v1712_v31  ;;  %v1242_v7 = vld [vmem:[%s2438_s10] ss:$0 sm:$0xff] }
 0x68a   :  { %1714 = vmatprep.subr.bf16.mxu0 %v1755_v11  ;;  %v1243_v11 = vld [vmem:[%s2440_s12] ss:$0 sm:$0xff] }
 0x68d   :  { %1716 = vmatpush3.bf16.msra.mxu0 %v1715_v35 }
 0x75b   :  { %v1039_v13 = vpop.f32.mrb[12].mxu0 }
 0x75c   :  { %v1040_v14 = vadd.f32 %v1242_v7, %v1039_v13  ;;  %v1484_v16 = vpop.f32.mrb[13].mxu0 }
 0x75e   :  { %v1043_v32 = vmax.f32 %v1040_v14, 0.0 }
 0x760   :  { %1502 = vmatmul.mubr.msk.f32.vlgmr.msra.gmra.mrb[12].mxu1 %vm1059_vm3, %v1043_v32 }
 0x833   :  { %v1129_v36 = vpop.f32.mrb[12].mxu1 }
 0x834   :  { %v1130_v37 = vadd.f32 %v1243_v11, %v1129_v36  ;;  %v1503_v38 = vpop.f32.mrb[13].mxu1 }
 0x836   :  { %v1133_v39 = vmax.f32 %v1130_v37, 0.0 }
 0x838   :  { %1513 = vmatmul.mubr.msk.f32.vlgmr.msra.gmra.mrb[14].mxu0 %vm1145_vm4, %v1133_v39 }
 0x90b   :  { %v1215_v41 = vpop.f32.mrb[14].mxu0 }
 0x90c   :  { %v1216_v42 = vadd.f32 %v1245_v40, %v1215_v41  ;;  %v1514_v43 = vpop.f32.mrb[15].mxu0 }
 0x90e   :  { %1219 = vst [vmem:[#allocation2] sm:$0x3] %v1216_v42 }
 0x90f   :  { %1740 = shalt.err (!%p1737_p4)
}
 0x910   :  { %s1741_s1 = scalar_lea.hbm %s2444_s16, 32 }
 0x911   :  { %p1742_p5 = scmp.ne.s32.totalorder %s2444_s16, %s1741_s1  ;;  %p1745_p6 = scmp.lt.u32.totalorder %s1741_s1, %s2444_s16 }
 0x913   :  { %p1747_p7 = pnand %p1745_p6, %p1742_p5 }
 0x915   :  { %1750 = shalt.err (!%p1747_p7)
}
 0x916   :  { %1231 = dma.vmem_to_hbm [thread:$0]  %s1229_s20, 32, %s2444_s16, [#allocation3]  }
 0x917   :  { %1751 = dma.done.wait [#allocation3], 32  }
 0x918   :  { %1752 = vsyncadd [#allocation3], 4294967264 }
 0x919   :  { %1237 = vsyncpa [#allocation3], 1 }

// kernel: dynn_wrapper_forward.9
= control target key start
LH: loop header
LB: loop body
LE: loop exit
PB: predicated region body
PF: predicated region fallthrough
CT: control target
= control target key end

     0   :  { %v504_v3 = vmov 0.0|0.0   ;;  %vm505_vm0 = vmmov 0   ;;  %v506_v6 = vmov 0.0   ;;  %s679_s0 = inlined_call_operand.vmem [shape: f32[2,8,128], index: 0, kind: input, shape index: {}]   ;;  %s680_s1 = inlined_call_operand.vmem [shape: f32[128,64], index: 1, kind: input, shape index: {}]   ;;  %s681_s2 = inlined_call_operand.vmem [shape: f32[1,64], index: 2, kind: input, shape index: {}]   ;;  %s682_s3 = inlined_call_operand.vmem [shape: f32[64,32], index: 3, kind: input, shape index: {}]   ;;  %s683_s4 = inlined_call_operand.vmem [shape: f32[1,32], index: 4, kind: input, shape index: {}]   ;;  %s684_s5 = inlined_call_operand.vmem [shape: f32[32,128], index: 5, kind: input, shape index: {}]   ;;  %s685_s6 = inlined_call_operand.vmem [shape: f32[1,128], index: 6, kind: input, shape index: {}]   ;;  %s686_s7 = inlined_call_operand.hbm [shape: f32[2,128], index: 7, kind: output, shape index: {}]  }
   0x1   :  { %v44_v0 = vld [vmem:[%s680_s1] sm:$0xff]  ;;  %v45_v1 = vld [vmem:[%s680_s1 + $0x8] sm:$0xff]  ;;  %v46_v2 = vld [vmem:[%s680_s1 + $0x10] sm:$0xff]  ;;  %434 = vmatprep.subr.bf16.mxu0 %v504_v3  ;;  %401 = vmatprep.mubr.msk.f32.mxu0 %vm505_vm0, %v506_v6 }
   0x2   :  { %v435_v4 = vpack.c.bf16 %v45_v1, %v44_v0  ;;  %v47_v5 = vld [vmem:[%s680_s1 + $0x18] sm:$0xff]  ;;  %458 = vmatprep.subr.bf16.mxu1 %v504_v3  ;;  %420 = vmatprep.mubr.msk.f32.mxu1 %vm505_vm0, %v506_v6  ;;  %v48_v8 = vld [vmem:[%s680_s1 + $0x20] sm:$0xff]  ;;  %v49_v9 = vld [vmem:[%s680_s1 + $0x28] sm:$0xff] }
   0x3   :  { %v438_v7 = vpack.c.bf16 %v47_v5, %v46_v2  ;;  %v27_v10 = vld [vmem:[%s679_s0] sm:$0xff]  ;;  %v28_v11 = vld [vmem:[%s679_s0 + $0x8] sm:$0xff]  ;;  %v145_v16 = vld [vmem:[%s682_s3 + $0x10] sm:$0xff]  ;;  %v441_v17 = vpack.c.bf16 %v49_v9, %v48_v8 }
   0x4   :  { %436 = vmatpush3.bf16.msra.mxu0 %v435_v4  ;;  %v29_v12 = vrot.slane %v27_v10, 4  ;;  %v35_v13 = vrot.slane %v28_v11, 4  ;;  %v143_v14 = vld [vmem:[%s682_s3] sm:$0xff]  ;;  %v144_v15 = vld [vmem:[%s682_s3 + $0x8] sm:$0xff]  ;;  %v146_v19 = vld [vmem:[%s682_s3 + $0x18] sm:$0xff] }
   0x5   :  { %437 = vmatprep.subr.bf16.mxu0 %v504_v3  ;;  %v459_v18 = vpack.c.bf16 %v144_v15, %v143_v14  ;;  %v50_v20 = vld [vmem:[%s680_s1 + $0x30] sm:$0xff]  ;;  %v51_v21 = vld [vmem:[%s680_s1 + $0x38] sm:$0xff] }
   0x6   :  { %v30_v22 = vadd.f32 %v29_v12, %v27_v10  ;;  %v36_v23 = vadd.f32 %v35_v13, %v28_v11 }
   0x8   :  { %439 = vmatpush3.bf16.msra.mxu0 %v438_v7 }
   0x9   :  { %440 = vmatprep.subr.bf16.mxu0 %v504_v3 }
   0xa   :  { %12 = vsyncpa [#allocation3], 0  ;;  %460 = vmatpush3.bf16.msra.mxu1 %v459_v18  ;;  %v462_v24 = vpack.c.bf16 %v146_v19, %v145_v16  ;;  %v147_v25 = vld [vmem:[%s682_s3 + $0x20] sm:$0xff]  ;;  %v148_v26 = vld [vmem:[%s682_s3 + $0x28] sm:$0xff]  ;;  %v444_v27 = vpack.c.bf16 %v51_v21, %v50_v20  ;;  %v31_v28 = vrot.slane %v30_v22, 2  ;;  %v37_v29 = vrot.slane %v36_v23, 2 }
   0xb   :  { %461 = vmatprep.subr.bf16.mxu1 %v504_v3  ;;  %v52_v30 = vld [vmem:[%s680_s1 + $0x40] sm:$0xff]  ;;  %v53_v31 = vld [vmem:[%s680_s1 + $0x48] sm:$0xff]  ;;  %v465_v32 = vpack.c.bf16 %v148_v26, %v147_v25  ;;  %v54_v36 = vld [vmem:[%s680_s1 + $0x50] sm:$0xff]  ;;  %vm69_vm1 = vcmask 1041409   ;;  %vm158_vm2 = vcmask 523264   ;;  %vm244_vm3 = vcmask 261120  }
   0xc   :  { %442 = vmatpush3.bf16.msra.mxu0 %v441_v17  ;;  %v447_v33 = vpack.c.bf16 %v53_v31, %v52_v30  ;;  %v32_v34 = vadd.f32 %v31_v28, %v30_v22  ;;  %v38_v35 = vadd.f32 %v37_v29, %v36_v23  ;;  %v55_v37 = vld [vmem:[%s680_s1 + $0x58] sm:$0xff]  ;;  %v56_v41 = vld [vmem:[%s680_s1 + $0x60] sm:$0xff]  ;;  %v57_v42 = vld [vmem:[%s680_s1 + $0x68] sm:$0xff]  ;;  %s507_s16 = smov [#allocation2]  }
   0xd   :  { %443 = vmatprep.subr.bf16.mxu0 %v504_v3  ;;  %v450_v38 = vpack.c.bf16 %v55_v37, %v54_v36  ;;  %v453_v43 = vpack.c.bf16 %v57_v42, %v56_v41  ;;  %v58_v46 = vld [vmem:[%s680_s1 + $0x70] sm:$0xff]  ;;  %v59_v47 = vld [vmem:[%s680_s1 + $0x78] sm:$0xff]  ;;  %v333_v55 = vld [vmem:[%s681_s2] ss:$0 sm:$0xff]  ;;  %s325_s17 = sshll.u32 %s507_s16, 4  ;;  %s326_s17 = int_to_ptr.vmem [resolvable:$true] %s325_s17 }
   0xe   :  { %463 = vmatpush3.bf16.msra.mxu1 %v462_v24  ;;  %v33_v39 = vrot.slane %v32_v34, 1  ;;  %v39_v40 = vrot.slane %v38_v35, 1  ;;  %v456_v48 = vpack.c.bf16 %v59_v47, %v58_v46  ;;  %v149_v52 = vld [vmem:[%s682_s3 + $0x30] sm:$0xff]  ;;  %v150_v53 = vld [vmem:[%s682_s3 + $0x38] sm:$0xff]  ;;  %v233_v56 = vld [vmem:[%s684_s5] sm:$0xff]  ;;  %p485_p1 = scmp.lt.s32.totalorder %s326_s17, %s326_s17 }
   0xf   :  { %464 = vmatprep.subr.bf16.mxu1 %v504_v3  ;;  %v468_v54 = vpack.c.bf16 %v150_v53, %v149_v52  ;;  %v234_v57 = vld [vmem:[%s684_s5 + $0x8] sm:$0xff]  ;;  %v235_v63 = vld [vmem:[%s684_s5 + $0x10] sm:$0xff]  ;;  %v236_v0 = vld [vmem:[%s684_s5 + $0x18] sm:$0xff]  ;;  %s480_s5 = scalar_lea.vmem %s326_s17, 32 }
  0x10   :  { %445 = vmatpush3.bf16.msra.mxu0 %v444_v27  ;;  %v34_v44 = vadd.f32 %v33_v39, %v32_v34  ;;  %v40_v45 = vadd.f32 %v39_v40, %v38_v35  ;;  %v471_v61 = vpack.c.bf16 %v234_v57, %v233_v56  ;;  %v474_v1 = vpack.c.bf16 %v236_v0, %v235_v63  ;;  %v334_v2 = vld [vmem:[%s683_s4] ss:$0 sm:$0xff]  ;;  %p481_p0 = scmp.ne.s32.totalorder %s326_s17, %s480_s5  ;;  %p486_p2 = scmp.lt.s32.totalorder %s480_s5, %s480_s5 }
  0x11   :  { %446 = vmatprep.subr.bf16.mxu0 %v504_v3 }
  0x12   :  { %466 = vmatpush3.bf16.msra.mxu1 %v465_v32  ;;  %v42_v49 = vmul.f32 0.125, %v34_v44  ;;  %v43_v50 = vmul.f32 0.125, %v40_v45  ;;  %p487_p3 = por %p486_p2, %p485_p1 }
  0x13   :  { %467 = vmatprep.subr.bf16.mxu1 %v504_v3 }
  0x14   :  { %448 = vmatpush3.bf16.msra.mxu0 %v447_v33  ;;  %v70_v51 = vsel %vm69_vm1, %v43_v50, %v42_v49  ;;  %p488_p4 = pnand %p487_p3, %p481_p0 }
  0x15   :  { %449 = vmatprep.subr.bf16.mxu0 %v504_v3 }
  0x16   :  { %469 = vmatpush3.bf16.msra.mxu1 %v468_v54 }
  0x17   :  { %470 = vmatprep.subr.bf16.mxu1 %v504_v3 }
  0x18   :  { %451 = vmatpush3.bf16.msra.mxu0 %v450_v38 }
  0x19   :  { %452 = vmatprep.subr.bf16.mxu0 %v504_v3 }
  0x1c   :  { %454 = vmatpush3.bf16.msra.mxu0 %v453_v43 }
  0x1d   :  { %455 = vmatprep.subr.bf16.mxu0 %v504_v3 }
  0x20   :  { %457 = vmatpush3.bf16.msra.mxu0 %v456_v48 }
  0x23   :  { %402 = vmatmul.mubr.f32.vlgmr.msra.gmra.mrb[0].mxu0 %v70_v51 }
  0xf6   :  { %v138_v58 = vpop.f32.mrb[0].mxu0 }
  0xf7   :  { %v139_v59 = vadd.f32 %v333_v55, %v138_v58  ;;  %v403_v60 = vpop.f32.mrb[1].mxu0 }
  0xf9   :  { %v142_v62 = vmax.f32 %v139_v59, 0.0 }
  0xfb   :  { %421 = vmatmul.mubr.msk.f32.vlgmr.msra.gmra.mrb[0].mxu1 %vm158_vm2, %v142_v62 }
  0xfc   :  { %472 = vmatpush3.bf16.msra.mxu1 %v471_v61  ;;  %431 = vmatprep.mubr.msk.f32.mxu1 %vm505_vm0, %v506_v6 }
  0xfd   :  { %473 = vmatprep.subr.bf16.mxu1 %v504_v3  ;;  %v336_v3 = vld [vmem:[%s685_s6] ss:$0 sm:$0xff] }
 0x100   :  { %475 = vmatpush3.bf16.msra.mxu1 %v474_v1 }
 0x1ce   :  { %v228_v4 = vpop.f32.mrb[0].mxu1 }
 0x1cf   :  { %v229_v5 = vadd.f32 %v334_v2, %v228_v4  ;;  %v422_v7 = vpop.f32.mrb[1].mxu1 }
 0x1d1   :  { %v232_v6 = vmax.f32 %v229_v5, 0.0 }
 0x1d3   :  { %432 = vmatmul.mubr.msk.f32.vlgmr.msra.gmra.mrb[2].mxu1 %vm244_vm3, %v232_v6 }
 0x2a6   :  { %v314_v8 = vpop.f32.mrb[2].mxu1 }
 0x2a7   :  { %v315_v9 = vadd.f32 %v336_v3, %v314_v8  ;;  %v433_v10 = vpop.f32.mrb[3].mxu1 }
 0x2a9   :  { %318 = vst [vmem:[#allocation2] sm:$0x3] %v315_v9 }
 0x2aa   :  { %491 = shalt.err (!%p488_p4)
}
 0x2ab   :  { %s492_s19 = scalar_lea.hbm %s686_s7, 32 }
 0x2ac   :  { %p493_p5 = scmp.ne.s32.totalorder %s686_s7, %s492_s19  ;;  %p496_p6 = scmp.lt.u32.totalorder %s492_s19, %s686_s7 }
 0x2ae   :  { %p498_p7 = pnand %p496_p6, %p493_p5 }
 0x2b0   :  { %501 = shalt.err (!%p498_p7)
}
 0x2b1   :  { %328 = dma.vmem_to_hbm [thread:$0]  %s326_s17, 32, %s686_s7, [#allocation3]  }
 0x2b2   :  { %502 = dma.done.wait [#allocation3], 32  }
 0x2b3   :  { %503 = vsyncadd [#allocation3], 4294967264 }
 0x2b4   :  { %332 = vsyncpa [#allocation3], 1 }

</bundles_post_ra>
